<compile_context>
chip_gen: v7x
topology: tpu7x:2x2x1
jax: 0.10.0
libtpu: 0.0.40
codegen_flags: <defaults>
</compile_context>

<pallas_src>
import jax
import jax.numpy as jnp
from jax.experimental import pallas as pl
from jax.experimental.pallas import tpu as pltpu

IN_DIM = 3 * 28 * 28          # 2352 (torch x.view(-1, 3*28*28))
HID = 512
OUT_DIM = 1
OUT_PAD = 128                 # lane-dense final layer; real logit in column 0


def mlp_kernel(x_ref, w1_ref, b1_ref, w2_ref, b2_ref, w3_ref, b3_ref, o_ref):
    # x arrives as f32 (no wrapper-side copy); cast to bf16 for the MXU.
    x = x_ref[...].astype(jnp.bfloat16)
    # fc1 + relu (bf16 operands, f32 accumulation on the MXU)
    h1 = jnp.dot(x, w1_ref[...], preferred_element_type=jnp.float32)
    h1 = jnp.maximum(h1 + b1_ref[...], 0.0).astype(jnp.bfloat16)
    # fc2 + relu
    h2 = jnp.dot(h1, w2_ref[...], preferred_element_type=jnp.float32)
    h2 = jnp.maximum(h2 + b2_ref[...], 0.0).astype(jnp.bfloat16)
    # fc3 -- zero-padded to 128 output lanes so the store is unmasked / lane-dense
    o = jnp.dot(h2, w3_ref[...], preferred_element_type=jnp.float32)
    o_ref[...] = (o + b3_ref[...]).astype(o_ref.dtype)


def _tile_b(batch):
    """Batch tile: large tiles (cap 512) to amortize per-grid-step overhead,
    but >= 2 grid tiles when batch allows so dimension_semantics=("parallel",)
    actually splits work across v7x's two TensorCores."""
    if batch <= 8:
        return 8
    half = -(-batch // 2)                       # ceil(batch / 2)
    return max(8, min(512, ((half + 7) // 8) * 8))


def net_forward(x_nchw, kparams):
    """x_nchw: (B, 3, 28, 28) float32 -> logits: (B,) float32."""
    w1, b1, w2, b2, w3, b3 = kparams            # bf16 weights, f32 biases (fc3 padded)
    B = x_nchw.shape[0]
    tile_b = _tile_b(B)
    n_tiles = pl.cdiv(B, tile_b)
    b_pad = n_tiles * tile_b

    # Same flattening as torch x.view(-1, 3*28*28): free reshape, stays f32.
    x2d = x_nchw.reshape(B, IN_DIM)
    if b_pad != B:                              # row-pad only when needed
        x2d = jnp.pad(x2d, ((0, b_pad - B), (0, 0)))

    resident = lambda shape: pl.BlockSpec(shape, lambda i: (0, 0))  # stays in VMEM

    cost = pl.CostEstimate(
        flops=2 * b_pad * (IN_DIM * HID + HID * HID + HID * OUT_PAD),
        transcendentals=0,
        bytes_accessed=(b_pad * IN_DIM * 4                       # x, f32
                        + (w1.size + w2.size + w3.size) * 2      # bf16 weights
                        + (b1.size + b2.size + b3.size) * 4      # f32 biases
                        + b_pad * OUT_PAD * 2),                  # bf16 output
    )

    out = pl.pallas_call(
        mlp_kernel,
        out_shape=jax.ShapeDtypeStruct((b_pad, OUT_PAD), jnp.bfloat16),
        grid=(n_tiles,),
        in_specs=[
            pl.BlockSpec((tile_b, IN_DIM), lambda i: (i, 0)),  # x: f32, full-K block, streamed
            resident((IN_DIM, HID)),                           # w1 (bf16, unpadded K)
            resident((1, HID)),                                # b1 (f32)
            resident((HID, HID)),                              # w2 (bf16)
            resident((1, HID)),                                # b2 (f32)
            resident((HID, OUT_PAD)),                          # w3 (bf16, zero-padded cols)
            resident((1, OUT_PAD)),                            # b3 (f32, zero-padded)
        ],
        out_specs=pl.BlockSpec((tile_b, OUT_PAD), lambda i: (i, 0)),
        compiler_params=pltpu.CompilerParams(
            dimension_semantics=("parallel",),        # batch tiles shard across v7x 2 TCs
            vmem_limit_bytes=32 * 1024 * 1024,        # ~16 MiB used at tile_b=512
        ),
        cost_estimate=cost,
    )(x2d, w1, b1, w2, b2, w3, b3)

    # torch .flatten() on (B, 1) -> (B,): keep real rows, logit column 0, back to f32.
    return out[:B, 0].astype(jnp.float32)


def init_params(key):
    """f32 params mimicking nn.Linear defaults: U(-1/sqrt(fan_in), +), (in, out) layout."""
    ks = jax.random.split(key, 6)

    def lin(kw, kb, fan_in, fan_out):
        bound = 1.0 / jnp.sqrt(jnp.float32(fan_in))
        w = jax.random.uniform(kw, (fan_in, fan_out), jnp.float32, -bound, bound)
        b = jax.random.uniform(kb, (1, fan_out), jnp.float32, -bound, bound)
        return w, b

    w1, b1 = lin(ks[0], ks[1], IN_DIM, HID)
    w2, b2 = lin(ks[2], ks[3], HID, HID)
    w3, b3 = lin(ks[4], ks[5], HID, OUT_DIM)
    return (w1, b1, w2, b2, w3, b3)


def prepare_kernel_params(params):
    """One-time at init: bf16 weights (no K pad on w1), fc3 zero-padded to 128 lanes."""
    w1, b1, w2, b2, w3, b3 = params
    w1p = w1.astype(jnp.bfloat16)
    w2p = w2.astype(jnp.bfloat16)
    w3p = jnp.pad(w3, ((0, 0), (0, OUT_PAD - OUT_DIM))).astype(jnp.bfloat16)
    b3p = jnp.pad(b3, ((0, 0), (0, OUT_PAD - OUT_DIM)))
    return (w1p, b1, w2p, b2, w3p, b3p)


def reference_forward(x_nchw, params):
    """Pure-JAX f32 reference of the PyTorch forward."""
    w1, b1, w2, b2, w3, b3 = params
    x = x_nchw.reshape(x_nchw.shape[0], IN_DIM)
    h1 = jnp.maximum(x @ w1 + b1, 0.0)
    h2 = jnp.maximum(h1 @ w2 + b2, 0.0)
    return (h2 @ w3 + b3).reshape(-1)


if __name__ == "__main__":
    key = jax.random.PRNGKey(0)
    k_x, k_p = jax.random.split(key)

    B = 8
    x = jax.random.normal(k_x, (B, 3, 28, 28), jnp.float32)
    params = init_params(k_p)
    kparams = prepare_kernel_params(params)

    logits = jax.jit(net_forward)(x, kparams)
    jax.block_until_ready(logits)

    ref = reference_forward(x, params)
    assert logits.shape == (B,)
    # bf16 weights/activations/output with f32 accumulation: loosened tolerance vs f32 ref.
    assert jnp.allclose(logits, ref, atol=3e-2, rtol=3e-2), (logits, ref)

    print("KERNEL_OK")
</pallas_src>

<mosaic_0001>
module attributes {stable_mosaic.version = 11 : i64} {
  func.func @mlp_kernel(%arg0: i32, %arg1: memref<8x2352xf32, #tpu.memory_space<vmem>>, %arg2: memref<2352x512xbf16, #tpu.memory_space<vmem>>, %arg3: memref<1x512xf32, #tpu.memory_space<vmem>>, %arg4: memref<512x512xbf16, #tpu.memory_space<vmem>>, %arg5: memref<1x512xf32, #tpu.memory_space<vmem>>, %arg6: memref<512x128xbf16, #tpu.memory_space<vmem>>, %arg7: memref<1x128xf32, #tpu.memory_space<vmem>>, %arg8: memref<8x128xbf16, #tpu.memory_space<vmem>>) attributes {dimension_semantics = [#tpu.dimension_semantics<parallel>], iteration_bounds = array<i64: 1>, scalar_prefetch = 0 : i64, scratch_operands = 0 : i64, tpu.core_type = #tpu.core_type<tc>, window_params = [{transform_indices = @transform_0, window_bounds = array<i64: 8, 2352>}, {pipeline_mode = #tpu.pipeline_mode<synchronous>, transform_indices = @transform_1, window_bounds = array<i64: 2352, 512>}, {pipeline_mode = #tpu.pipeline_mode<synchronous>, transform_indices = @transform_2, window_bounds = array<i64: 1, 512>}, {pipeline_mode = #tpu.pipeline_mode<synchronous>, transform_indices = @transform_3, window_bounds = array<i64: 512, 512>}, {pipeline_mode = #tpu.pipeline_mode<synchronous>, transform_indices = @transform_4, window_bounds = array<i64: 1, 512>}, {pipeline_mode = #tpu.pipeline_mode<synchronous>, transform_indices = @transform_5, window_bounds = array<i64: 512, 128>}, {pipeline_mode = #tpu.pipeline_mode<synchronous>, transform_indices = @transform_6, window_bounds = array<i64: 1, 128>}, {transform_indices = @transform_7, window_bounds = array<i64: 8, 128>}]} {
    %c0 = arith.constant 0 : index
    %c0_0 = arith.constant 0 : index
    %0 = vector.load %arg1[%c0, %c0_0] : memref<8x2352xf32, #tpu.memory_space<vmem>>, vector<8x2352xf32>
    %1 = arith.truncf %0 : vector<8x2352xf32> to vector<8x2352xbf16>
    %c0_1 = arith.constant 0 : index
    %c0_2 = arith.constant 0 : index
    %2 = vector.load %arg2[%c0_1, %c0_2] : memref<2352x512xbf16, #tpu.memory_space<vmem>>, vector<2352x512xbf16>
    %cst = arith.constant dense<0.000000e+00> : vector<8x512xf32>
    %3 = tpu.matmul %1, %2, %cst {dimension_numbers = #tpu.dot_dimension_numbers<[1], [0], [0], [1], [0, 0, 1, 1], [], []>} : vector<8x2352xbf16>, vector<2352x512xbf16>, vector<8x512xf32> -> vector<8x512xf32>
    %c0_3 = arith.constant 0 : index
    %c0_4 = arith.constant 0 : index
    %4 = vector.load %arg3[%c0_3, %c0_4] : memref<1x512xf32, #tpu.memory_space<vmem>>, vector<1x512xf32>
    %5 = vector.broadcast %4 : vector<1x512xf32> to vector<8x512xf32>
    %6 = arith.addf %3, %5 : vector<8x512xf32>
    %cst_5 = arith.constant 0.000000e+00 : f32
    %7 = vector.broadcast %cst_5 : f32 to vector<8x512xf32>
    %8 = arith.maximumf %6, %7 : vector<8x512xf32>
    %9 = arith.truncf %8 : vector<8x512xf32> to vector<8x512xbf16>
    %c0_6 = arith.constant 0 : index
    %c0_7 = arith.constant 0 : index
    %10 = vector.load %arg4[%c0_6, %c0_7] : memref<512x512xbf16, #tpu.memory_space<vmem>>, vector<512x512xbf16>
    %cst_8 = arith.constant dense<0.000000e+00> : vector<8x512xf32>
    %11 = tpu.matmul %9, %10, %cst_8 {dimension_numbers = #tpu.dot_dimension_numbers<[1], [0], [0], [1], [0, 0, 1, 1], [], []>} : vector<8x512xbf16>, vector<512x512xbf16>, vector<8x512xf32> -> vector<8x512xf32>
    %c0_9 = arith.constant 0 : index
    %c0_10 = arith.constant 0 : index
    %12 = vector.load %arg5[%c0_9, %c0_10] : memref<1x512xf32, #tpu.memory_space<vmem>>, vector<1x512xf32>
    %13 = vector.broadcast %12 : vector<1x512xf32> to vector<8x512xf32>
    %14 = arith.addf %11, %13 : vector<8x512xf32>
    %cst_11 = arith.constant 0.000000e+00 : f32
    %15 = vector.broadcast %cst_11 : f32 to vector<8x512xf32>
    %16 = arith.maximumf %14, %15 : vector<8x512xf32>
    %17 = arith.truncf %16 : vector<8x512xf32> to vector<8x512xbf16>
    %c0_12 = arith.constant 0 : index
    %c0_13 = arith.constant 0 : index
    %18 = vector.load %arg6[%c0_12, %c0_13] : memref<512x128xbf16, #tpu.memory_space<vmem>>, vector<512x128xbf16>
    %cst_14 = arith.constant dense<0.000000e+00> : vector<8x128xf32>
    %19 = tpu.matmul %17, %18, %cst_14 {dimension_numbers = #tpu.dot_dimension_numbers<[1], [0], [0], [1], [0, 0, 1, 1], [], []>} : vector<8x512xbf16>, vector<512x128xbf16>, vector<8x128xf32> -> vector<8x128xf32>
    %c0_15 = arith.constant 0 : index
    %c0_16 = arith.constant 0 : index
    %20 = vector.load %arg7[%c0_15, %c0_16] : memref<1x128xf32, #tpu.memory_space<vmem>>, vector<1x128xf32>
    %21 = vector.broadcast %20 : vector<1x128xf32> to vector<8x128xf32>
    %22 = arith.addf %19, %21 : vector<8x128xf32>
    %23 = arith.truncf %22 : vector<8x128xf32> to vector<8x128xbf16>
    %c0_17 = arith.constant 0 : index
    %c0_18 = arith.constant 0 : index
    %24 = vector.load %arg8[%c0_17, %c0_18] : memref<8x128xbf16, #tpu.memory_space<vmem>>, vector<8x128xbf16>
    tpu.vector_store %arg8[%c0_17, %c0_18], %23 {strides = array<i32>} : memref<8x128xbf16, #tpu.memory_space<vmem>>, vector<8x128xbf16>,
    return
  }
  func.func @transform_0(%arg0: i32) -> (i32, i32) {
    %c0_i32 = arith.constant 0 : i32
    %c0_i32_0 = arith.constant 0 : i32
    return %arg0, %c0_i32 : i32, i32
  }
  func.func @transform_1(%arg0: i32) -> (i32, i32) {
    %c0_i32 = arith.constant 0 : i32
    %c0_i32_0 = arith.constant 0 : i32
    %c0_i32_1 = arith.constant 0 : i32
    return %c0_i32, %c0_i32_0 : i32, i32
  }
  func.func @transform_2(%arg0: i32) -> (i32, i32) {
    %c0_i32 = arith.constant 0 : i32
    %c0_i32_0 = arith.constant 0 : i32
    %c0_i32_1 = arith.constant 0 : i32
    return %c0_i32, %c0_i32_0 : i32, i32
  }
  func.func @transform_3(%arg0: i32) -> (i32, i32) {
    %c0_i32 = arith.constant 0 : i32
    %c0_i32_0 = arith.constant 0 : i32
    %c0_i32_1 = arith.constant 0 : i32
    return %c0_i32, %c0_i32_0 : i32, i32
  }
  func.func @transform_4(%arg0: i32) -> (i32, i32) {
    %c0_i32 = arith.constant 0 : i32
    %c0_i32_0 = arith.constant 0 : i32
    %c0_i32_1 = arith.constant 0 : i32
    return %c0_i32, %c0_i32_0 : i32, i32
  }
  func.func @transform_5(%arg0: i32) -> (i32, i32) {
    %c0_i32 = arith.constant 0 : i32
    %c0_i32_0 = arith.constant 0 : i32
    %c0_i32_1 = arith.constant 0 : i32
    return %c0_i32, %c0_i32_0 : i32, i32
  }
  func.func @transform_6(%arg0: i32) -> (i32, i32) {
    %c0_i32 = arith.constant 0 : i32
    %c0_i32_0 = arith.constant 0 : i32
    %c0_i32_1 = arith.constant 0 : i32
    return %c0_i32, %c0_i32_0 : i32, i32
  }
  func.func @transform_7(%arg0: i32) -> (i32, i32) {
    %c0_i32 = arith.constant 0 : i32
    %c0_i32_0 = arith.constant 0 : i32
    return %arg0, %c0_i32 : i32, i32
  }
}

</mosaic_0001>

<bundles_post_ra>
// kernel: net_forward.1
= control target key start
LH: loop header
LB: loop body
LE: loop exit
PB: predicated region body
PF: predicated region fallthrough
CT: control target
= control target key end

     0   :  { %12 = vsyncpa [#allocation3], 0  ;;  %s8192_s0 = inlined_call_operand.vmem [shape: f32[8,2352], index: 0, kind: input, shape index: {}]   ;;  %s8193_s1 = inlined_call_operand.hbm [shape: bf16[2352,512], index: 1, kind: input, shape index: {}]   ;;  %s8194_s2 = inlined_call_operand.hbm [shape: f32[1,512], index: 2, kind: input, shape index: {}]   ;;  %s8195_s3 = inlined_call_operand.hbm [shape: bf16[512,512], index: 3, kind: input, shape index: {}]   ;;  %s8196_s4 = inlined_call_operand.hbm [shape: f32[1,512], index: 4, kind: input, shape index: {}]   ;;  %s8197_s5 = inlined_call_operand.hbm [shape: bf16[512,128], index: 5, kind: input, shape index: {}]   ;;  %s8198_s6 = inlined_call_operand.hbm [shape: f32[1,128], index: 6, kind: input, shape index: {}]   ;;  %s8199_s7 = inlined_call_operand.vmem [shape: bf16[8,128], index: 7, kind: output, shape index: {}]  }
   0x1   :  { %13 = vsyncpa [#allocation5], 0 }
   0x2   :  { %14 = vsyncpa [#allocation8], 0 }
   0x3   :  { %15 = vsyncpa [#allocation11], 0  ;;  %s7978_s24 = smov [#allocation4]   ;;  %s7979_s26 = smov [#allocation7]  }
   0x4   :  { %s36_s25 = sshll.u32 %s7978_s24, 4  ;;  %s58_s27 = sshll.u32 %s7979_s26, 4  ;;  %s37_s25 = int_to_ptr.vmem [resolvable:$true] %s36_s25  ;;  %s59_s27 = int_to_ptr.vmem [resolvable:$true] %s58_s27 }
   0x5   :  { %s7838_s30 = scalar_lea.hbm %s8194_s2, 64 }
   0x6   :  { %p7839_p0 = scmp.ne.s32.totalorder %s8194_s2, %s7838_s30  ;;  %p7842_p1 = scmp.lt.u32.totalorder %s7838_s30, %s8194_s2 }
   0x8   :  { %p7844_p2 = pnand %p7842_p1, %p7839_p0 }
   0xa   :  { %7847 = shalt.err (!%p7844_p2)
}
   0xb   :  { %s7848_s12 = scalar_lea.vmem %s37_s25, 64  ;;  %p7853_p4 = scmp.lt.s32.totalorder %s37_s25, %s37_s25 }
   0xc   :  { %p7849_p3 = scmp.ne.s32.totalorder %s37_s25, %s7848_s12  ;;  %p7854_p5 = scmp.lt.s32.totalorder %s7848_s12, %s7848_s12 }
   0xe   :  { %p7855_p6 = por %p7854_p5, %p7853_p4 }
  0x10   :  { %p7856_p7 = pnand %p7855_p6, %p7849_p3 }
  0x12   :  { %7859 = shalt.err (!%p7856_p7)
}
  0x13   :  { %39 = dma.hbm_to_vmem [thread:$0]  %s8194_s2, 64, %s37_s25, [#allocation5]  }
  0x14   :  { %s7860_s17 = scalar_lea.hbm %s8196_s4, 64 }
  0x15   :  { %p7861_p8 = scmp.ne.s32.totalorder %s8196_s4, %s7860_s17  ;;  %p7864_p9 = scmp.lt.u32.totalorder %s7860_s17, %s8196_s4 }
  0x17   :  { %p7866_p10 = pnand %p7864_p9, %p7861_p8 }
  0x19   :  { %7869 = shalt.err (!%p7866_p10)
}
  0x1a   :  { %s7870_s22 = scalar_lea.vmem %s59_s27, 64  ;;  %p7875_p12 = scmp.lt.s32.totalorder %s59_s27, %s59_s27 }
  0x1b   :  { %p7871_p11 = scmp.ne.s32.totalorder %s59_s27, %s7870_s22  ;;  %p7876_p13 = scmp.lt.s32.totalorder %s7870_s22, %s7870_s22 }
  0x1d   :  { %p7877_p0 = por %p7876_p13, %p7875_p12 }
  0x1f   :  { %p7878_p1 = pnand %p7877_p0, %p7871_p11 }
  0x21   :  { %7881 = shalt.err (!%p7878_p1)
}
  0x22   :  { %61 = dma.hbm_to_vmem [thread:$0]  %s8196_s4, 64, %s59_s27, [#allocation8]  }
  0x23   :  { %s7980_s24 = smov [#allocation2]   ;;  %s7882_s29 = scalar_lea.hbm %s8193_s1, 75264 }
  0x24   :  { %s23_s25 = sshll.u32 %s7980_s24, 4  ;;  %p7883_p2 = scmp.ne.s32.totalorder %s8193_s1, %s7882_s29  ;;  %s24_s25 = int_to_ptr.vmem [resolvable:$true] %s23_s25 }
  0x25   :  { %p7886_p3 = scmp.lt.u32.totalorder %s7882_s29, %s8193_s1 }
  0x27   :  { %p7888_p4 = pnand %p7886_p3, %p7883_p2 }
  0x29   :  { %7891 = shalt.err (!%p7888_p4)
}
  0x2a   :  { %s7892_s11 = scalar_lea.vmem %s24_s25, 75264  ;;  %p7897_p6 = scmp.lt.s32.totalorder %s24_s25, %s24_s25 }
  0x2b   :  { %p7893_p5 = scmp.ne.s32.totalorder %s24_s25, %s7892_s11  ;;  %p7898_p7 = scmp.lt.s32.totalorder %s7892_s11, %s7892_s11 }
  0x2d   :  { %p7899_p8 = por %p7898_p7, %p7897_p6 }
  0x2f   :  { %p7900_p9 = pnand %p7899_p8, %p7893_p5 }
  0x31   :  { %7903 = shalt.err (!%p7900_p9)
}
  0x32   :  { %s7981_s4 = smov 256   ;;  %s7982_s27 = smov 16  }
  0x33   :  { %29 = dma.hbm_to_vmem [thread:$0]  %s8193_s1, 75264, %s24_s25, [#allocation3], %s7981_s4, %s7981_s4, %s7982_s27  }
  0x34   :  { %s7983_s14 = smov [#allocation6]   ;;  %s7984_s16 = smov [#allocation9]  }
  0x35   :  { %s45_s15 = sshll.u32 %s7983_s14, 4  ;;  %s67_s17 = sshll.u32 %s7984_s16, 4  ;;  %s46_s15 = int_to_ptr.vmem [resolvable:$true] %s45_s15  ;;  %s68_s17 = int_to_ptr.vmem [resolvable:$true] %s67_s17 }
  0x36   :  { %s7904_s20 = scalar_lea.hbm %s8195_s3, 16384 }
  0x37   :  { %p7905_p10 = scmp.ne.s32.totalorder %s8195_s3, %s7904_s20  ;;  %p7908_p11 = scmp.lt.u32.totalorder %s7904_s20, %s8195_s3 }
  0x39   :  { %p7910_p12 = pnand %p7908_p11, %p7905_p10 }
  0x3b   :  { %7913 = shalt.err (!%p7910_p12)
}
  0x3c   :  { %s7914_s1 = scalar_lea.vmem %s46_s15, 16384  ;;  %p7919_p0 = scmp.lt.s32.totalorder %s46_s15, %s46_s15 }
  0x3d   :  { %p7915_p13 = scmp.ne.s32.totalorder %s46_s15, %s7914_s1  ;;  %p7920_p1 = scmp.lt.s32.totalorder %s7914_s1, %s7914_s1 }
  0x3f   :  { %p7921_p2 = por %p7920_p1, %p7919_p0 }
  0x41   :  { %p7922_p3 = pnand %p7921_p2, %p7915_p13 }
  0x43   :  { %7925 = shalt.err (!%p7922_p3)
}
  0x44   :  { %51 = dma.hbm_to_vmem [thread:$0]  %s8195_s3, 16384, %s46_s15, [#allocation5], %s7981_s4, %s7981_s4, %s7982_s27  }
  0x45   :  { %s7926_s29 = scalar_lea.hbm %s8197_s5, 4096 }
  0x46   :  { %p7927_p4 = scmp.ne.s32.totalorder %s8197_s5, %s7926_s29  ;;  %p7930_p5 = scmp.lt.u32.totalorder %s7926_s29, %s8197_s5 }
  0x48   :  { %p7932_p6 = pnand %p7930_p5, %p7927_p4 }
  0x4a   :  { %7935 = shalt.err (!%p7932_p6)
}
  0x4b   :  { %s7936_s11 = scalar_lea.vmem %s68_s17, 4096  ;;  %p7941_p8 = scmp.lt.s32.totalorder %s68_s17, %s68_s17 }
  0x4c   :  { %p7937_p7 = scmp.ne.s32.totalorder %s68_s17, %s7936_s11  ;;  %p7942_p9 = scmp.lt.s32.totalorder %s7936_s11, %s7936_s11 }
  0x4e   :  { %p7943_p10 = por %p7942_p9, %p7941_p8 }
  0x50   :  { %p7944_p11 = pnand %p7943_p10, %p7937_p7 }
  0x52   :  { %7947 = shalt.err (!%p7944_p11)
}
  0x53   :  { %s7985_s3 = smov 64   ;;  %s7986_s4 = smov 4  }
  0x54   :  { %73 = dma.hbm_to_vmem [thread:$0]  %s8197_s5, 4096, %s68_s17, [#allocation8], %s7985_s3, %s7985_s3, %s7986_s4  }
  0x55   :  { %s7987_s13 = smov [#allocation10]   ;;  %s7948_s18 = scalar_lea.hbm %s8198_s6, 16 }
  0x56   :  { %s80_s14 = sshll.u32 %s7987_s13, 4  ;;  %p7949_p12 = scmp.ne.s32.totalorder %s8198_s6, %s7948_s18  ;;  %s81_s14 = int_to_ptr.vmem [resolvable:$true] %s80_s14 }
  0x57   :  { %p7952_p13 = scmp.lt.u32.totalorder %s7948_s18, %s8198_s6 }
  0x59   :  { %p7954_p0 = pnand %p7952_p13, %p7949_p12 }
  0x5b   :  { %7957 = shalt.err (!%p7954_p0)
}
  0x5c   :  { %s7958_s2 = scalar_lea.vmem %s81_s14, 16  ;;  %s7962_s5 = scalar_lea.vmem %s81_s14, 32 }
  0x5d   :  { %p7959_p1 = scmp.ne.s32.totalorder %s81_s14, %s7958_s2  ;;  %p7963_p2 = scmp.lt.s32.totalorder %s81_s14, %s81_s14 }
  0x5e   :  { %p7964_p3 = scmp.lt.s32.totalorder %s7962_s5, %s7958_s2 }
  0x60   :  { %p7965_p4 = por %p7964_p3, %p7963_p2 }
  0x62   :  { %p7966_p5 = pnand %p7965_p4, %p7959_p1 }
  0x64   :  { %7969 = shalt.err (!%p7966_p5)
}
  0x65   :  { %83 = dma.hbm_to_vmem [thread:$0]  %s8198_s6, 16, %s81_s14, [#allocation11]  }
  0x66   :  { %7970 = dma.done.wait [#allocation3], 75264  }
  0x67   :  { %7971 = vsyncadd [#allocation3], 4294892032 }
  0x68   :  { %7972 = dma.done.wait [#allocation5], 16448  }
  0x69   :  { %7973 = vsyncadd [#allocation5], 4294950848 }
  0x6a   :  { %7974 = dma.done.wait [#allocation8], 4160  }
  0x6b   :  { %7975 = vsyncadd [#allocation8], 4294963136 }
  0x6c   :  { %7976 = dma.done.wait [#allocation11], 16  }
  0x6d   :  { %7977 = vsyncadd [#allocation11], 4294967280  ;;  %v6732_v0 = vld [vmem:[#allocation2 + $0x4] ss:$16 sps:$4 sm:$0xff]   ;;  %v6734_v1 = vld [vmem:[#allocation2 + $0xc] ss:$16 sps:$4 sm:$0xff]  }
  0x6e   :  { %3695 = vmatprep.subr.bf16.mxu0 %v6732_v0  ;;  %v6736_v2 = vld [vmem:[#allocation2] ss:$16 sps:$4 sm:$0xff]   ;;  %v6737_v3 = vld [vmem:[#allocation2 + $0x8] ss:$16 sps:$4 sm:$0xff]   ;;  %4105 = vmatprep.subr.bf16.mxu1 %v6734_v1  ;;  %v6738_v4 = vld [vmem:[#allocation2 + $0x24] ss:$16 sps:$4 sm:$0xff]  }
  0x6f   :  { %3696 = vmatpush1.bf16.msra.mxu0 %v6736_v2  ;;  %4106 = vmatpush1.bf16.msra.mxu1 %v6737_v3  ;;  %v6740_v5 = vld [vmem:[#allocation2 + $0x2c] ss:$16 sps:$4 sm:$0xff]   ;;  %v6742_v6 = vld [vmem:[#allocation2 + $0x20] ss:$16 sps:$4 sm:$0xff]   ;;  %v6743_v7 = vld [vmem:[#allocation2 + $0x28] ss:$16 sps:$4 sm:$0xff]  }
  0x70   :  { %3697 = vmatprep.subr.bf16.mxu0 %v6738_v4  ;;  %4107 = vmatprep.subr.bf16.mxu1 %v6740_v5  ;;  %v6744_v8 = vld [vmem:[#allocation2 + $0x44] ss:$16 sps:$4 sm:$0xff]   ;;  %v6746_v9 = vld [vmem:[#allocation2 + $0x4c] ss:$16 sps:$4 sm:$0xff]   ;;  %v6748_v10 = vld [vmem:[#allocation2 + $0x40] ss:$16 sps:$4 sm:$0xff]  }
  0x71   :  { %v6749_v11 = vld [vmem:[#allocation2 + $0x48] ss:$16 sps:$4 sm:$0xff]   ;;  %v6750_v12 = vld [vmem:[#allocation2 + $0x64] ss:$16 sps:$4 sm:$0xff]   ;;  %v6752_v13 = vld [vmem:[#allocation2 + $0x6c] ss:$16 sps:$4 sm:$0xff]  }
  0x72   :  { %v6754_v14 = vld [vmem:[#allocation2 + $0x60] ss:$16 sps:$4 sm:$0xff]   ;;  %v6755_v15 = vld [vmem:[#allocation2 + $0x68] ss:$16 sps:$4 sm:$0xff]   ;;  %v6756_v16 = vld [vmem:[#allocation2 + $0x84] ss:$16 sps:$4 sm:$0xff]  }
  0x73   :  { %3698 = vmatpush1.bf16.msra.mxu0 %v6742_v6  ;;  %4108 = vmatpush1.bf16.msra.mxu1 %v6743_v7  ;;  %v6758_v17 = vld [vmem:[#allocation2 + $0x8c] ss:$16 sps:$4 sm:$0xff]   ;;  %v6760_v18 = vld [vmem:[#allocation2 + $0x80] ss:$16 sps:$4 sm:$0xff]   ;;  %v6761_v19 = vld [vmem:[#allocation2 + $0x88] ss:$16 sps:$4 sm:$0xff]  }
  0x74   :  { %3699 = vmatprep.subr.bf16.mxu0 %v6744_v8  ;;  %4109 = vmatprep.subr.bf16.mxu1 %v6746_v9  ;;  %v6762_v20 = vld [vmem:[#allocation2 + $0xa4] ss:$16 sps:$4 sm:$0xff]   ;;  %v6764_v21 = vld [vmem:[#allocation2 + $0xac] ss:$16 sps:$4 sm:$0xff]   ;;  %v6766_v22 = vld [vmem:[#allocation2 + $0xa0] ss:$16 sps:$4 sm:$0xff]  }
  0x75   :  { %v6767_v23 = vld [vmem:[#allocation2 + $0xa8] ss:$16 sps:$4 sm:$0xff]   ;;  %v6768_v24 = vld [vmem:[#allocation2 + $0xc4] ss:$16 sps:$4 sm:$0xff]   ;;  %v6770_v25 = vld [vmem:[#allocation2 + $0xcc] ss:$16 sps:$4 sm:$0xff]  }
  0x76   :  { %v6772_v26 = vld [vmem:[#allocation2 + $0xc0] ss:$16 sps:$4 sm:$0xff]   ;;  %v6773_v27 = vld [vmem:[#allocation2 + $0xc8] ss:$16 sps:$4 sm:$0xff]   ;;  %v6774_v28 = vld [vmem:[#allocation2 + $0xe4] ss:$16 sps:$4 sm:$0xff]  }
  0x77   :  { %3700 = vmatpush1.bf16.msra.mxu0 %v6748_v10  ;;  %4110 = vmatpush1.bf16.msra.mxu1 %v6749_v11  ;;  %v6776_v29 = vld [vmem:[#allocation2 + $0xec] ss:$16 sps:$4 sm:$0xff]   ;;  %v6778_v30 = vld [vmem:[#allocation2 + $0xe0] ss:$16 sps:$4 sm:$0xff]   ;;  %v6779_v31 = vld [vmem:[#allocation2 + $0xe8] ss:$16 sps:$4 sm:$0xff]  }
  0x78   :  { %3701 = vmatprep.subr.bf16.mxu0 %v6750_v12  ;;  %4111 = vmatprep.subr.bf16.mxu1 %v6752_v13  ;;  %v6780_v32 = vld [vmem:[#allocation2 + $0x104] ss:$16 sps:$4 sm:$0xff]   ;;  %v6782_v33 = vld [vmem:[#allocation2 + $0x10c] ss:$16 sps:$4 sm:$0xff]   ;;  %v6784_v34 = vld [vmem:[#allocation2 + $0x100] ss:$16 sps:$4 sm:$0xff]  }
  0x79   :  { %v6785_v35 = vld [vmem:[#allocation2 + $0x108] ss:$16 sps:$4 sm:$0xff]   ;;  %v6786_v36 = vld [vmem:[#allocation2 + $0x124] ss:$16 sps:$4 sm:$0xff]   ;;  %v6788_v37 = vld [vmem:[#allocation2 + $0x12c] ss:$16 sps:$4 sm:$0xff]  }
  0x7a   :  { %v6790_v38 = vld [vmem:[#allocation2 + $0x120] ss:$16 sps:$4 sm:$0xff]   ;;  %v6791_v39 = vld [vmem:[#allocation2 + $0x128] ss:$16 sps:$4 sm:$0xff]   ;;  %v6792_v40 = vld [vmem:[#allocation2 + $0x144] ss:$16 sps:$4 sm:$0xff]  }
  0x7b   :  { %3702 = vmatpush1.bf16.msra.mxu0 %v6754_v14  ;;  %4112 = vmatpush1.bf16.msra.mxu1 %v6755_v15  ;;  %v6794_v41 = vld [vmem:[#allocation2 + $0x14c] ss:$16 sps:$4 sm:$0xff]   ;;  %v6796_v42 = vld [vmem:[#allocation2 + $0x140] ss:$16 sps:$4 sm:$0xff]   ;;  %v6797_v43 = vld [vmem:[#allocation2 + $0x148] ss:$16 sps:$4 sm:$0xff]  }
  0x7c   :  { %3703 = vmatprep.subr.bf16.mxu0 %v6756_v16  ;;  %4113 = vmatprep.subr.bf16.mxu1 %v6758_v17  ;;  %v6798_v44 = vld [vmem:[#allocation2 + $0x164] ss:$16 sps:$4 sm:$0xff]   ;;  %v6800_v45 = vld [vmem:[#allocation2 + $0x16c] ss:$16 sps:$4 sm:$0xff]   ;;  %v6802_v47 = vld [vmem:[#allocation2 + $0x160] ss:$16 sps:$4 sm:$0xff]  }
  0x7d   :  { %v104_v46 = vld [vmem:[%s8192_s0 + $0x8] sm:$0xff]  ;;  %v6804_v50 = vld [vmem:[#allocation2 + $0x184] ss:$16 sps:$4 sm:$0xff]   ;;  %v6808_v52 = vld [vmem:[#allocation2 + $0x180] ss:$16 sps:$4 sm:$0xff]   ;;  %vm3691_vm0 = vcmask 392192  }
  0x7e   :  { %v123_v48 = vpack.c.bf16 %v104_v46, %v104_v46  ;;  %v6803_v49 = vld [vmem:[#allocation2 + $0x168] ss:$16 sps:$4 sm:$0xff]   ;;  %v6806_v51 = vld [vmem:[#allocation2 + $0x18c] ss:$16 sps:$4 sm:$0xff]   ;;  %v6810_v54 = vld [vmem:[#allocation2 + $0x1a4] ss:$16 sps:$4 sm:$0xff]  }
  0x7f   :  { %3704 = vmatpush1.bf16.msra.mxu0 %v6760_v18  ;;  %4114 = vmatpush1.bf16.msra.mxu1 %v6761_v19  ;;  %v6809_v53 = vld [vmem:[#allocation2 + $0x188] ss:$16 sps:$4 sm:$0xff]   ;;  %v6812_v55 = vld [vmem:[#allocation2 + $0x1ac] ss:$16 sps:$4 sm:$0xff]   ;;  %v6814_v56 = vld [vmem:[#allocation2 + $0x1a0] ss:$16 sps:$4 sm:$0xff]  }
  0x80   :  { %3705 = vmatprep.subr.bf16.mxu0 %v6762_v20  ;;  %4115 = vmatprep.subr.bf16.mxu1 %v6764_v21  ;;  %v6815_v57 = vld [vmem:[#allocation2 + $0x1a8] ss:$16 sps:$4 sm:$0xff]   ;;  %v6816_v58 = vld [vmem:[#allocation2 + $0x1c4] ss:$16 sps:$4 sm:$0xff]   ;;  %v6818_v59 = vld [vmem:[#allocation2 + $0x1cc] ss:$16 sps:$4 sm:$0xff]  }
  0x81   :  { %3727 = vmatprep.mubr.bf16.mxu0 %v123_v48  ;;  %4137 = vmatprep.mubr.bf16.mxu1 %v123_v48  ;;  %v6820_v60 = vld [vmem:[#allocation2 + $0x1c0] ss:$16 sps:$4 sm:$0xff]   ;;  %v6821_v61 = vld [vmem:[#allocation2 + $0x1c8] ss:$16 sps:$4 sm:$0xff]   ;;  %v6822_v62 = vld [vmem:[#allocation2 + $0x1e4] ss:$16 sps:$4 sm:$0xff]  }
  0x82   :  { %v6824_v63 = vld [vmem:[#allocation2 + $0x1ec] ss:$16 sps:$4 sm:$0xff]   ;;  %v6826_v0 = vld [vmem:[#allocation2 + $0x1e0] ss:$16 sps:$4 sm:$0xff]   ;;  %v6827_v1 = vld [vmem:[#allocation2 + $0x1e8] ss:$16 sps:$4 sm:$0xff]  }
  0x83   :  { %3706 = vmatpush1.bf16.msra.mxu0 %v6766_v22  ;;  %4116 = vmatpush1.bf16.msra.mxu1 %v6767_v23  ;;  %v103_v2 = vld [vmem:[%s8192_s0] sm:$0xff]  ;;  %v6833_v4 = vld [vmem:[#allocation2 + $0x20c] ss:$16 sps:$4 sm:$0xff]   ;;  %v6831_v7 = vld [vmem:[#allocation2 + $0x208] ss:$16 sps:$4 sm:$0xff]  }
  0x84   :  { %3707 = vmatprep.subr.bf16.mxu0 %v6768_v24  ;;  %4117 = vmatprep.subr.bf16.mxu1 %v6770_v25  ;;  %v6830_v3 = vld [vmem:[#allocation2 + $0x204] ss:$16 sps:$4 sm:$0xff]   ;;  %v122_v5 = vpack.c.bf16 %v103_v2, %v103_v2  ;;  %v6828_v6 = vld [vmem:[#allocation2 + $0x200] ss:$16 sps:$4 sm:$0xff]   ;;  %v6839_v9 = vld [vmem:[#allocation2 + $0x22c] ss:$16 sps:$4 sm:$0xff]  }
  0x85   :  { %v6836_v8 = vld [vmem:[#allocation2 + $0x224] ss:$16 sps:$4 sm:$0xff]   ;;  %v6834_v10 = vld [vmem:[#allocation2 + $0x220] ss:$16 sps:$4 sm:$0xff]   ;;  %v6837_v11 = vld [vmem:[#allocation2 + $0x228] ss:$16 sps:$4 sm:$0xff]  }
  0x86   :  { %v6842_v12 = vld [vmem:[#allocation2 + $0x244] ss:$16 sps:$4 sm:$0xff]   ;;  %v6845_v13 = vld [vmem:[#allocation2 + $0x24c] ss:$16 sps:$4 sm:$0xff]   ;;  %v6840_v14 = vld [vmem:[#allocation2 + $0x240] ss:$16 sps:$4 sm:$0xff]  }
  0x87   :  { %3708 = vmatpush1.bf16.msra.mxu0 %v6772_v26  ;;  %4118 = vmatpush1.bf16.msra.mxu1 %v6773_v27  ;;  %v6843_v15 = vld [vmem:[#allocation2 + $0x248] ss:$16 sps:$4 sm:$0xff]   ;;  %v6848_v16 = vld [vmem:[#allocation2 + $0x264] ss:$16 sps:$4 sm:$0xff]   ;;  %v6851_v17 = vld [vmem:[#allocation2 + $0x26c] ss:$16 sps:$4 sm:$0xff]  }
  0x88   :  { %3709 = vmatprep.subr.bf16.mxu0 %v6774_v28  ;;  %4119 = vmatprep.subr.bf16.mxu1 %v6776_v29  ;;  %v6846_v18 = vld [vmem:[#allocation2 + $0x260] ss:$16 sps:$4 sm:$0xff]   ;;  %v6849_v19 = vld [vmem:[#allocation2 + $0x268] ss:$16 sps:$4 sm:$0xff]   ;;  %v6854_v20 = vld [vmem:[#allocation2 + $0x284] ss:$16 sps:$4 sm:$0xff]  }
  0x89   :  { %v6857_v21 = vld [vmem:[#allocation2 + $0x28c] ss:$16 sps:$4 sm:$0xff]   ;;  %v6852_v22 = vld [vmem:[#allocation2 + $0x280] ss:$16 sps:$4 sm:$0xff]   ;;  %v6855_v23 = vld [vmem:[#allocation2 + $0x288] ss:$16 sps:$4 sm:$0xff]  }
  0x8a   :  { %v6860_v24 = vld [vmem:[#allocation2 + $0x2a4] ss:$16 sps:$4 sm:$0xff]   ;;  %v6863_v25 = vld [vmem:[#allocation2 + $0x2ac] ss:$16 sps:$4 sm:$0xff]   ;;  %v6858_v26 = vld [vmem:[#allocation2 + $0x2a0] ss:$16 sps:$4 sm:$0xff]  }
  0x8b   :  { %3710 = vmatpush1.bf16.msra.mxu0 %v6778_v30  ;;  %4120 = vmatpush1.bf16.msra.mxu1 %v6779_v31  ;;  %v6861_v27 = vld [vmem:[#allocation2 + $0x2a8] ss:$16 sps:$4 sm:$0xff]   ;;  %v6866_v28 = vld [vmem:[#allocation2 + $0x2c4] ss:$16 sps:$4 sm:$0xff]   ;;  %v6869_v29 = vld [vmem:[#allocation2 + $0x2cc] ss:$16 sps:$4 sm:$0xff]  }
  0x8c   :  { %3711 = vmatprep.subr.bf16.mxu0 %v6780_v32  ;;  %4121 = vmatprep.subr.bf16.mxu1 %v6782_v33  ;;  %v106_v30 = vld [vmem:[%s8192_s0 + $0x18] sm:$0xff]  ;;  %v6864_v31 = vld [vmem:[#allocation2 + $0x2c0] ss:$16 sps:$4 sm:$0xff]   ;;  %v6890_v46 = vld [vmem:[#allocation2 + $0x344] ss:$16 sps:$4 sm:$0xff]  }
  0x8d   :  { %v125_v32 = vpack.c.bf16 %v106_v30, %v106_v30  ;;  %v6867_v33 = vld [vmem:[#allocation2 + $0x2c8] ss:$16 sps:$4 sm:$0xff]   ;;  %v6888_v48 = vld [vmem:[#allocation2 + $0x340] ss:$16 sps:$4 sm:$0xff]   ;;  %v6920_v2 = vld [vmem:[#allocation2 + $0x3e4] ss:$16 sps:$4 sm:$0xff]  }
  0x8e   :  { %v6956_v30 = vld [vmem:[#allocation2 + $0x4a4] ss:$16 sps:$4 sm:$0xff]  }
  0x8f   :  { %3712 = vmatpush1.bf16.msra.mxu0 %v6784_v34  ;;  %4122 = vmatpush1.bf16.msra.mxu1 %v6785_v35  ;;  %v6872_v34 = vld [vmem:[#allocation2 + $0x2e4] ss:$16 sps:$4 sm:$0xff]   ;;  %v6875_v35 = vld [vmem:[#allocation2 + $0x2ec] ss:$16 sps:$4 sm:$0xff]  }
  0x90   :  { %3713 = vmatprep.subr.bf16.mxu0 %v6786_v36  ;;  %4123 = vmatprep.subr.bf16.mxu1 %v6788_v37  ;;  %v6870_v36 = vld [vmem:[#allocation2 + $0x2e0] ss:$16 sps:$4 sm:$0xff]   ;;  %v6873_v37 = vld [vmem:[#allocation2 + $0x2e8] ss:$16 sps:$4 sm:$0xff]  }
  0x93   :  { %3714 = vmatpush1.bf16.msra.mxu0 %v6790_v38  ;;  %4124 = vmatpush1.bf16.msra.mxu1 %v6791_v39  ;;  %v6878_v38 = vld [vmem:[#allocation2 + $0x304] ss:$16 sps:$4 sm:$0xff]   ;;  %v6881_v39 = vld [vmem:[#allocation2 + $0x30c] ss:$16 sps:$4 sm:$0xff]  }
  0x94   :  { %3715 = vmatprep.subr.bf16.mxu0 %v6792_v40  ;;  %4125 = vmatprep.subr.bf16.mxu1 %v6794_v41  ;;  %v6876_v40 = vld [vmem:[#allocation2 + $0x300] ss:$16 sps:$4 sm:$0xff]   ;;  %v6879_v41 = vld [vmem:[#allocation2 + $0x308] ss:$16 sps:$4 sm:$0xff]  }
  0x97   :  { %3716 = vmatpush1.bf16.msra.mxu0 %v6796_v42  ;;  %4126 = vmatpush1.bf16.msra.mxu1 %v6797_v43  ;;  %v6884_v42 = vld [vmem:[#allocation2 + $0x324] ss:$16 sps:$4 sm:$0xff]   ;;  %v6887_v43 = vld [vmem:[#allocation2 + $0x32c] ss:$16 sps:$4 sm:$0xff]  }
  0x98   :  { %3717 = vmatprep.subr.bf16.mxu0 %v6798_v44  ;;  %4127 = vmatprep.subr.bf16.mxu1 %v6800_v45  ;;  %v6882_v44 = vld [vmem:[#allocation2 + $0x320] ss:$16 sps:$4 sm:$0xff]   ;;  %v6885_v45 = vld [vmem:[#allocation2 + $0x328] ss:$16 sps:$4 sm:$0xff]  }
  0x9b   :  { %3718 = vmatpush1.bf16.msra.mxu0 %v6802_v47  ;;  %4128 = vmatpush1.bf16.msra.mxu1 %v6803_v49  ;;  %v6893_v47 = vld [vmem:[#allocation2 + $0x34c] ss:$16 sps:$4 sm:$0xff]   ;;  %v6891_v49 = vld [vmem:[#allocation2 + $0x348] ss:$16 sps:$4 sm:$0xff]  }
  0x9c   :  { %3719 = vmatprep.subr.bf16.mxu0 %v6804_v50  ;;  %4129 = vmatprep.subr.bf16.mxu1 %v6806_v51  ;;  %v6896_v50 = vld [vmem:[#allocation2 + $0x364] ss:$16 sps:$4 sm:$0xff]   ;;  %v6899_v51 = vld [vmem:[#allocation2 + $0x36c] ss:$16 sps:$4 sm:$0xff]  }
  0x9f   :  { %3720 = vmatpush1.bf16.msra.mxu0 %v6808_v52  ;;  %4130 = vmatpush1.bf16.msra.mxu1 %v6809_v53  ;;  %v6894_v52 = vld [vmem:[#allocation2 + $0x360] ss:$16 sps:$4 sm:$0xff]   ;;  %v6897_v53 = vld [vmem:[#allocation2 + $0x368] ss:$16 sps:$4 sm:$0xff]  }
  0xa0   :  { %3721 = vmatprep.subr.bf16.mxu0 %v6810_v54  ;;  %4131 = vmatprep.subr.bf16.mxu1 %v6812_v55  ;;  %v6902_v54 = vld [vmem:[#allocation2 + $0x384] ss:$16 sps:$4 sm:$0xff]   ;;  %v6905_v55 = vld [vmem:[#allocation2 + $0x38c] ss:$16 sps:$4 sm:$0xff]  }
  0xa3   :  { %3722 = vmatpush1.bf16.msra.mxu0 %v6814_v56  ;;  %4132 = vmatpush1.bf16.msra.mxu1 %v6815_v57  ;;  %v6900_v56 = vld [vmem:[#allocation2 + $0x380] ss:$16 sps:$4 sm:$0xff]   ;;  %v6903_v57 = vld [vmem:[#allocation2 + $0x388] ss:$16 sps:$4 sm:$0xff]  }
  0xa4   :  { %3723 = vmatprep.subr.bf16.mxu0 %v6816_v58  ;;  %4133 = vmatprep.subr.bf16.mxu1 %v6818_v59  ;;  %v6908_v58 = vld [vmem:[#allocation2 + $0x3a4] ss:$16 sps:$4 sm:$0xff]   ;;  %v6911_v59 = vld [vmem:[#allocation2 + $0x3ac] ss:$16 sps:$4 sm:$0xff]  }
  0xa7   :  { %3724 = vmatpush1.bf16.msra.mxu0 %v6820_v60  ;;  %4134 = vmatpush1.bf16.msra.mxu1 %v6821_v61  ;;  %v6906_v60 = vld [vmem:[#allocation2 + $0x3a0] ss:$16 sps:$4 sm:$0xff]   ;;  %v6909_v61 = vld [vmem:[#allocation2 + $0x3a8] ss:$16 sps:$4 sm:$0xff]  }
  0xa8   :  { %3725 = vmatprep.subr.bf16.mxu0 %v6822_v62  ;;  %4135 = vmatprep.subr.bf16.mxu1 %v6824_v63  ;;  %v6914_v62 = vld [vmem:[#allocation2 + $0x3c4] ss:$16 sps:$4 sm:$0xff]   ;;  %v6917_v63 = vld [vmem:[#allocation2 + $0x3cc] ss:$16 sps:$4 sm:$0xff]  }
  0xab   :  { %3726 = vmatpush1.bf16.msra.mxu0 %v6826_v0  ;;  %4136 = vmatpush1.bf16.msra.mxu1 %v6827_v1  ;;  %v6912_v0 = vld [vmem:[#allocation2 + $0x3c0] ss:$16 sps:$4 sm:$0xff]   ;;  %v6915_v1 = vld [vmem:[#allocation2 + $0x3c8] ss:$16 sps:$4 sm:$0xff]  }
  0xac   :  { %3736 = vmatprep.subr.bf16.mxu0 %v6830_v3  ;;  %4146 = vmatprep.subr.bf16.mxu1 %v6833_v4  ;;  %v6923_v3 = vld [vmem:[#allocation2 + $0x3ec] ss:$16 sps:$4 sm:$0xff]   ;;  %v6918_v4 = vld [vmem:[#allocation2 + $0x3e0] ss:$16 sps:$4 sm:$0xff]  }
  0xae   :  { %3728 = vmatmul.mubr.bf16.vlgmr.msra.gmra.mrb[0].mxu0 %v122_v5  ;;  %4138 = vmatmul.mubr.bf16.vlgmr.msra.gmra.mrb[0].mxu1 %v122_v5  ;;  %v6921_v5 = vld [vmem:[#allocation2 + $0x3e8] ss:$16 sps:$4 sm:$0xff]  }
  0xaf   :  { %3737 = vmatpush1.bf16.msra.mxu0 %v6828_v6  ;;  %4147 = vmatpush1.bf16.msra.mxu1 %v6831_v7  ;;  %v6926_v6 = vld [vmem:[#allocation2 + $0x404] ss:$16 sps:$4 sm:$0xff]  }
  0xb0   :  { %3738 = vmatprep.subr.bf16.mxu0 %v6836_v8  ;;  %4148 = vmatprep.subr.bf16.mxu1 %v6839_v9  ;;  %v105_v7 = vld [vmem:[%s8192_s0 + $0x10] sm:$0xff]  ;;  %v6929_v8 = vld [vmem:[#allocation2 + $0x40c] ss:$16 sps:$4 sm:$0xff]  }
  0xb1   :  { %3768 = vmatprep.mubr.bf16.mxu0 %v125_v32  ;;  %4178 = vmatprep.mubr.bf16.mxu1 %v125_v32  ;;  %v6924_v9 = vld [vmem:[#allocation2 + $0x400] ss:$16 sps:$4 sm:$0xff]  }
  0xb2   :  { %v6954_v32 = vld [vmem:[#allocation2 + $0x4a0] ss:$16 sps:$4 sm:$0xff]  }
  0xb3   :  { %3739 = vmatpush1.bf16.msra.mxu0 %v6834_v10  ;;  %4149 = vmatpush1.bf16.msra.mxu1 %v6837_v11  ;;  %v6927_v10 = vld [vmem:[#allocation2 + $0x408] ss:$16 sps:$4 sm:$0xff]   ;;  %v124_v11 = vpack.c.bf16 %v105_v7, %v105_v7  ;;  %v7019_v7 = vld [vmem:[#allocation2 + $0x5ec] ss:$16 sps:$4 sm:$0xff]  }
  0xb4   :  { %3740 = vmatprep.subr.bf16.mxu0 %v6842_v12  ;;  %4150 = vmatprep.subr.bf16.mxu1 %v6845_v13  ;;  %v6932_v12 = vld [vmem:[#allocation2 + $0x424] ss:$16 sps:$4 sm:$0xff]   ;;  %v6935_v13 = vld [vmem:[#allocation2 + $0x42c] ss:$16 sps:$4 sm:$0xff]  }
  0xb7   :  { %3741 = vmatpush1.bf16.msra.mxu0 %v6840_v14  ;;  %4151 = vmatpush1.bf16.msra.mxu1 %v6843_v15  ;;  %v108_v14 = vld [vmem:[%s8192_s0 + $0x28] sm:$0xff] }
  0xb8   :  { %3742 = vmatprep.subr.bf16.mxu0 %v6848_v16  ;;  %4152 = vmatprep.subr.bf16.mxu1 %v6851_v17  ;;  %v127_v15 = vpack.c.bf16 %v108_v14, %v108_v14  ;;  %v6930_v16 = vld [vmem:[#allocation2 + $0x420] ss:$16 sps:$4 sm:$0xff]   ;;  %v6933_v17 = vld [vmem:[#allocation2 + $0x428] ss:$16 sps:$4 sm:$0xff]  }
  0xb9   :  { %v7023_v14 = vld [vmem:[#allocation2 + $0x608] ss:$16 sps:$4 sm:$0xff]  }
  0xbb   :  { %3743 = vmatpush1.bf16.msra.mxu0 %v6846_v18  ;;  %4153 = vmatpush1.bf16.msra.mxu1 %v6849_v19  ;;  %v6938_v18 = vld [vmem:[#allocation2 + $0x444] ss:$16 sps:$4 sm:$0xff]   ;;  %v6941_v19 = vld [vmem:[#allocation2 + $0x44c] ss:$16 sps:$4 sm:$0xff]  }
  0xbc   :  { %3744 = vmatprep.subr.bf16.mxu0 %v6854_v20  ;;  %4154 = vmatprep.subr.bf16.mxu1 %v6857_v21  ;;  %v6936_v20 = vld [vmem:[#allocation2 + $0x440] ss:$16 sps:$4 sm:$0xff]   ;;  %v6939_v21 = vld [vmem:[#allocation2 + $0x448] ss:$16 sps:$4 sm:$0xff]  }
  0xbf   :  { %3745 = vmatpush1.bf16.msra.mxu0 %v6852_v22  ;;  %4155 = vmatpush1.bf16.msra.mxu1 %v6855_v23  ;;  %v6944_v22 = vld [vmem:[#allocation2 + $0x464] ss:$16 sps:$4 sm:$0xff]   ;;  %v6947_v23 = vld [vmem:[#allocation2 + $0x46c] ss:$16 sps:$4 sm:$0xff]  }
  0xc0   :  { %3746 = vmatprep.subr.bf16.mxu0 %v6860_v24  ;;  %4156 = vmatprep.subr.bf16.mxu1 %v6863_v25  ;;  %v6942_v24 = vld [vmem:[#allocation2 + $0x460] ss:$16 sps:$4 sm:$0xff]   ;;  %v6945_v25 = vld [vmem:[#allocation2 + $0x468] ss:$16 sps:$4 sm:$0xff]  }
  0xc3   :  { %3747 = vmatpush1.bf16.msra.mxu0 %v6858_v26  ;;  %4157 = vmatpush1.bf16.msra.mxu1 %v6861_v27  ;;  %v6950_v26 = vld [vmem:[#allocation2 + $0x484] ss:$16 sps:$4 sm:$0xff]   ;;  %v6953_v27 = vld [vmem:[#allocation2 + $0x48c] ss:$16 sps:$4 sm:$0xff]  }
  0xc4   :  { %3748 = vmatprep.subr.bf16.mxu0 %v6866_v28  ;;  %4158 = vmatprep.subr.bf16.mxu1 %v6869_v29  ;;  %v6948_v28 = vld [vmem:[#allocation2 + $0x480] ss:$16 sps:$4 sm:$0xff]   ;;  %v6951_v29 = vld [vmem:[#allocation2 + $0x488] ss:$16 sps:$4 sm:$0xff]  }
  0xc7   :  { %3749 = vmatpush1.bf16.msra.mxu0 %v6864_v31  ;;  %4159 = vmatpush1.bf16.msra.mxu1 %v6867_v33  ;;  %v6959_v31 = vld [vmem:[#allocation2 + $0x4ac] ss:$16 sps:$4 sm:$0xff]   ;;  %v6957_v33 = vld [vmem:[#allocation2 + $0x4a8] ss:$16 sps:$4 sm:$0xff]  }
  0xc8   :  { %3750 = vmatprep.subr.bf16.mxu0 %v6872_v34  ;;  %4160 = vmatprep.subr.bf16.mxu1 %v6875_v35  ;;  %v6962_v34 = vld [vmem:[#allocation2 + $0x4c4] ss:$16 sps:$4 sm:$0xff]   ;;  %v6965_v35 = vld [vmem:[#allocation2 + $0x4cc] ss:$16 sps:$4 sm:$0xff]  }
  0xcb   :  { %3751 = vmatpush1.bf16.msra.mxu0 %v6870_v36  ;;  %4161 = vmatpush1.bf16.msra.mxu1 %v6873_v37  ;;  %v6960_v36 = vld [vmem:[#allocation2 + $0x4c0] ss:$16 sps:$4 sm:$0xff]   ;;  %v6963_v37 = vld [vmem:[#allocation2 + $0x4c8] ss:$16 sps:$4 sm:$0xff]  }
  0xcc   :  { %3752 = vmatprep.subr.bf16.mxu0 %v6878_v38  ;;  %4162 = vmatprep.subr.bf16.mxu1 %v6881_v39  ;;  %v6968_v38 = vld [vmem:[#allocation2 + $0x4e4] ss:$16 sps:$4 sm:$0xff]   ;;  %v6971_v39 = vld [vmem:[#allocation2 + $0x4ec] ss:$16 sps:$4 sm:$0xff]  }
  0xcf   :  { %3753 = vmatpush1.bf16.msra.mxu0 %v6876_v40  ;;  %4163 = vmatpush1.bf16.msra.mxu1 %v6879_v41  ;;  %v6966_v40 = vld [vmem:[#allocation2 + $0x4e0] ss:$16 sps:$4 sm:$0xff]   ;;  %v6969_v41 = vld [vmem:[#allocation2 + $0x4e8] ss:$16 sps:$4 sm:$0xff]  }
  0xd0   :  { %3754 = vmatprep.subr.bf16.mxu0 %v6884_v42  ;;  %4164 = vmatprep.subr.bf16.mxu1 %v6887_v43  ;;  %v6974_v42 = vld [vmem:[#allocation2 + $0x504] ss:$16 sps:$4 sm:$0xff]   ;;  %v6977_v43 = vld [vmem:[#allocation2 + $0x50c] ss:$16 sps:$4 sm:$0xff]  }
  0xd3   :  { %3755 = vmatpush1.bf16.msra.mxu0 %v6882_v44  ;;  %4165 = vmatpush1.bf16.msra.mxu1 %v6885_v45  ;;  %v6972_v44 = vld [vmem:[#allocation2 + $0x500] ss:$16 sps:$4 sm:$0xff]   ;;  %v6975_v45 = vld [vmem:[#allocation2 + $0x508] ss:$16 sps:$4 sm:$0xff]  }
  0xd4   :  { %3756 = vmatprep.subr.bf16.mxu0 %v6890_v46  ;;  %4166 = vmatprep.subr.bf16.mxu1 %v6893_v47  ;;  %v6980_v46 = vld [vmem:[#allocation2 + $0x524] ss:$16 sps:$4 sm:$0xff]   ;;  %v6983_v47 = vld [vmem:[#allocation2 + $0x52c] ss:$16 sps:$4 sm:$0xff]  }
  0xd7   :  { %3757 = vmatpush1.bf16.msra.mxu0 %v6888_v48  ;;  %4167 = vmatpush1.bf16.msra.mxu1 %v6891_v49  ;;  %v6978_v48 = vld [vmem:[#allocation2 + $0x520] ss:$16 sps:$4 sm:$0xff]   ;;  %v6981_v49 = vld [vmem:[#allocation2 + $0x528] ss:$16 sps:$4 sm:$0xff]  }
  0xd8   :  { %3758 = vmatprep.subr.bf16.mxu0 %v6896_v50  ;;  %4168 = vmatprep.subr.bf16.mxu1 %v6899_v51  ;;  %v6986_v50 = vld [vmem:[#allocation2 + $0x544] ss:$16 sps:$4 sm:$0xff]   ;;  %v6989_v51 = vld [vmem:[#allocation2 + $0x54c] ss:$16 sps:$4 sm:$0xff]  }
  0xdb   :  { %3759 = vmatpush1.bf16.msra.mxu0 %v6894_v52  ;;  %4169 = vmatpush1.bf16.msra.mxu1 %v6897_v53  ;;  %v6984_v52 = vld [vmem:[#allocation2 + $0x540] ss:$16 sps:$4 sm:$0xff]   ;;  %v6987_v53 = vld [vmem:[#allocation2 + $0x548] ss:$16 sps:$4 sm:$0xff]  }
  0xdc   :  { %3760 = vmatprep.subr.bf16.mxu0 %v6902_v54  ;;  %4170 = vmatprep.subr.bf16.mxu1 %v6905_v55  ;;  %v6992_v54 = vld [vmem:[#allocation2 + $0x564] ss:$16 sps:$4 sm:$0xff]   ;;  %v6995_v55 = vld [vmem:[#allocation2 + $0x56c] ss:$16 sps:$4 sm:$0xff]  }
  0xdf   :  { %3761 = vmatpush1.bf16.msra.mxu0 %v6900_v56  ;;  %4171 = vmatpush1.bf16.msra.mxu1 %v6903_v57  ;;  %v6990_v56 = vld [vmem:[#allocation2 + $0x560] ss:$16 sps:$4 sm:$0xff]   ;;  %v6993_v57 = vld [vmem:[#allocation2 + $0x568] ss:$16 sps:$4 sm:$0xff]  }
  0xe0   :  { %3762 = vmatprep.subr.bf16.mxu0 %v6908_v58  ;;  %4172 = vmatprep.subr.bf16.mxu1 %v6911_v59  ;;  %v6998_v58 = vld [vmem:[#allocation2 + $0x584] ss:$16 sps:$4 sm:$0xff]   ;;  %v7001_v59 = vld [vmem:[#allocation2 + $0x58c] ss:$16 sps:$4 sm:$0xff]  }
  0xe3   :  { %3763 = vmatpush1.bf16.msra.mxu0 %v6906_v60  ;;  %4173 = vmatpush1.bf16.msra.mxu1 %v6909_v61  ;;  %v6996_v60 = vld [vmem:[#allocation2 + $0x580] ss:$16 sps:$4 sm:$0xff]   ;;  %v6999_v61 = vld [vmem:[#allocation2 + $0x588] ss:$16 sps:$4 sm:$0xff]  }
  0xe4   :  { %3764 = vmatprep.subr.bf16.mxu0 %v6914_v62  ;;  %4174 = vmatprep.subr.bf16.mxu1 %v6917_v63  ;;  %v7004_v62 = vld [vmem:[#allocation2 + $0x5a4] ss:$16 sps:$4 sm:$0xff]   ;;  %v7007_v63 = vld [vmem:[#allocation2 + $0x5ac] ss:$16 sps:$4 sm:$0xff]  }
  0xe7   :  { %3765 = vmatpush1.bf16.msra.mxu0 %v6912_v0  ;;  %4175 = vmatpush1.bf16.msra.mxu1 %v6915_v1  ;;  %v7002_v0 = vld [vmem:[#allocation2 + $0x5a0] ss:$16 sps:$4 sm:$0xff]   ;;  %v7005_v1 = vld [vmem:[#allocation2 + $0x5a8] ss:$16 sps:$4 sm:$0xff]  }
  0xe8   :  { %3766 = vmatprep.subr.bf16.mxu0 %v6920_v2  ;;  %4176 = vmatprep.subr.bf16.mxu1 %v6923_v3  ;;  %v7010_v2 = vld [vmem:[#allocation2 + $0x5c4] ss:$16 sps:$4 sm:$0xff]   ;;  %v7013_v3 = vld [vmem:[#allocation2 + $0x5cc] ss:$16 sps:$4 sm:$0xff]  }
  0xeb   :  { %3767 = vmatpush1.bf16.msra.mxu0 %v6918_v4  ;;  %4177 = vmatpush1.bf16.msra.mxu1 %v6921_v5  ;;  %v7008_v4 = vld [vmem:[#allocation2 + $0x5c0] ss:$16 sps:$4 sm:$0xff]   ;;  %v7011_v5 = vld [vmem:[#allocation2 + $0x5c8] ss:$16 sps:$4 sm:$0xff]  }
  0xec   :  { %3777 = vmatprep.subr.bf16.mxu0 %v6926_v6  ;;  %4187 = vmatprep.subr.bf16.mxu1 %v6929_v8  ;;  %v7016_v6 = vld [vmem:[#allocation2 + $0x5e4] ss:$16 sps:$4 sm:$0xff]   ;;  %v7014_v8 = vld [vmem:[#allocation2 + $0x5e0] ss:$16 sps:$4 sm:$0xff]  }
  0xee   :  { %3769 = vmatmul.mubr.bf16.vlgmr.msra.gmra.mrb[0].mxu0 %v124_v11  ;;  %4179 = vmatmul.mubr.bf16.vlgmr.msra.gmra.mrb[0].mxu1 %v124_v11  ;;  %v107_v11 = vld [vmem:[%s8192_s0 + $0x20] sm:$0xff] }
  0xef   :  { %3778 = vmatpush1.bf16.msra.mxu0 %v6924_v9  ;;  %4188 = vmatpush1.bf16.msra.mxu1 %v6927_v10  ;;  %v7017_v9 = vld [vmem:[#allocation2 + $0x5e8] ss:$16 sps:$4 sm:$0xff]   ;;  %v7022_v10 = vld [vmem:[#allocation2 + $0x604] ss:$16 sps:$4 sm:$0xff]  }
  0xf0   :  { %3779 = vmatprep.subr.bf16.mxu0 %v6932_v12  ;;  %4189 = vmatprep.subr.bf16.mxu1 %v6935_v13  ;;  %v7025_v12 = vld [vmem:[#allocation2 + $0x60c] ss:$16 sps:$4 sm:$0xff]   ;;  %v7020_v13 = vld [vmem:[#allocation2 + $0x600] ss:$16 sps:$4 sm:$0xff]  }
  0xf1   :  { %3809 = vmatprep.mubr.bf16.mxu0 %v127_v15  ;;  %4219 = vmatprep.mubr.bf16.mxu1 %v127_v15  ;;  %v126_v15 = vpack.c.bf16 %v107_v11, %v107_v11  ;;  %v7115_v11 = vld [vmem:[#allocation2 + $0x7ec] ss:$16 sps:$4 sm:$0xff]  }
  0xf3   :  { %3780 = vmatpush1.bf16.msra.mxu0 %v6930_v16  ;;  %4190 = vmatpush1.bf16.msra.mxu1 %v6933_v17  ;;  %v110_v16 = vld [vmem:[%s8192_s0 + $0x38] sm:$0xff]  ;;  %v7028_v17 = vld [vmem:[#allocation2 + $0x624] ss:$16 sps:$4 sm:$0xff]  }
  0xf4   :  { %3781 = vmatprep.subr.bf16.mxu0 %v6938_v18  ;;  %4191 = vmatprep.subr.bf16.mxu1 %v6941_v19  ;;  %v7031_v18 = vld [vmem:[#allocation2 + $0x62c] ss:$16 sps:$4 sm:$0xff]   ;;  %v129_v19 = vpack.c.bf16 %v110_v16, %v110_v16 }
  0xf5   :  { %v7121_v16 = vld [vmem:[#allocation2 + $0x80c] ss:$16 sps:$4 sm:$0xff]  }
  0xf7   :  { %3782 = vmatpush1.bf16.msra.mxu0 %v6936_v20  ;;  %4192 = vmatpush1.bf16.msra.mxu1 %v6939_v21  ;;  %v7026_v20 = vld [vmem:[#allocation2 + $0x620] ss:$16 sps:$4 sm:$0xff]   ;;  %v7029_v21 = vld [vmem:[#allocation2 + $0x628] ss:$16 sps:$4 sm:$0xff]  }
  0xf8   :  { %3783 = vmatprep.subr.bf16.mxu0 %v6944_v22  ;;  %4193 = vmatprep.subr.bf16.mxu1 %v6947_v23  ;;  %v7034_v22 = vld [vmem:[#allocation2 + $0x644] ss:$16 sps:$4 sm:$0xff]   ;;  %v7037_v23 = vld [vmem:[#allocation2 + $0x64c] ss:$16 sps:$4 sm:$0xff]  }
  0xfb   :  { %3784 = vmatpush1.bf16.msra.mxu0 %v6942_v24  ;;  %4194 = vmatpush1.bf16.msra.mxu1 %v6945_v25  ;;  %v7032_v24 = vld [vmem:[#allocation2 + $0x640] ss:$16 sps:$4 sm:$0xff]   ;;  %v7035_v25 = vld [vmem:[#allocation2 + $0x648] ss:$16 sps:$4 sm:$0xff]  }
  0xfc   :  { %3785 = vmatprep.subr.bf16.mxu0 %v6950_v26  ;;  %4195 = vmatprep.subr.bf16.mxu1 %v6953_v27  ;;  %v7040_v26 = vld [vmem:[#allocation2 + $0x664] ss:$16 sps:$4 sm:$0xff]   ;;  %v7043_v27 = vld [vmem:[#allocation2 + $0x66c] ss:$16 sps:$4 sm:$0xff]  }
  0xff   :  { %3786 = vmatpush1.bf16.msra.mxu0 %v6948_v28  ;;  %4196 = vmatpush1.bf16.msra.mxu1 %v6951_v29  ;;  %v7038_v28 = vld [vmem:[#allocation2 + $0x660] ss:$16 sps:$4 sm:$0xff]   ;;  %v7041_v29 = vld [vmem:[#allocation2 + $0x668] ss:$16 sps:$4 sm:$0xff]  }
 0x100   :  { %3787 = vmatprep.subr.bf16.mxu0 %v6956_v30  ;;  %4197 = vmatprep.subr.bf16.mxu1 %v6959_v31  ;;  %v7046_v30 = vld [vmem:[#allocation2 + $0x684] ss:$16 sps:$4 sm:$0xff]   ;;  %v7049_v31 = vld [vmem:[#allocation2 + $0x68c] ss:$16 sps:$4 sm:$0xff]  }
 0x103   :  { %3788 = vmatpush1.bf16.msra.mxu0 %v6954_v32  ;;  %4198 = vmatpush1.bf16.msra.mxu1 %v6957_v33  ;;  %v7044_v32 = vld [vmem:[#allocation2 + $0x680] ss:$16 sps:$4 sm:$0xff]   ;;  %v7047_v33 = vld [vmem:[#allocation2 + $0x688] ss:$16 sps:$4 sm:$0xff]  }
 0x104   :  { %3789 = vmatprep.subr.bf16.mxu0 %v6962_v34  ;;  %4199 = vmatprep.subr.bf16.mxu1 %v6965_v35  ;;  %v7052_v34 = vld [vmem:[#allocation2 + $0x6a4] ss:$16 sps:$4 sm:$0xff]   ;;  %v7055_v35 = vld [vmem:[#allocation2 + $0x6ac] ss:$16 sps:$4 sm:$0xff]  }
 0x107   :  { %3790 = vmatpush1.bf16.msra.mxu0 %v6960_v36  ;;  %4200 = vmatpush1.bf16.msra.mxu1 %v6963_v37  ;;  %v7050_v36 = vld [vmem:[#allocation2 + $0x6a0] ss:$16 sps:$4 sm:$0xff]   ;;  %v7053_v37 = vld [vmem:[#allocation2 + $0x6a8] ss:$16 sps:$4 sm:$0xff]  }
 0x108   :  { %3791 = vmatprep.subr.bf16.mxu0 %v6968_v38  ;;  %4201 = vmatprep.subr.bf16.mxu1 %v6971_v39  ;;  %v7058_v38 = vld [vmem:[#allocation2 + $0x6c4] ss:$16 sps:$4 sm:$0xff]   ;;  %v7061_v39 = vld [vmem:[#allocation2 + $0x6cc] ss:$16 sps:$4 sm:$0xff]  }
 0x10b   :  { %3792 = vmatpush1.bf16.msra.mxu0 %v6966_v40  ;;  %4202 = vmatpush1.bf16.msra.mxu1 %v6969_v41  ;;  %v7056_v40 = vld [vmem:[#allocation2 + $0x6c0] ss:$16 sps:$4 sm:$0xff]   ;;  %v7059_v41 = vld [vmem:[#allocation2 + $0x6c8] ss:$16 sps:$4 sm:$0xff]  }
 0x10c   :  { %3793 = vmatprep.subr.bf16.mxu0 %v6974_v42  ;;  %4203 = vmatprep.subr.bf16.mxu1 %v6977_v43  ;;  %v7064_v42 = vld [vmem:[#allocation2 + $0x6e4] ss:$16 sps:$4 sm:$0xff]   ;;  %v7067_v43 = vld [vmem:[#allocation2 + $0x6ec] ss:$16 sps:$4 sm:$0xff]  }
 0x10f   :  { %3794 = vmatpush1.bf16.msra.mxu0 %v6972_v44  ;;  %4204 = vmatpush1.bf16.msra.mxu1 %v6975_v45  ;;  %v7062_v44 = vld [vmem:[#allocation2 + $0x6e0] ss:$16 sps:$4 sm:$0xff]   ;;  %v7065_v45 = vld [vmem:[#allocation2 + $0x6e8] ss:$16 sps:$4 sm:$0xff]  }
 0x110   :  { %3795 = vmatprep.subr.bf16.mxu0 %v6980_v46  ;;  %4205 = vmatprep.subr.bf16.mxu1 %v6983_v47  ;;  %v7070_v46 = vld [vmem:[#allocation2 + $0x704] ss:$16 sps:$4 sm:$0xff]   ;;  %v7073_v47 = vld [vmem:[#allocation2 + $0x70c] ss:$16 sps:$4 sm:$0xff]  }
 0x113   :  { %3796 = vmatpush1.bf16.msra.mxu0 %v6978_v48  ;;  %4206 = vmatpush1.bf16.msra.mxu1 %v6981_v49  ;;  %v7068_v48 = vld [vmem:[#allocation2 + $0x700] ss:$16 sps:$4 sm:$0xff]   ;;  %v7071_v49 = vld [vmem:[#allocation2 + $0x708] ss:$16 sps:$4 sm:$0xff]  }
 0x114   :  { %3797 = vmatprep.subr.bf16.mxu0 %v6986_v50  ;;  %4207 = vmatprep.subr.bf16.mxu1 %v6989_v51  ;;  %v7076_v50 = vld [vmem:[#allocation2 + $0x724] ss:$16 sps:$4 sm:$0xff]   ;;  %v7079_v51 = vld [vmem:[#allocation2 + $0x72c] ss:$16 sps:$4 sm:$0xff]  }
 0x117   :  { %3798 = vmatpush1.bf16.msra.mxu0 %v6984_v52  ;;  %4208 = vmatpush1.bf16.msra.mxu1 %v6987_v53  ;;  %v7074_v52 = vld [vmem:[#allocation2 + $0x720] ss:$16 sps:$4 sm:$0xff]   ;;  %v7077_v53 = vld [vmem:[#allocation2 + $0x728] ss:$16 sps:$4 sm:$0xff]  }
 0x118   :  { %3799 = vmatprep.subr.bf16.mxu0 %v6992_v54  ;;  %4209 = vmatprep.subr.bf16.mxu1 %v6995_v55  ;;  %v7082_v54 = vld [vmem:[#allocation2 + $0x744] ss:$16 sps:$4 sm:$0xff]   ;;  %v7085_v55 = vld [vmem:[#allocation2 + $0x74c] ss:$16 sps:$4 sm:$0xff]  }
 0x11b   :  { %3800 = vmatpush1.bf16.msra.mxu0 %v6990_v56  ;;  %4210 = vmatpush1.bf16.msra.mxu1 %v6993_v57  ;;  %v7080_v56 = vld [vmem:[#allocation2 + $0x740] ss:$16 sps:$4 sm:$0xff]   ;;  %v7083_v57 = vld [vmem:[#allocation2 + $0x748] ss:$16 sps:$4 sm:$0xff]  }
 0x11c   :  { %3801 = vmatprep.subr.bf16.mxu0 %v6998_v58  ;;  %4211 = vmatprep.subr.bf16.mxu1 %v7001_v59  ;;  %v7088_v58 = vld [vmem:[#allocation2 + $0x764] ss:$16 sps:$4 sm:$0xff]   ;;  %v7091_v59 = vld [vmem:[#allocation2 + $0x76c] ss:$16 sps:$4 sm:$0xff]  }
 0x11f   :  { %3802 = vmatpush1.bf16.msra.mxu0 %v6996_v60  ;;  %4212 = vmatpush1.bf16.msra.mxu1 %v6999_v61  ;;  %v7086_v60 = vld [vmem:[#allocation2 + $0x760] ss:$16 sps:$4 sm:$0xff]   ;;  %v7089_v61 = vld [vmem:[#allocation2 + $0x768] ss:$16 sps:$4 sm:$0xff]  }
 0x120   :  { %3803 = vmatprep.subr.bf16.mxu0 %v7004_v62  ;;  %4213 = vmatprep.subr.bf16.mxu1 %v7007_v63  ;;  %v7094_v62 = vld [vmem:[#allocation2 + $0x784] ss:$16 sps:$4 sm:$0xff]   ;;  %v7097_v63 = vld [vmem:[#allocation2 + $0x78c] ss:$16 sps:$4 sm:$0xff]  }
 0x123   :  { %3804 = vmatpush1.bf16.msra.mxu0 %v7002_v0  ;;  %4214 = vmatpush1.bf16.msra.mxu1 %v7005_v1  ;;  %v7092_v0 = vld [vmem:[#allocation2 + $0x780] ss:$16 sps:$4 sm:$0xff]   ;;  %v7095_v1 = vld [vmem:[#allocation2 + $0x788] ss:$16 sps:$4 sm:$0xff]  }
 0x124   :  { %3805 = vmatprep.subr.bf16.mxu0 %v7010_v2  ;;  %4215 = vmatprep.subr.bf16.mxu1 %v7013_v3  ;;  %v7100_v2 = vld [vmem:[#allocation2 + $0x7a4] ss:$16 sps:$4 sm:$0xff]   ;;  %v7103_v3 = vld [vmem:[#allocation2 + $0x7ac] ss:$16 sps:$4 sm:$0xff]  }
 0x127   :  { %3806 = vmatpush1.bf16.msra.mxu0 %v7008_v4  ;;  %4216 = vmatpush1.bf16.msra.mxu1 %v7011_v5  ;;  %v7098_v4 = vld [vmem:[#allocation2 + $0x7a0] ss:$16 sps:$4 sm:$0xff]   ;;  %v7101_v5 = vld [vmem:[#allocation2 + $0x7a8] ss:$16 sps:$4 sm:$0xff]  }
 0x128   :  { %3807 = vmatprep.subr.bf16.mxu0 %v7016_v6  ;;  %4217 = vmatprep.subr.bf16.mxu1 %v7019_v7  ;;  %v7106_v6 = vld [vmem:[#allocation2 + $0x7c4] ss:$16 sps:$4 sm:$0xff]   ;;  %v7109_v7 = vld [vmem:[#allocation2 + $0x7cc] ss:$16 sps:$4 sm:$0xff]  }
 0x12b   :  { %3808 = vmatpush1.bf16.msra.mxu0 %v7014_v8  ;;  %4218 = vmatpush1.bf16.msra.mxu1 %v7017_v9  ;;  %v7104_v8 = vld [vmem:[#allocation2 + $0x7c0] ss:$16 sps:$4 sm:$0xff]   ;;  %v7107_v9 = vld [vmem:[#allocation2 + $0x7c8] ss:$16 sps:$4 sm:$0xff]  }
 0x12c   :  { %3818 = vmatprep.subr.bf16.mxu0 %v7022_v10  ;;  %4228 = vmatprep.subr.bf16.mxu1 %v7025_v12  ;;  %v7112_v10 = vld [vmem:[#allocation2 + $0x7e4] ss:$16 sps:$4 sm:$0xff]   ;;  %v7110_v12 = vld [vmem:[#allocation2 + $0x7e0] ss:$16 sps:$4 sm:$0xff]  }
 0x12e   :  { %3810 = vmatmul.mubr.bf16.vlgmr.msra.gmra.mrb[0].mxu0 %v126_v15  ;;  %4220 = vmatmul.mubr.bf16.vlgmr.msra.gmra.mrb[0].mxu1 %v126_v15  ;;  %v7118_v15 = vld [vmem:[#allocation2 + $0x804] ss:$16 sps:$4 sm:$0xff]  }
 0x12f   :  { %3819 = vmatpush1.bf16.msra.mxu0 %v7020_v13  ;;  %4229 = vmatpush1.bf16.msra.mxu1 %v7023_v14  ;;  %v7113_v13 = vld [vmem:[#allocation2 + $0x7e8] ss:$16 sps:$4 sm:$0xff]   ;;  %v109_v14 = vld [vmem:[%s8192_s0 + $0x30] sm:$0xff] }
 0x130   :  { %3820 = vmatprep.subr.bf16.mxu0 %v7028_v17  ;;  %4230 = vmatprep.subr.bf16.mxu1 %v7031_v18  ;;  %v128_v17 = vpack.c.bf16 %v109_v14, %v109_v14  ;;  %v112_v18 = vld [vmem:[%s8192_s0 + $0x48] sm:$0xff]  ;;  %v7208_v14 = vld [vmem:[#allocation2 + $0x9e4] ss:$16 sps:$4 sm:$0xff]  }
 0x131   :  { %3850 = vmatprep.mubr.bf16.mxu0 %v129_v19  ;;  %4260 = vmatprep.mubr.bf16.mxu1 %v129_v19  ;;  %v7116_v19 = vld [vmem:[#allocation2 + $0x800] ss:$16 sps:$4 sm:$0xff]  }
 0x133   :  { %3821 = vmatpush1.bf16.msra.mxu0 %v7026_v20  ;;  %4231 = vmatpush1.bf16.msra.mxu1 %v7029_v21  ;;  %v7119_v20 = vld [vmem:[#allocation2 + $0x808] ss:$16 sps:$4 sm:$0xff]   ;;  %v7124_v21 = vld [vmem:[#allocation2 + $0x824] ss:$16 sps:$4 sm:$0xff]  }
 0x134   :  { %3822 = vmatprep.subr.bf16.mxu0 %v7034_v22  ;;  %4232 = vmatprep.subr.bf16.mxu1 %v7037_v23  ;;  %v7127_v22 = vld [vmem:[#allocation2 + $0x82c] ss:$16 sps:$4 sm:$0xff]   ;;  %v131_v23 = vpack.c.bf16 %v112_v18, %v112_v18  ;;  %v7214_v18 = vld [vmem:[#allocation2 + $0xa04] ss:$16 sps:$4 sm:$0xff]  }
 0x137   :  { %3823 = vmatpush1.bf16.msra.mxu0 %v7032_v24  ;;  %4233 = vmatpush1.bf16.msra.mxu1 %v7035_v25  ;;  %v7122_v24 = vld [vmem:[#allocation2 + $0x820] ss:$16 sps:$4 sm:$0xff]   ;;  %v7125_v25 = vld [vmem:[#allocation2 + $0x828] ss:$16 sps:$4 sm:$0xff]  }
 0x138   :  { %3824 = vmatprep.subr.bf16.mxu0 %v7040_v26  ;;  %4234 = vmatprep.subr.bf16.mxu1 %v7043_v27  ;;  %v7130_v26 = vld [vmem:[#allocation2 + $0x844] ss:$16 sps:$4 sm:$0xff]   ;;  %v7133_v27 = vld [vmem:[#allocation2 + $0x84c] ss:$16 sps:$4 sm:$0xff]  }
 0x13b   :  { %3825 = vmatpush1.bf16.msra.mxu0 %v7038_v28  ;;  %4235 = vmatpush1.bf16.msra.mxu1 %v7041_v29  ;;  %v7128_v28 = vld [vmem:[#allocation2 + $0x840] ss:$16 sps:$4 sm:$0xff]   ;;  %v7131_v29 = vld [vmem:[#allocation2 + $0x848] ss:$16 sps:$4 sm:$0xff]  }
 0x13c   :  { %3826 = vmatprep.subr.bf16.mxu0 %v7046_v30  ;;  %4236 = vmatprep.subr.bf16.mxu1 %v7049_v31  ;;  %v7136_v30 = vld [vmem:[#allocation2 + $0x864] ss:$16 sps:$4 sm:$0xff]   ;;  %v7139_v31 = vld [vmem:[#allocation2 + $0x86c] ss:$16 sps:$4 sm:$0xff]  }
 0x13f   :  { %3827 = vmatpush1.bf16.msra.mxu0 %v7044_v32  ;;  %4237 = vmatpush1.bf16.msra.mxu1 %v7047_v33  ;;  %v7134_v32 = vld [vmem:[#allocation2 + $0x860] ss:$16 sps:$4 sm:$0xff]   ;;  %v7137_v33 = vld [vmem:[#allocation2 + $0x868] ss:$16 sps:$4 sm:$0xff]  }
 0x140   :  { %3828 = vmatprep.subr.bf16.mxu0 %v7052_v34  ;;  %4238 = vmatprep.subr.bf16.mxu1 %v7055_v35  ;;  %v7142_v34 = vld [vmem:[#allocation2 + $0x884] ss:$16 sps:$4 sm:$0xff]   ;;  %v7145_v35 = vld [vmem:[#allocation2 + $0x88c] ss:$16 sps:$4 sm:$0xff]  }
 0x143   :  { %3829 = vmatpush1.bf16.msra.mxu0 %v7050_v36  ;;  %4239 = vmatpush1.bf16.msra.mxu1 %v7053_v37  ;;  %v7140_v36 = vld [vmem:[#allocation2 + $0x880] ss:$16 sps:$4 sm:$0xff]   ;;  %v7143_v37 = vld [vmem:[#allocation2 + $0x888] ss:$16 sps:$4 sm:$0xff]  }
 0x144   :  { %3830 = vmatprep.subr.bf16.mxu0 %v7058_v38  ;;  %4240 = vmatprep.subr.bf16.mxu1 %v7061_v39  ;;  %v7148_v38 = vld [vmem:[#allocation2 + $0x8a4] ss:$16 sps:$4 sm:$0xff]   ;;  %v7151_v39 = vld [vmem:[#allocation2 + $0x8ac] ss:$16 sps:$4 sm:$0xff]  }
 0x147   :  { %3831 = vmatpush1.bf16.msra.mxu0 %v7056_v40  ;;  %4241 = vmatpush1.bf16.msra.mxu1 %v7059_v41  ;;  %v7146_v40 = vld [vmem:[#allocation2 + $0x8a0] ss:$16 sps:$4 sm:$0xff]   ;;  %v7149_v41 = vld [vmem:[#allocation2 + $0x8a8] ss:$16 sps:$4 sm:$0xff]  }
 0x148   :  { %3832 = vmatprep.subr.bf16.mxu0 %v7064_v42  ;;  %4242 = vmatprep.subr.bf16.mxu1 %v7067_v43  ;;  %v7154_v42 = vld [vmem:[#allocation2 + $0x8c4] ss:$16 sps:$4 sm:$0xff]   ;;  %v7157_v43 = vld [vmem:[#allocation2 + $0x8cc] ss:$16 sps:$4 sm:$0xff]  }
 0x14b   :  { %3833 = vmatpush1.bf16.msra.mxu0 %v7062_v44  ;;  %4243 = vmatpush1.bf16.msra.mxu1 %v7065_v45  ;;  %v7152_v44 = vld [vmem:[#allocation2 + $0x8c0] ss:$16 sps:$4 sm:$0xff]   ;;  %v7155_v45 = vld [vmem:[#allocation2 + $0x8c8] ss:$16 sps:$4 sm:$0xff]  }
 0x14c   :  { %3834 = vmatprep.subr.bf16.mxu0 %v7070_v46  ;;  %4244 = vmatprep.subr.bf16.mxu1 %v7073_v47  ;;  %v7160_v46 = vld [vmem:[#allocation2 + $0x8e4] ss:$16 sps:$4 sm:$0xff]   ;;  %v7163_v47 = vld [vmem:[#allocation2 + $0x8ec] ss:$16 sps:$4 sm:$0xff]  }
 0x14f   :  { %3835 = vmatpush1.bf16.msra.mxu0 %v7068_v48  ;;  %4245 = vmatpush1.bf16.msra.mxu1 %v7071_v49  ;;  %v7158_v48 = vld [vmem:[#allocation2 + $0x8e0] ss:$16 sps:$4 sm:$0xff]   ;;  %v7161_v49 = vld [vmem:[#allocation2 + $0x8e8] ss:$16 sps:$4 sm:$0xff]  }
 0x150   :  { %3836 = vmatprep.subr.bf16.mxu0 %v7076_v50  ;;  %4246 = vmatprep.subr.bf16.mxu1 %v7079_v51  ;;  %v7166_v50 = vld [vmem:[#allocation2 + $0x904] ss:$16 sps:$4 sm:$0xff]   ;;  %v7169_v51 = vld [vmem:[#allocation2 + $0x90c] ss:$16 sps:$4 sm:$0xff]  }
 0x153   :  { %3837 = vmatpush1.bf16.msra.mxu0 %v7074_v52  ;;  %4247 = vmatpush1.bf16.msra.mxu1 %v7077_v53  ;;  %v7164_v52 = vld [vmem:[#allocation2 + $0x900] ss:$16 sps:$4 sm:$0xff]   ;;  %v7167_v53 = vld [vmem:[#allocation2 + $0x908] ss:$16 sps:$4 sm:$0xff]  }
 0x154   :  { %3838 = vmatprep.subr.bf16.mxu0 %v7082_v54  ;;  %4248 = vmatprep.subr.bf16.mxu1 %v7085_v55  ;;  %v7172_v54 = vld [vmem:[#allocation2 + $0x924] ss:$16 sps:$4 sm:$0xff]   ;;  %v7175_v55 = vld [vmem:[#allocation2 + $0x92c] ss:$16 sps:$4 sm:$0xff]  }
 0x157   :  { %3839 = vmatpush1.bf16.msra.mxu0 %v7080_v56  ;;  %4249 = vmatpush1.bf16.msra.mxu1 %v7083_v57  ;;  %v7170_v56 = vld [vmem:[#allocation2 + $0x920] ss:$16 sps:$4 sm:$0xff]   ;;  %v7173_v57 = vld [vmem:[#allocation2 + $0x928] ss:$16 sps:$4 sm:$0xff]  }
 0x158   :  { %3840 = vmatprep.subr.bf16.mxu0 %v7088_v58  ;;  %4250 = vmatprep.subr.bf16.mxu1 %v7091_v59  ;;  %v7178_v58 = vld [vmem:[#allocation2 + $0x944] ss:$16 sps:$4 sm:$0xff]   ;;  %v7181_v59 = vld [vmem:[#allocation2 + $0x94c] ss:$16 sps:$4 sm:$0xff]  }
 0x15b   :  { %3841 = vmatpush1.bf16.msra.mxu0 %v7086_v60  ;;  %4251 = vmatpush1.bf16.msra.mxu1 %v7089_v61  ;;  %v7176_v60 = vld [vmem:[#allocation2 + $0x940] ss:$16 sps:$4 sm:$0xff]   ;;  %v7179_v61 = vld [vmem:[#allocation2 + $0x948] ss:$16 sps:$4 sm:$0xff]  }
 0x15c   :  { %3842 = vmatprep.subr.bf16.mxu0 %v7094_v62  ;;  %4252 = vmatprep.subr.bf16.mxu1 %v7097_v63  ;;  %v7184_v62 = vld [vmem:[#allocation2 + $0x964] ss:$16 sps:$4 sm:$0xff]   ;;  %v7187_v63 = vld [vmem:[#allocation2 + $0x96c] ss:$16 sps:$4 sm:$0xff]  }
 0x15f   :  { %3843 = vmatpush1.bf16.msra.mxu0 %v7092_v0  ;;  %4253 = vmatpush1.bf16.msra.mxu1 %v7095_v1  ;;  %v7182_v0 = vld [vmem:[#allocation2 + $0x960] ss:$16 sps:$4 sm:$0xff]   ;;  %v7185_v1 = vld [vmem:[#allocation2 + $0x968] ss:$16 sps:$4 sm:$0xff]  }
 0x160   :  { %3844 = vmatprep.subr.bf16.mxu0 %v7100_v2  ;;  %4254 = vmatprep.subr.bf16.mxu1 %v7103_v3  ;;  %v7190_v2 = vld [vmem:[#allocation2 + $0x984] ss:$16 sps:$4 sm:$0xff]   ;;  %v7193_v3 = vld [vmem:[#allocation2 + $0x98c] ss:$16 sps:$4 sm:$0xff]  }
 0x163   :  { %3845 = vmatpush1.bf16.msra.mxu0 %v7098_v4  ;;  %4255 = vmatpush1.bf16.msra.mxu1 %v7101_v5  ;;  %v7188_v4 = vld [vmem:[#allocation2 + $0x980] ss:$16 sps:$4 sm:$0xff]   ;;  %v7191_v5 = vld [vmem:[#allocation2 + $0x988] ss:$16 sps:$4 sm:$0xff]  }
 0x164   :  { %3846 = vmatprep.subr.bf16.mxu0 %v7106_v6  ;;  %4256 = vmatprep.subr.bf16.mxu1 %v7109_v7  ;;  %v7196_v6 = vld [vmem:[#allocation2 + $0x9a4] ss:$16 sps:$4 sm:$0xff]   ;;  %v7199_v7 = vld [vmem:[#allocation2 + $0x9ac] ss:$16 sps:$4 sm:$0xff]  }
 0x167   :  { %3847 = vmatpush1.bf16.msra.mxu0 %v7104_v8  ;;  %4257 = vmatpush1.bf16.msra.mxu1 %v7107_v9  ;;  %v7194_v8 = vld [vmem:[#allocation2 + $0x9a0] ss:$16 sps:$4 sm:$0xff]   ;;  %v7197_v9 = vld [vmem:[#allocation2 + $0x9a8] ss:$16 sps:$4 sm:$0xff]  }
 0x168   :  { %3848 = vmatprep.subr.bf16.mxu0 %v7112_v10  ;;  %4258 = vmatprep.subr.bf16.mxu1 %v7115_v11  ;;  %v7202_v10 = vld [vmem:[#allocation2 + $0x9c4] ss:$16 sps:$4 sm:$0xff]   ;;  %v7205_v11 = vld [vmem:[#allocation2 + $0x9cc] ss:$16 sps:$4 sm:$0xff]  }
 0x16b   :  { %3849 = vmatpush1.bf16.msra.mxu0 %v7110_v12  ;;  %4259 = vmatpush1.bf16.msra.mxu1 %v7113_v13  ;;  %v7200_v12 = vld [vmem:[#allocation2 + $0x9c0] ss:$16 sps:$4 sm:$0xff]   ;;  %v7203_v13 = vld [vmem:[#allocation2 + $0x9c8] ss:$16 sps:$4 sm:$0xff]  }
 0x16c   :  { %3859 = vmatprep.subr.bf16.mxu0 %v7118_v15  ;;  %4269 = vmatprep.subr.bf16.mxu1 %v7121_v16  ;;  %v7211_v15 = vld [vmem:[#allocation2 + $0x9ec] ss:$16 sps:$4 sm:$0xff]   ;;  %v7206_v16 = vld [vmem:[#allocation2 + $0x9e0] ss:$16 sps:$4 sm:$0xff]  }
 0x16e   :  { %3851 = vmatmul.mubr.bf16.vlgmr.msra.gmra.mrb[0].mxu0 %v128_v17  ;;  %4261 = vmatmul.mubr.bf16.vlgmr.msra.gmra.mrb[0].mxu1 %v128_v17  ;;  %v7209_v17 = vld [vmem:[#allocation2 + $0x9e8] ss:$16 sps:$4 sm:$0xff]  }
 0x16f   :  { %3860 = vmatpush1.bf16.msra.mxu0 %v7116_v19  ;;  %4270 = vmatpush1.bf16.msra.mxu1 %v7119_v20  ;;  %v111_v19 = vld [vmem:[%s8192_s0 + $0x40] sm:$0xff]  ;;  %v7217_v20 = vld [vmem:[#allocation2 + $0xa0c] ss:$16 sps:$4 sm:$0xff]  }
 0x170   :  { %3861 = vmatprep.subr.bf16.mxu0 %v7124_v21  ;;  %4271 = vmatprep.subr.bf16.mxu1 %v7127_v22  ;;  %v114_v21 = vld [vmem:[%s8192_s0 + $0x58] sm:$0xff]  ;;  %v130_v22 = vpack.c.bf16 %v111_v19, %v111_v19 }
 0x171   :  { %3891 = vmatprep.mubr.bf16.mxu0 %v131_v23  ;;  %4301 = vmatprep.mubr.bf16.mxu1 %v131_v23  ;;  %v7212_v23 = vld [vmem:[#allocation2 + $0xa00] ss:$16 sps:$4 sm:$0xff]   ;;  %v7307_v19 = vld [vmem:[#allocation2 + $0xbec] ss:$16 sps:$4 sm:$0xff]  }
 0x173   :  { %3862 = vmatpush1.bf16.msra.mxu0 %v7122_v24  ;;  %4272 = vmatpush1.bf16.msra.mxu1 %v7125_v25  ;;  %v7215_v24 = vld [vmem:[#allocation2 + $0xa08] ss:$16 sps:$4 sm:$0xff]   ;;  %v7220_v25 = vld [vmem:[#allocation2 + $0xa24] ss:$16 sps:$4 sm:$0xff]  }
 0x174   :  { %3863 = vmatprep.subr.bf16.mxu0 %v7130_v26  ;;  %4273 = vmatprep.subr.bf16.mxu1 %v7133_v27  ;;  %v7223_v26 = vld [vmem:[#allocation2 + $0xa2c] ss:$16 sps:$4 sm:$0xff]   ;;  %v133_v27 = vpack.c.bf16 %v114_v21, %v114_v21  ;;  %v7305_v21 = vld [vmem:[#allocation2 + $0xbe8] ss:$16 sps:$4 sm:$0xff]  }
 0x177   :  { %3864 = vmatpush1.bf16.msra.mxu0 %v7128_v28  ;;  %4274 = vmatpush1.bf16.msra.mxu1 %v7131_v29  ;;  %v7218_v28 = vld [vmem:[#allocation2 + $0xa20] ss:$16 sps:$4 sm:$0xff]   ;;  %v7221_v29 = vld [vmem:[#allocation2 + $0xa28] ss:$16 sps:$4 sm:$0xff]  }
 0x178   :  { %3865 = vmatprep.subr.bf16.mxu0 %v7136_v30  ;;  %4275 = vmatprep.subr.bf16.mxu1 %v7139_v31  ;;  %v7226_v30 = vld [vmem:[#allocation2 + $0xa44] ss:$16 sps:$4 sm:$0xff]   ;;  %v7229_v31 = vld [vmem:[#allocation2 + $0xa4c] ss:$16 sps:$4 sm:$0xff]  }
 0x17b   :  { %3866 = vmatpush1.bf16.msra.mxu0 %v7134_v32  ;;  %4276 = vmatpush1.bf16.msra.mxu1 %v7137_v33  ;;  %v7224_v32 = vld [vmem:[#allocation2 + $0xa40] ss:$16 sps:$4 sm:$0xff]   ;;  %v7227_v33 = vld [vmem:[#allocation2 + $0xa48] ss:$16 sps:$4 sm:$0xff]  }
 0x17c   :  { %3867 = vmatprep.subr.bf16.mxu0 %v7142_v34  ;;  %4277 = vmatprep.subr.bf16.mxu1 %v7145_v35  ;;  %v7232_v34 = vld [vmem:[#allocation2 + $0xa64] ss:$16 sps:$4 sm:$0xff]   ;;  %v7235_v35 = vld [vmem:[#allocation2 + $0xa6c] ss:$16 sps:$4 sm:$0xff]  }
 0x17f   :  { %3868 = vmatpush1.bf16.msra.mxu0 %v7140_v36  ;;  %4278 = vmatpush1.bf16.msra.mxu1 %v7143_v37  ;;  %v7230_v36 = vld [vmem:[#allocation2 + $0xa60] ss:$16 sps:$4 sm:$0xff]   ;;  %v7233_v37 = vld [vmem:[#allocation2 + $0xa68] ss:$16 sps:$4 sm:$0xff]  }
 0x180   :  { %3869 = vmatprep.subr.bf16.mxu0 %v7148_v38  ;;  %4279 = vmatprep.subr.bf16.mxu1 %v7151_v39  ;;  %v7238_v38 = vld [vmem:[#allocation2 + $0xa84] ss:$16 sps:$4 sm:$0xff]   ;;  %v7241_v39 = vld [vmem:[#allocation2 + $0xa8c] ss:$16 sps:$4 sm:$0xff]  }
 0x183   :  { %3870 = vmatpush1.bf16.msra.mxu0 %v7146_v40  ;;  %4280 = vmatpush1.bf16.msra.mxu1 %v7149_v41  ;;  %v7236_v40 = vld [vmem:[#allocation2 + $0xa80] ss:$16 sps:$4 sm:$0xff]   ;;  %v7239_v41 = vld [vmem:[#allocation2 + $0xa88] ss:$16 sps:$4 sm:$0xff]  }
 0x184   :  { %3871 = vmatprep.subr.bf16.mxu0 %v7154_v42  ;;  %4281 = vmatprep.subr.bf16.mxu1 %v7157_v43  ;;  %v7244_v42 = vld [vmem:[#allocation2 + $0xaa4] ss:$16 sps:$4 sm:$0xff]   ;;  %v7247_v43 = vld [vmem:[#allocation2 + $0xaac] ss:$16 sps:$4 sm:$0xff]  }
 0x187   :  { %3872 = vmatpush1.bf16.msra.mxu0 %v7152_v44  ;;  %4282 = vmatpush1.bf16.msra.mxu1 %v7155_v45  ;;  %v7242_v44 = vld [vmem:[#allocation2 + $0xaa0] ss:$16 sps:$4 sm:$0xff]   ;;  %v7245_v45 = vld [vmem:[#allocation2 + $0xaa8] ss:$16 sps:$4 sm:$0xff]  }
 0x188   :  { %3873 = vmatprep.subr.bf16.mxu0 %v7160_v46  ;;  %4283 = vmatprep.subr.bf16.mxu1 %v7163_v47  ;;  %v7250_v46 = vld [vmem:[#allocation2 + $0xac4] ss:$16 sps:$4 sm:$0xff]   ;;  %v7253_v47 = vld [vmem:[#allocation2 + $0xacc] ss:$16 sps:$4 sm:$0xff]  }
 0x18b   :  { %3874 = vmatpush1.bf16.msra.mxu0 %v7158_v48  ;;  %4284 = vmatpush1.bf16.msra.mxu1 %v7161_v49  ;;  %v7248_v48 = vld [vmem:[#allocation2 + $0xac0] ss:$16 sps:$4 sm:$0xff]   ;;  %v7251_v49 = vld [vmem:[#allocation2 + $0xac8] ss:$16 sps:$4 sm:$0xff]  }
 0x18c   :  { %3875 = vmatprep.subr.bf16.mxu0 %v7166_v50  ;;  %4285 = vmatprep.subr.bf16.mxu1 %v7169_v51  ;;  %v7256_v50 = vld [vmem:[#allocation2 + $0xae4] ss:$16 sps:$4 sm:$0xff]   ;;  %v7259_v51 = vld [vmem:[#allocation2 + $0xaec] ss:$16 sps:$4 sm:$0xff]  }
 0x18f   :  { %3876 = vmatpush1.bf16.msra.mxu0 %v7164_v52  ;;  %4286 = vmatpush1.bf16.msra.mxu1 %v7167_v53  ;;  %v7254_v52 = vld [vmem:[#allocation2 + $0xae0] ss:$16 sps:$4 sm:$0xff]   ;;  %v7257_v53 = vld [vmem:[#allocation2 + $0xae8] ss:$16 sps:$4 sm:$0xff]  }
 0x190   :  { %3877 = vmatprep.subr.bf16.mxu0 %v7172_v54  ;;  %4287 = vmatprep.subr.bf16.mxu1 %v7175_v55  ;;  %v7262_v54 = vld [vmem:[#allocation2 + $0xb04] ss:$16 sps:$4 sm:$0xff]   ;;  %v7265_v55 = vld [vmem:[#allocation2 + $0xb0c] ss:$16 sps:$4 sm:$0xff]  }
 0x193   :  { %3878 = vmatpush1.bf16.msra.mxu0 %v7170_v56  ;;  %4288 = vmatpush1.bf16.msra.mxu1 %v7173_v57  ;;  %v7260_v56 = vld [vmem:[#allocation2 + $0xb00] ss:$16 sps:$4 sm:$0xff]   ;;  %v7263_v57 = vld [vmem:[#allocation2 + $0xb08] ss:$16 sps:$4 sm:$0xff]  }
 0x194   :  { %3879 = vmatprep.subr.bf16.mxu0 %v7178_v58  ;;  %4289 = vmatprep.subr.bf16.mxu1 %v7181_v59  ;;  %v7268_v58 = vld [vmem:[#allocation2 + $0xb24] ss:$16 sps:$4 sm:$0xff]   ;;  %v7271_v59 = vld [vmem:[#allocation2 + $0xb2c] ss:$16 sps:$4 sm:$0xff]  }
 0x197   :  { %3880 = vmatpush1.bf16.msra.mxu0 %v7176_v60  ;;  %4290 = vmatpush1.bf16.msra.mxu1 %v7179_v61  ;;  %v7266_v60 = vld [vmem:[#allocation2 + $0xb20] ss:$16 sps:$4 sm:$0xff]   ;;  %v7269_v61 = vld [vmem:[#allocation2 + $0xb28] ss:$16 sps:$4 sm:$0xff]  }
 0x198   :  { %3881 = vmatprep.subr.bf16.mxu0 %v7184_v62  ;;  %4291 = vmatprep.subr.bf16.mxu1 %v7187_v63  ;;  %v7274_v62 = vld [vmem:[#allocation2 + $0xb44] ss:$16 sps:$4 sm:$0xff]   ;;  %v7277_v63 = vld [vmem:[#allocation2 + $0xb4c] ss:$16 sps:$4 sm:$0xff]  }
 0x19b   :  { %3882 = vmatpush1.bf16.msra.mxu0 %v7182_v0  ;;  %4292 = vmatpush1.bf16.msra.mxu1 %v7185_v1  ;;  %v7272_v0 = vld [vmem:[#allocation2 + $0xb40] ss:$16 sps:$4 sm:$0xff]   ;;  %v7275_v1 = vld [vmem:[#allocation2 + $0xb48] ss:$16 sps:$4 sm:$0xff]  }
 0x19c   :  { %3883 = vmatprep.subr.bf16.mxu0 %v7190_v2  ;;  %4293 = vmatprep.subr.bf16.mxu1 %v7193_v3  ;;  %v7280_v2 = vld [vmem:[#allocation2 + $0xb64] ss:$16 sps:$4 sm:$0xff]   ;;  %v7283_v3 = vld [vmem:[#allocation2 + $0xb6c] ss:$16 sps:$4 sm:$0xff]  }
 0x19f   :  { %3884 = vmatpush1.bf16.msra.mxu0 %v7188_v4  ;;  %4294 = vmatpush1.bf16.msra.mxu1 %v7191_v5  ;;  %v7278_v4 = vld [vmem:[#allocation2 + $0xb60] ss:$16 sps:$4 sm:$0xff]   ;;  %v7281_v5 = vld [vmem:[#allocation2 + $0xb68] ss:$16 sps:$4 sm:$0xff]  }
 0x1a0   :  { %3885 = vmatprep.subr.bf16.mxu0 %v7196_v6  ;;  %4295 = vmatprep.subr.bf16.mxu1 %v7199_v7  ;;  %v7286_v6 = vld [vmem:[#allocation2 + $0xb84] ss:$16 sps:$4 sm:$0xff]   ;;  %v7289_v7 = vld [vmem:[#allocation2 + $0xb8c] ss:$16 sps:$4 sm:$0xff]  }
 0x1a3   :  { %3886 = vmatpush1.bf16.msra.mxu0 %v7194_v8  ;;  %4296 = vmatpush1.bf16.msra.mxu1 %v7197_v9  ;;  %v7284_v8 = vld [vmem:[#allocation2 + $0xb80] ss:$16 sps:$4 sm:$0xff]   ;;  %v7287_v9 = vld [vmem:[#allocation2 + $0xb88] ss:$16 sps:$4 sm:$0xff]  }
 0x1a4   :  { %3887 = vmatprep.subr.bf16.mxu0 %v7202_v10  ;;  %4297 = vmatprep.subr.bf16.mxu1 %v7205_v11  ;;  %v7292_v10 = vld [vmem:[#allocation2 + $0xba4] ss:$16 sps:$4 sm:$0xff]   ;;  %v7295_v11 = vld [vmem:[#allocation2 + $0xbac] ss:$16 sps:$4 sm:$0xff]  }
 0x1a7   :  { %3888 = vmatpush1.bf16.msra.mxu0 %v7200_v12  ;;  %4298 = vmatpush1.bf16.msra.mxu1 %v7203_v13  ;;  %v7290_v12 = vld [vmem:[#allocation2 + $0xba0] ss:$16 sps:$4 sm:$0xff]   ;;  %v7293_v13 = vld [vmem:[#allocation2 + $0xba8] ss:$16 sps:$4 sm:$0xff]  }
 0x1a8   :  { %3889 = vmatprep.subr.bf16.mxu0 %v7208_v14  ;;  %4299 = vmatprep.subr.bf16.mxu1 %v7211_v15  ;;  %v7298_v14 = vld [vmem:[#allocation2 + $0xbc4] ss:$16 sps:$4 sm:$0xff]   ;;  %v7301_v15 = vld [vmem:[#allocation2 + $0xbcc] ss:$16 sps:$4 sm:$0xff]  }
 0x1ab   :  { %3890 = vmatpush1.bf16.msra.mxu0 %v7206_v16  ;;  %4300 = vmatpush1.bf16.msra.mxu1 %v7209_v17  ;;  %v7296_v16 = vld [vmem:[#allocation2 + $0xbc0] ss:$16 sps:$4 sm:$0xff]   ;;  %v7299_v17 = vld [vmem:[#allocation2 + $0xbc8] ss:$16 sps:$4 sm:$0xff]  }
 0x1ac   :  { %3900 = vmatprep.subr.bf16.mxu0 %v7214_v18  ;;  %4310 = vmatprep.subr.bf16.mxu1 %v7217_v20  ;;  %v7304_v18 = vld [vmem:[#allocation2 + $0xbe4] ss:$16 sps:$4 sm:$0xff]   ;;  %v7302_v20 = vld [vmem:[#allocation2 + $0xbe0] ss:$16 sps:$4 sm:$0xff]  }
 0x1ae   :  { %3892 = vmatmul.mubr.bf16.vlgmr.msra.gmra.mrb[0].mxu0 %v130_v22  ;;  %4302 = vmatmul.mubr.bf16.vlgmr.msra.gmra.mrb[0].mxu1 %v130_v22  ;;  %v7310_v22 = vld [vmem:[#allocation2 + $0xc04] ss:$16 sps:$4 sm:$0xff]  }
 0x1af   :  { %3901 = vmatpush1.bf16.msra.mxu0 %v7212_v23  ;;  %4311 = vmatpush1.bf16.msra.mxu1 %v7215_v24  ;;  %v113_v23 = vld [vmem:[%s8192_s0 + $0x50] sm:$0xff]  ;;  %v7313_v24 = vld [vmem:[#allocation2 + $0xc0c] ss:$16 sps:$4 sm:$0xff]  }
 0x1b0   :  { %3902 = vmatprep.subr.bf16.mxu0 %v7220_v25  ;;  %4312 = vmatprep.subr.bf16.mxu1 %v7223_v26  ;;  %v116_v25 = vld [vmem:[%s8192_s0 + $0x68] sm:$0xff]  ;;  %v132_v26 = vpack.c.bf16 %v113_v23, %v113_v23 }
 0x1b1   :  { %3932 = vmatprep.mubr.bf16.mxu0 %v133_v27  ;;  %4342 = vmatprep.mubr.bf16.mxu1 %v133_v27  ;;  %v7308_v27 = vld [vmem:[#allocation2 + $0xc00] ss:$16 sps:$4 sm:$0xff]   ;;  %v7403_v23 = vld [vmem:[#allocation2 + $0xdec] ss:$16 sps:$4 sm:$0xff]  }
 0x1b3   :  { %3903 = vmatpush1.bf16.msra.mxu0 %v7218_v28  ;;  %4313 = vmatpush1.bf16.msra.mxu1 %v7221_v29  ;;  %v7311_v28 = vld [vmem:[#allocation2 + $0xc08] ss:$16 sps:$4 sm:$0xff]   ;;  %v7316_v29 = vld [vmem:[#allocation2 + $0xc24] ss:$16 sps:$4 sm:$0xff]  }
 0x1b4   :  { %3904 = vmatprep.subr.bf16.mxu0 %v7226_v30  ;;  %4314 = vmatprep.subr.bf16.mxu1 %v7229_v31  ;;  %v7319_v30 = vld [vmem:[#allocation2 + $0xc2c] ss:$16 sps:$4 sm:$0xff]   ;;  %v135_v31 = vpack.c.bf16 %v116_v25, %v116_v25  ;;  %v7401_v25 = vld [vmem:[#allocation2 + $0xde8] ss:$16 sps:$4 sm:$0xff]  }
 0x1b7   :  { %3905 = vmatpush1.bf16.msra.mxu0 %v7224_v32  ;;  %4315 = vmatpush1.bf16.msra.mxu1 %v7227_v33  ;;  %v7314_v32 = vld [vmem:[#allocation2 + $0xc20] ss:$16 sps:$4 sm:$0xff]   ;;  %v7317_v33 = vld [vmem:[#allocation2 + $0xc28] ss:$16 sps:$4 sm:$0xff]  }
 0x1b8   :  { %3906 = vmatprep.subr.bf16.mxu0 %v7232_v34  ;;  %4316 = vmatprep.subr.bf16.mxu1 %v7235_v35  ;;  %v7322_v34 = vld [vmem:[#allocation2 + $0xc44] ss:$16 sps:$4 sm:$0xff]   ;;  %v7325_v35 = vld [vmem:[#allocation2 + $0xc4c] ss:$16 sps:$4 sm:$0xff]  }
 0x1bb   :  { %3907 = vmatpush1.bf16.msra.mxu0 %v7230_v36  ;;  %4317 = vmatpush1.bf16.msra.mxu1 %v7233_v37  ;;  %v7320_v36 = vld [vmem:[#allocation2 + $0xc40] ss:$16 sps:$4 sm:$0xff]   ;;  %v7323_v37 = vld [vmem:[#allocation2 + $0xc48] ss:$16 sps:$4 sm:$0xff]  }
 0x1bc   :  { %3908 = vmatprep.subr.bf16.mxu0 %v7238_v38  ;;  %4318 = vmatprep.subr.bf16.mxu1 %v7241_v39  ;;  %v7328_v38 = vld [vmem:[#allocation2 + $0xc64] ss:$16 sps:$4 sm:$0xff]   ;;  %v7331_v39 = vld [vmem:[#allocation2 + $0xc6c] ss:$16 sps:$4 sm:$0xff]  }
 0x1bf   :  { %3909 = vmatpush1.bf16.msra.mxu0 %v7236_v40  ;;  %4319 = vmatpush1.bf16.msra.mxu1 %v7239_v41  ;;  %v7326_v40 = vld [vmem:[#allocation2 + $0xc60] ss:$16 sps:$4 sm:$0xff]   ;;  %v7329_v41 = vld [vmem:[#allocation2 + $0xc68] ss:$16 sps:$4 sm:$0xff]  }
 0x1c0   :  { %3910 = vmatprep.subr.bf16.mxu0 %v7244_v42  ;;  %4320 = vmatprep.subr.bf16.mxu1 %v7247_v43  ;;  %v7334_v42 = vld [vmem:[#allocation2 + $0xc84] ss:$16 sps:$4 sm:$0xff]   ;;  %v7337_v43 = vld [vmem:[#allocation2 + $0xc8c] ss:$16 sps:$4 sm:$0xff]  }
 0x1c3   :  { %3911 = vmatpush1.bf16.msra.mxu0 %v7242_v44  ;;  %4321 = vmatpush1.bf16.msra.mxu1 %v7245_v45  ;;  %v7332_v44 = vld [vmem:[#allocation2 + $0xc80] ss:$16 sps:$4 sm:$0xff]   ;;  %v7335_v45 = vld [vmem:[#allocation2 + $0xc88] ss:$16 sps:$4 sm:$0xff]  }
 0x1c4   :  { %3912 = vmatprep.subr.bf16.mxu0 %v7250_v46  ;;  %4322 = vmatprep.subr.bf16.mxu1 %v7253_v47  ;;  %v7340_v46 = vld [vmem:[#allocation2 + $0xca4] ss:$16 sps:$4 sm:$0xff]   ;;  %v7343_v47 = vld [vmem:[#allocation2 + $0xcac] ss:$16 sps:$4 sm:$0xff]  }
 0x1c7   :  { %3913 = vmatpush1.bf16.msra.mxu0 %v7248_v48  ;;  %4323 = vmatpush1.bf16.msra.mxu1 %v7251_v49  ;;  %v7338_v48 = vld [vmem:[#allocation2 + $0xca0] ss:$16 sps:$4 sm:$0xff]   ;;  %v7341_v49 = vld [vmem:[#allocation2 + $0xca8] ss:$16 sps:$4 sm:$0xff]  }
 0x1c8   :  { %3914 = vmatprep.subr.bf16.mxu0 %v7256_v50  ;;  %4324 = vmatprep.subr.bf16.mxu1 %v7259_v51  ;;  %v7346_v50 = vld [vmem:[#allocation2 + $0xcc4] ss:$16 sps:$4 sm:$0xff]   ;;  %v7349_v51 = vld [vmem:[#allocation2 + $0xccc] ss:$16 sps:$4 sm:$0xff]  }
 0x1cb   :  { %3915 = vmatpush1.bf16.msra.mxu0 %v7254_v52  ;;  %4325 = vmatpush1.bf16.msra.mxu1 %v7257_v53  ;;  %v7344_v52 = vld [vmem:[#allocation2 + $0xcc0] ss:$16 sps:$4 sm:$0xff]   ;;  %v7347_v53 = vld [vmem:[#allocation2 + $0xcc8] ss:$16 sps:$4 sm:$0xff]  }
 0x1cc   :  { %3916 = vmatprep.subr.bf16.mxu0 %v7262_v54  ;;  %4326 = vmatprep.subr.bf16.mxu1 %v7265_v55  ;;  %v7352_v54 = vld [vmem:[#allocation2 + $0xce4] ss:$16 sps:$4 sm:$0xff]   ;;  %v7355_v55 = vld [vmem:[#allocation2 + $0xcec] ss:$16 sps:$4 sm:$0xff]  }
 0x1cf   :  { %3917 = vmatpush1.bf16.msra.mxu0 %v7260_v56  ;;  %4327 = vmatpush1.bf16.msra.mxu1 %v7263_v57  ;;  %v7350_v56 = vld [vmem:[#allocation2 + $0xce0] ss:$16 sps:$4 sm:$0xff]   ;;  %v7353_v57 = vld [vmem:[#allocation2 + $0xce8] ss:$16 sps:$4 sm:$0xff]  }
 0x1d0   :  { %3918 = vmatprep.subr.bf16.mxu0 %v7268_v58  ;;  %4328 = vmatprep.subr.bf16.mxu1 %v7271_v59  ;;  %v7358_v58 = vld [vmem:[#allocation2 + $0xd04] ss:$16 sps:$4 sm:$0xff]   ;;  %v7361_v59 = vld [vmem:[#allocation2 + $0xd0c] ss:$16 sps:$4 sm:$0xff]  }
 0x1d3   :  { %3919 = vmatpush1.bf16.msra.mxu0 %v7266_v60  ;;  %4329 = vmatpush1.bf16.msra.mxu1 %v7269_v61  ;;  %v7356_v60 = vld [vmem:[#allocation2 + $0xd00] ss:$16 sps:$4 sm:$0xff]   ;;  %v7359_v61 = vld [vmem:[#allocation2 + $0xd08] ss:$16 sps:$4 sm:$0xff]  }
 0x1d4   :  { %3920 = vmatprep.subr.bf16.mxu0 %v7274_v62  ;;  %4330 = vmatprep.subr.bf16.mxu1 %v7277_v63  ;;  %v7364_v62 = vld [vmem:[#allocation2 + $0xd24] ss:$16 sps:$4 sm:$0xff]   ;;  %v7367_v63 = vld [vmem:[#allocation2 + $0xd2c] ss:$16 sps:$4 sm:$0xff]  }
 0x1d7   :  { %3921 = vmatpush1.bf16.msra.mxu0 %v7272_v0  ;;  %4331 = vmatpush1.bf16.msra.mxu1 %v7275_v1  ;;  %v7362_v0 = vld [vmem:[#allocation2 + $0xd20] ss:$16 sps:$4 sm:$0xff]   ;;  %v7365_v1 = vld [vmem:[#allocation2 + $0xd28] ss:$16 sps:$4 sm:$0xff]  }
 0x1d8   :  { %3922 = vmatprep.subr.bf16.mxu0 %v7280_v2  ;;  %4332 = vmatprep.subr.bf16.mxu1 %v7283_v3  ;;  %v7370_v2 = vld [vmem:[#allocation2 + $0xd44] ss:$16 sps:$4 sm:$0xff]   ;;  %v7373_v3 = vld [vmem:[#allocation2 + $0xd4c] ss:$16 sps:$4 sm:$0xff]  }
 0x1db   :  { %3923 = vmatpush1.bf16.msra.mxu0 %v7278_v4  ;;  %4333 = vmatpush1.bf16.msra.mxu1 %v7281_v5  ;;  %v7368_v4 = vld [vmem:[#allocation2 + $0xd40] ss:$16 sps:$4 sm:$0xff]   ;;  %v7371_v5 = vld [vmem:[#allocation2 + $0xd48] ss:$16 sps:$4 sm:$0xff]  }
 0x1dc   :  { %3924 = vmatprep.subr.bf16.mxu0 %v7286_v6  ;;  %4334 = vmatprep.subr.bf16.mxu1 %v7289_v7  ;;  %v7376_v6 = vld [vmem:[#allocation2 + $0xd64] ss:$16 sps:$4 sm:$0xff]   ;;  %v7379_v7 = vld [vmem:[#allocation2 + $0xd6c] ss:$16 sps:$4 sm:$0xff]  }
 0x1df   :  { %3925 = vmatpush1.bf16.msra.mxu0 %v7284_v8  ;;  %4335 = vmatpush1.bf16.msra.mxu1 %v7287_v9  ;;  %v7374_v8 = vld [vmem:[#allocation2 + $0xd60] ss:$16 sps:$4 sm:$0xff]   ;;  %v7377_v9 = vld [vmem:[#allocation2 + $0xd68] ss:$16 sps:$4 sm:$0xff]  }
 0x1e0   :  { %3926 = vmatprep.subr.bf16.mxu0 %v7292_v10  ;;  %4336 = vmatprep.subr.bf16.mxu1 %v7295_v11  ;;  %v7382_v10 = vld [vmem:[#allocation2 + $0xd84] ss:$16 sps:$4 sm:$0xff]   ;;  %v7385_v11 = vld [vmem:[#allocation2 + $0xd8c] ss:$16 sps:$4 sm:$0xff]  }
 0x1e3   :  { %3927 = vmatpush1.bf16.msra.mxu0 %v7290_v12  ;;  %4337 = vmatpush1.bf16.msra.mxu1 %v7293_v13  ;;  %v7380_v12 = vld [vmem:[#allocation2 + $0xd80] ss:$16 sps:$4 sm:$0xff]   ;;  %v7383_v13 = vld [vmem:[#allocation2 + $0xd88] ss:$16 sps:$4 sm:$0xff]  }
 0x1e4   :  { %3928 = vmatprep.subr.bf16.mxu0 %v7298_v14  ;;  %4338 = vmatprep.subr.bf16.mxu1 %v7301_v15  ;;  %v7388_v14 = vld [vmem:[#allocation2 + $0xda4] ss:$16 sps:$4 sm:$0xff]   ;;  %v7391_v15 = vld [vmem:[#allocation2 + $0xdac] ss:$16 sps:$4 sm:$0xff]  }
 0x1e7   :  { %3929 = vmatpush1.bf16.msra.mxu0 %v7296_v16  ;;  %4339 = vmatpush1.bf16.msra.mxu1 %v7299_v17  ;;  %v7386_v16 = vld [vmem:[#allocation2 + $0xda0] ss:$16 sps:$4 sm:$0xff]   ;;  %v7389_v17 = vld [vmem:[#allocation2 + $0xda8] ss:$16 sps:$4 sm:$0xff]  }
 0x1e8   :  { %3930 = vmatprep.subr.bf16.mxu0 %v7304_v18  ;;  %4340 = vmatprep.subr.bf16.mxu1 %v7307_v19  ;;  %v7394_v18 = vld [vmem:[#allocation2 + $0xdc4] ss:$16 sps:$4 sm:$0xff]   ;;  %v7397_v19 = vld [vmem:[#allocation2 + $0xdcc] ss:$16 sps:$4 sm:$0xff]  }
 0x1eb   :  { %3931 = vmatpush1.bf16.msra.mxu0 %v7302_v20  ;;  %4341 = vmatpush1.bf16.msra.mxu1 %v7305_v21  ;;  %v7392_v20 = vld [vmem:[#allocation2 + $0xdc0] ss:$16 sps:$4 sm:$0xff]   ;;  %v7395_v21 = vld [vmem:[#allocation2 + $0xdc8] ss:$16 sps:$4 sm:$0xff]  }
 0x1ec   :  { %3941 = vmatprep.subr.bf16.mxu0 %v7310_v22  ;;  %4351 = vmatprep.subr.bf16.mxu1 %v7313_v24  ;;  %v7400_v22 = vld [vmem:[#allocation2 + $0xde4] ss:$16 sps:$4 sm:$0xff]   ;;  %v7398_v24 = vld [vmem:[#allocation2 + $0xde0] ss:$16 sps:$4 sm:$0xff]  }
 0x1ee   :  { %3933 = vmatmul.mubr.bf16.vlgmr.msra.gmra.mrb[0].mxu0 %v132_v26  ;;  %4343 = vmatmul.mubr.bf16.vlgmr.msra.gmra.mrb[0].mxu1 %v132_v26  ;;  %v115_v26 = vld [vmem:[%s8192_s0 + $0x60] sm:$0xff] }
 0x1ef   :  { %3942 = vmatpush1.bf16.msra.mxu0 %v7308_v27  ;;  %4352 = vmatpush1.bf16.msra.mxu1 %v7311_v28  ;;  %v7406_v27 = vld [vmem:[#allocation2 + $0xe04] ss:$16 sps:$4 sm:$0xff]   ;;  %v7409_v28 = vld [vmem:[#allocation2 + $0xe0c] ss:$16 sps:$4 sm:$0xff]  }
 0x1f0   :  { %3943 = vmatprep.subr.bf16.mxu0 %v7316_v29  ;;  %4353 = vmatprep.subr.bf16.mxu1 %v7319_v30  ;;  %v7404_v29 = vld [vmem:[#allocation2 + $0xe00] ss:$16 sps:$4 sm:$0xff]   ;;  %v134_v30 = vpack.c.bf16 %v115_v26, %v115_v26  ;;  %v7496_v26 = vld [vmem:[#allocation2 + $0xfe4] ss:$16 sps:$4 sm:$0xff]  }
 0x1f1   :  { %3973 = vmatprep.mubr.bf16.mxu0 %v135_v31  ;;  %4383 = vmatprep.mubr.bf16.mxu1 %v135_v31  ;;  %v118_v31 = vld [vmem:[%s8192_s0 + $0x78] sm:$0xff] }
 0x1f3   :  { %3944 = vmatpush1.bf16.msra.mxu0 %v7314_v32  ;;  %4354 = vmatpush1.bf16.msra.mxu1 %v7317_v33  ;;  %v7407_v32 = vld [vmem:[#allocation2 + $0xe08] ss:$16 sps:$4 sm:$0xff]   ;;  %v7412_v33 = vld [vmem:[#allocation2 + $0xe24] ss:$16 sps:$4 sm:$0xff]  }
 0x1f4   :  { %3945 = vmatprep.subr.bf16.mxu0 %v7322_v34  ;;  %4355 = vmatprep.subr.bf16.mxu1 %v7325_v35  ;;  %v7415_v34 = vld [vmem:[#allocation2 + $0xe2c] ss:$16 sps:$4 sm:$0xff]   ;;  %v137_v35 = vpack.c.bf16 %v118_v31, %v118_v31  ;;  %v7502_v31 = vld [vmem:[#allocation2 + $0x1004] ss:$16 sps:$4 sm:$0xff]  }
 0x1f7   :  { %3946 = vmatpush1.bf16.msra.mxu0 %v7320_v36  ;;  %4356 = vmatpush1.bf16.msra.mxu1 %v7323_v37  ;;  %v7410_v36 = vld [vmem:[#allocation2 + $0xe20] ss:$16 sps:$4 sm:$0xff]   ;;  %v7413_v37 = vld [vmem:[#allocation2 + $0xe28] ss:$16 sps:$4 sm:$0xff]  }
 0x1f8   :  { %3947 = vmatprep.subr.bf16.mxu0 %v7328_v38  ;;  %4357 = vmatprep.subr.bf16.mxu1 %v7331_v39  ;;  %v7418_v38 = vld [vmem:[#allocation2 + $0xe44] ss:$16 sps:$4 sm:$0xff]   ;;  %v7421_v39 = vld [vmem:[#allocation2 + $0xe4c] ss:$16 sps:$4 sm:$0xff]  }
 0x1fb   :  { %3948 = vmatpush1.bf16.msra.mxu0 %v7326_v40  ;;  %4358 = vmatpush1.bf16.msra.mxu1 %v7329_v41  ;;  %v7416_v40 = vld [vmem:[#allocation2 + $0xe40] ss:$16 sps:$4 sm:$0xff]   ;;  %v7419_v41 = vld [vmem:[#allocation2 + $0xe48] ss:$16 sps:$4 sm:$0xff]  }
 0x1fc   :  { %3949 = vmatprep.subr.bf16.mxu0 %v7334_v42  ;;  %4359 = vmatprep.subr.bf16.mxu1 %v7337_v43  ;;  %v7424_v42 = vld [vmem:[#allocation2 + $0xe64] ss:$16 sps:$4 sm:$0xff]   ;;  %v7427_v43 = vld [vmem:[#allocation2 + $0xe6c] ss:$16 sps:$4 sm:$0xff]  }
 0x1ff   :  { %3950 = vmatpush1.bf16.msra.mxu0 %v7332_v44  ;;  %4360 = vmatpush1.bf16.msra.mxu1 %v7335_v45  ;;  %v7422_v44 = vld [vmem:[#allocation2 + $0xe60] ss:$16 sps:$4 sm:$0xff]   ;;  %v7425_v45 = vld [vmem:[#allocation2 + $0xe68] ss:$16 sps:$4 sm:$0xff]  }
 0x200   :  { %3951 = vmatprep.subr.bf16.mxu0 %v7340_v46  ;;  %4361 = vmatprep.subr.bf16.mxu1 %v7343_v47  ;;  %v7430_v46 = vld [vmem:[#allocation2 + $0xe84] ss:$16 sps:$4 sm:$0xff]   ;;  %v7433_v47 = vld [vmem:[#allocation2 + $0xe8c] ss:$16 sps:$4 sm:$0xff]  }
 0x203   :  { %3952 = vmatpush1.bf16.msra.mxu0 %v7338_v48  ;;  %4362 = vmatpush1.bf16.msra.mxu1 %v7341_v49  ;;  %v7428_v48 = vld [vmem:[#allocation2 + $0xe80] ss:$16 sps:$4 sm:$0xff]   ;;  %v7431_v49 = vld [vmem:[#allocation2 + $0xe88] ss:$16 sps:$4 sm:$0xff]  }
 0x204   :  { %3953 = vmatprep.subr.bf16.mxu0 %v7346_v50  ;;  %4363 = vmatprep.subr.bf16.mxu1 %v7349_v51  ;;  %v7436_v50 = vld [vmem:[#allocation2 + $0xea4] ss:$16 sps:$4 sm:$0xff]   ;;  %v7439_v51 = vld [vmem:[#allocation2 + $0xeac] ss:$16 sps:$4 sm:$0xff]  }
 0x207   :  { %3954 = vmatpush1.bf16.msra.mxu0 %v7344_v52  ;;  %4364 = vmatpush1.bf16.msra.mxu1 %v7347_v53  ;;  %v7434_v52 = vld [vmem:[#allocation2 + $0xea0] ss:$16 sps:$4 sm:$0xff]   ;;  %v7437_v53 = vld [vmem:[#allocation2 + $0xea8] ss:$16 sps:$4 sm:$0xff]  }
 0x208   :  { %3955 = vmatprep.subr.bf16.mxu0 %v7352_v54  ;;  %4365 = vmatprep.subr.bf16.mxu1 %v7355_v55  ;;  %v7442_v54 = vld [vmem:[#allocation2 + $0xec4] ss:$16 sps:$4 sm:$0xff]   ;;  %v7445_v55 = vld [vmem:[#allocation2 + $0xecc] ss:$16 sps:$4 sm:$0xff]  }
 0x20b   :  { %3956 = vmatpush1.bf16.msra.mxu0 %v7350_v56  ;;  %4366 = vmatpush1.bf16.msra.mxu1 %v7353_v57  ;;  %v7440_v56 = vld [vmem:[#allocation2 + $0xec0] ss:$16 sps:$4 sm:$0xff]   ;;  %v7443_v57 = vld [vmem:[#allocation2 + $0xec8] ss:$16 sps:$4 sm:$0xff]  }
 0x20c   :  { %3957 = vmatprep.subr.bf16.mxu0 %v7358_v58  ;;  %4367 = vmatprep.subr.bf16.mxu1 %v7361_v59  ;;  %v7448_v58 = vld [vmem:[#allocation2 + $0xee4] ss:$16 sps:$4 sm:$0xff]   ;;  %v7451_v59 = vld [vmem:[#allocation2 + $0xeec] ss:$16 sps:$4 sm:$0xff]  }
 0x20f   :  { %3958 = vmatpush1.bf16.msra.mxu0 %v7356_v60  ;;  %4368 = vmatpush1.bf16.msra.mxu1 %v7359_v61  ;;  %v7446_v60 = vld [vmem:[#allocation2 + $0xee0] ss:$16 sps:$4 sm:$0xff]   ;;  %v7449_v61 = vld [vmem:[#allocation2 + $0xee8] ss:$16 sps:$4 sm:$0xff]  }
 0x210   :  { %3959 = vmatprep.subr.bf16.mxu0 %v7364_v62  ;;  %4369 = vmatprep.subr.bf16.mxu1 %v7367_v63  ;;  %v7454_v62 = vld [vmem:[#allocation2 + $0xf04] ss:$16 sps:$4 sm:$0xff]   ;;  %v7457_v63 = vld [vmem:[#allocation2 + $0xf0c] ss:$16 sps:$4 sm:$0xff]  }
 0x213   :  { %3960 = vmatpush1.bf16.msra.mxu0 %v7362_v0  ;;  %4370 = vmatpush1.bf16.msra.mxu1 %v7365_v1  ;;  %v7452_v0 = vld [vmem:[#allocation2 + $0xf00] ss:$16 sps:$4 sm:$0xff]   ;;  %v7455_v1 = vld [vmem:[#allocation2 + $0xf08] ss:$16 sps:$4 sm:$0xff]  }
 0x214   :  { %3961 = vmatprep.subr.bf16.mxu0 %v7370_v2  ;;  %4371 = vmatprep.subr.bf16.mxu1 %v7373_v3  ;;  %v7460_v2 = vld [vmem:[#allocation2 + $0xf24] ss:$16 sps:$4 sm:$0xff]   ;;  %v7463_v3 = vld [vmem:[#allocation2 + $0xf2c] ss:$16 sps:$4 sm:$0xff]  }
 0x217   :  { %3962 = vmatpush1.bf16.msra.mxu0 %v7368_v4  ;;  %4372 = vmatpush1.bf16.msra.mxu1 %v7371_v5  ;;  %v7458_v4 = vld [vmem:[#allocation2 + $0xf20] ss:$16 sps:$4 sm:$0xff]   ;;  %v7461_v5 = vld [vmem:[#allocation2 + $0xf28] ss:$16 sps:$4 sm:$0xff]  }
 0x218   :  { %3963 = vmatprep.subr.bf16.mxu0 %v7376_v6  ;;  %4373 = vmatprep.subr.bf16.mxu1 %v7379_v7  ;;  %v7466_v6 = vld [vmem:[#allocation2 + $0xf44] ss:$16 sps:$4 sm:$0xff]   ;;  %v7469_v7 = vld [vmem:[#allocation2 + $0xf4c] ss:$16 sps:$4 sm:$0xff]  }
 0x21b   :  { %3964 = vmatpush1.bf16.msra.mxu0 %v7374_v8  ;;  %4374 = vmatpush1.bf16.msra.mxu1 %v7377_v9  ;;  %v7464_v8 = vld [vmem:[#allocation2 + $0xf40] ss:$16 sps:$4 sm:$0xff]   ;;  %v7467_v9 = vld [vmem:[#allocation2 + $0xf48] ss:$16 sps:$4 sm:$0xff]  }
 0x21c   :  { %3965 = vmatprep.subr.bf16.mxu0 %v7382_v10  ;;  %4375 = vmatprep.subr.bf16.mxu1 %v7385_v11  ;;  %v7472_v10 = vld [vmem:[#allocation2 + $0xf64] ss:$16 sps:$4 sm:$0xff]   ;;  %v7475_v11 = vld [vmem:[#allocation2 + $0xf6c] ss:$16 sps:$4 sm:$0xff]  }
 0x21f   :  { %3966 = vmatpush1.bf16.msra.mxu0 %v7380_v12  ;;  %4376 = vmatpush1.bf16.msra.mxu1 %v7383_v13  ;;  %v7470_v12 = vld [vmem:[#allocation2 + $0xf60] ss:$16 sps:$4 sm:$0xff]   ;;  %v7473_v13 = vld [vmem:[#allocation2 + $0xf68] ss:$16 sps:$4 sm:$0xff]  }
 0x220   :  { %3967 = vmatprep.subr.bf16.mxu0 %v7388_v14  ;;  %4377 = vmatprep.subr.bf16.mxu1 %v7391_v15  ;;  %v7478_v14 = vld [vmem:[#allocation2 + $0xf84] ss:$16 sps:$4 sm:$0xff]   ;;  %v7481_v15 = vld [vmem:[#allocation2 + $0xf8c] ss:$16 sps:$4 sm:$0xff]  }
 0x223   :  { %3968 = vmatpush1.bf16.msra.mxu0 %v7386_v16  ;;  %4378 = vmatpush1.bf16.msra.mxu1 %v7389_v17  ;;  %v7476_v16 = vld [vmem:[#allocation2 + $0xf80] ss:$16 sps:$4 sm:$0xff]   ;;  %v7479_v17 = vld [vmem:[#allocation2 + $0xf88] ss:$16 sps:$4 sm:$0xff]  }
 0x224   :  { %3969 = vmatprep.subr.bf16.mxu0 %v7394_v18  ;;  %4379 = vmatprep.subr.bf16.mxu1 %v7397_v19  ;;  %v7484_v18 = vld [vmem:[#allocation2 + $0xfa4] ss:$16 sps:$4 sm:$0xff]   ;;  %v7487_v19 = vld [vmem:[#allocation2 + $0xfac] ss:$16 sps:$4 sm:$0xff]  }
 0x227   :  { %3970 = vmatpush1.bf16.msra.mxu0 %v7392_v20  ;;  %4380 = vmatpush1.bf16.msra.mxu1 %v7395_v21  ;;  %v7482_v20 = vld [vmem:[#allocation2 + $0xfa0] ss:$16 sps:$4 sm:$0xff]   ;;  %v7485_v21 = vld [vmem:[#allocation2 + $0xfa8] ss:$16 sps:$4 sm:$0xff]  }
 0x228   :  { %3971 = vmatprep.subr.bf16.mxu0 %v7400_v22  ;;  %4381 = vmatprep.subr.bf16.mxu1 %v7403_v23  ;;  %v7490_v22 = vld [vmem:[#allocation2 + $0xfc4] ss:$16 sps:$4 sm:$0xff]   ;;  %v7493_v23 = vld [vmem:[#allocation2 + $0xfcc] ss:$16 sps:$4 sm:$0xff]  }
 0x22b   :  { %3972 = vmatpush1.bf16.msra.mxu0 %v7398_v24  ;;  %4382 = vmatpush1.bf16.msra.mxu1 %v7401_v25  ;;  %v7488_v24 = vld [vmem:[#allocation2 + $0xfc0] ss:$16 sps:$4 sm:$0xff]   ;;  %v7491_v25 = vld [vmem:[#allocation2 + $0xfc8] ss:$16 sps:$4 sm:$0xff]  }
 0x22c   :  { %3982 = vmatprep.subr.bf16.mxu0 %v7406_v27  ;;  %4392 = vmatprep.subr.bf16.mxu1 %v7409_v28  ;;  %v7499_v27 = vld [vmem:[#allocation2 + $0xfec] ss:$16 sps:$4 sm:$0xff]   ;;  %v7494_v28 = vld [vmem:[#allocation2 + $0xfe0] ss:$16 sps:$4 sm:$0xff]  }
 0x22e   :  { %3974 = vmatmul.mubr.bf16.vlgmr.msra.gmra.mrb[0].mxu0 %v134_v30  ;;  %4384 = vmatmul.mubr.bf16.vlgmr.msra.gmra.mrb[0].mxu1 %v134_v30  ;;  %v117_v30 = vld [vmem:[%s8192_s0 + $0x70] sm:$0xff] }
 0x22f   :  { %3983 = vmatpush1.bf16.msra.mxu0 %v7404_v29  ;;  %4393 = vmatpush1.bf16.msra.mxu1 %v7407_v32  ;;  %v7497_v29 = vld [vmem:[#allocation2 + $0xfe8] ss:$16 sps:$4 sm:$0xff]   ;;  %v7505_v32 = vld [vmem:[#allocation2 + $0x100c] ss:$16 sps:$4 sm:$0xff]  }
 0x230   :  { %3984 = vmatprep.subr.bf16.mxu0 %v7412_v33  ;;  %4394 = vmatprep.subr.bf16.mxu1 %v7415_v34  ;;  %v136_v33 = vpack.c.bf16 %v117_v30, %v117_v30  ;;  %v120_v34 = vld [vmem:[%s8192_s0 + $0x88] sm:$0xff]  ;;  %v7592_v30 = vld [vmem:[#allocation2 + $0x11e4] ss:$16 sps:$4 sm:$0xff]  }
 0x231   :  { %4014 = vmatprep.mubr.bf16.mxu0 %v137_v35  ;;  %4424 = vmatprep.mubr.bf16.mxu1 %v137_v35  ;;  %v7500_v35 = vld [vmem:[#allocation2 + $0x1000] ss:$16 sps:$4 sm:$0xff]  }
 0x233   :  { %3985 = vmatpush1.bf16.msra.mxu0 %v7410_v36  ;;  %4395 = vmatpush1.bf16.msra.mxu1 %v7413_v37  ;;  %v7503_v36 = vld [vmem:[#allocation2 + $0x1008] ss:$16 sps:$4 sm:$0xff]   ;;  %v7508_v37 = vld [vmem:[#allocation2 + $0x1024] ss:$16 sps:$4 sm:$0xff]  }
 0x234   :  { %3986 = vmatprep.subr.bf16.mxu0 %v7418_v38  ;;  %4396 = vmatprep.subr.bf16.mxu1 %v7421_v39  ;;  %v7511_v38 = vld [vmem:[#allocation2 + $0x102c] ss:$16 sps:$4 sm:$0xff]   ;;  %v139_v39 = vpack.c.bf16 %v120_v34, %v120_v34  ;;  %v119_v34 = vld [vmem:[%s8192_s0 + $0x80] sm:$0xff] }
 0x237   :  { %3987 = vmatpush1.bf16.msra.mxu0 %v7416_v40  ;;  %4397 = vmatpush1.bf16.msra.mxu1 %v7419_v41  ;;  %v7506_v40 = vld [vmem:[#allocation2 + $0x1020] ss:$16 sps:$4 sm:$0xff]   ;;  %v7509_v41 = vld [vmem:[#allocation2 + $0x1028] ss:$16 sps:$4 sm:$0xff]  }
 0x238   :  { %3988 = vmatprep.subr.bf16.mxu0 %v7424_v42  ;;  %4398 = vmatprep.subr.bf16.mxu1 %v7427_v43  ;;  %v7514_v42 = vld [vmem:[#allocation2 + $0x1044] ss:$16 sps:$4 sm:$0xff]   ;;  %v7517_v43 = vld [vmem:[#allocation2 + $0x104c] ss:$16 sps:$4 sm:$0xff]  }
 0x23b   :  { %3989 = vmatpush1.bf16.msra.mxu0 %v7422_v44  ;;  %4399 = vmatpush1.bf16.msra.mxu1 %v7425_v45  ;;  %v7512_v44 = vld [vmem:[#allocation2 + $0x1040] ss:$16 sps:$4 sm:$0xff]   ;;  %v7515_v45 = vld [vmem:[#allocation2 + $0x1048] ss:$16 sps:$4 sm:$0xff]  }
 0x23c   :  { %3990 = vmatprep.subr.bf16.mxu0 %v7430_v46  ;;  %4400 = vmatprep.subr.bf16.mxu1 %v7433_v47  ;;  %v7520_v46 = vld [vmem:[#allocation2 + $0x1064] ss:$16 sps:$4 sm:$0xff]   ;;  %v7523_v47 = vld [vmem:[#allocation2 + $0x106c] ss:$16 sps:$4 sm:$0xff]  }
 0x23f   :  { %3991 = vmatpush1.bf16.msra.mxu0 %v7428_v48  ;;  %4401 = vmatpush1.bf16.msra.mxu1 %v7431_v49  ;;  %v7518_v48 = vld [vmem:[#allocation2 + $0x1060] ss:$16 sps:$4 sm:$0xff]   ;;  %v7521_v49 = vld [vmem:[#allocation2 + $0x1068] ss:$16 sps:$4 sm:$0xff]  }
 0x240   :  { %3992 = vmatprep.subr.bf16.mxu0 %v7436_v50  ;;  %4402 = vmatprep.subr.bf16.mxu1 %v7439_v51  ;;  %v7526_v50 = vld [vmem:[#allocation2 + $0x1084] ss:$16 sps:$4 sm:$0xff]   ;;  %v7529_v51 = vld [vmem:[#allocation2 + $0x108c] ss:$16 sps:$4 sm:$0xff]  }
 0x243   :  { %3993 = vmatpush1.bf16.msra.mxu0 %v7434_v52  ;;  %4403 = vmatpush1.bf16.msra.mxu1 %v7437_v53  ;;  %v7524_v52 = vld [vmem:[#allocation2 + $0x1080] ss:$16 sps:$4 sm:$0xff]   ;;  %v7527_v53 = vld [vmem:[#allocation2 + $0x1088] ss:$16 sps:$4 sm:$0xff]  }
 0x244   :  { %3994 = vmatprep.subr.bf16.mxu0 %v7442_v54  ;;  %4404 = vmatprep.subr.bf16.mxu1 %v7445_v55  ;;  %v7532_v54 = vld [vmem:[#allocation2 + $0x10a4] ss:$16 sps:$4 sm:$0xff]   ;;  %v7535_v55 = vld [vmem:[#allocation2 + $0x10ac] ss:$16 sps:$4 sm:$0xff]  }
 0x247   :  { %3995 = vmatpush1.bf16.msra.mxu0 %v7440_v56  ;;  %4405 = vmatpush1.bf16.msra.mxu1 %v7443_v57  ;;  %v7530_v56 = vld [vmem:[#allocation2 + $0x10a0] ss:$16 sps:$4 sm:$0xff]   ;;  %v7533_v57 = vld [vmem:[#allocation2 + $0x10a8] ss:$16 sps:$4 sm:$0xff]  }
 0x248   :  { %3996 = vmatprep.subr.bf16.mxu0 %v7448_v58  ;;  %4406 = vmatprep.subr.bf16.mxu1 %v7451_v59  ;;  %v7538_v58 = vld [vmem:[#allocation2 + $0x10c4] ss:$16 sps:$4 sm:$0xff]   ;;  %v7541_v59 = vld [vmem:[#allocation2 + $0x10cc] ss:$16 sps:$4 sm:$0xff]  }
 0x24b   :  { %3997 = vmatpush1.bf16.msra.mxu0 %v7446_v60  ;;  %4407 = vmatpush1.bf16.msra.mxu1 %v7449_v61  ;;  %v7536_v60 = vld [vmem:[#allocation2 + $0x10c0] ss:$16 sps:$4 sm:$0xff]   ;;  %v7539_v61 = vld [vmem:[#allocation2 + $0x10c8] ss:$16 sps:$4 sm:$0xff]  }
 0x24c   :  { %3998 = vmatprep.subr.bf16.mxu0 %v7454_v62  ;;  %4408 = vmatprep.subr.bf16.mxu1 %v7457_v63  ;;  %v7544_v62 = vld [vmem:[#allocation2 + $0x10e4] ss:$16 sps:$4 sm:$0xff]   ;;  %v7547_v63 = vld [vmem:[#allocation2 + $0x10ec] ss:$16 sps:$4 sm:$0xff]  }
 0x24f   :  { %3999 = vmatpush1.bf16.msra.mxu0 %v7452_v0  ;;  %4409 = vmatpush1.bf16.msra.mxu1 %v7455_v1  ;;  %v7542_v0 = vld [vmem:[#allocation2 + $0x10e0] ss:$16 sps:$4 sm:$0xff]   ;;  %v7545_v1 = vld [vmem:[#allocation2 + $0x10e8] ss:$16 sps:$4 sm:$0xff]  }
 0x250   :  { %4000 = vmatprep.subr.bf16.mxu0 %v7460_v2  ;;  %4410 = vmatprep.subr.bf16.mxu1 %v7463_v3  ;;  %v7550_v2 = vld [vmem:[#allocation2 + $0x1104] ss:$16 sps:$4 sm:$0xff]   ;;  %v7553_v3 = vld [vmem:[#allocation2 + $0x110c] ss:$16 sps:$4 sm:$0xff]  }
 0x253   :  { %4001 = vmatpush1.bf16.msra.mxu0 %v7458_v4  ;;  %4411 = vmatpush1.bf16.msra.mxu1 %v7461_v5  ;;  %v7548_v4 = vld [vmem:[#allocation2 + $0x1100] ss:$16 sps:$4 sm:$0xff]   ;;  %v7551_v5 = vld [vmem:[#allocation2 + $0x1108] ss:$16 sps:$4 sm:$0xff]  }
 0x254   :  { %4002 = vmatprep.subr.bf16.mxu0 %v7466_v6  ;;  %4412 = vmatprep.subr.bf16.mxu1 %v7469_v7  ;;  %v7556_v6 = vld [vmem:[#allocation2 + $0x1124] ss:$16 sps:$4 sm:$0xff]   ;;  %v7559_v7 = vld [vmem:[#allocation2 + $0x112c] ss:$16 sps:$4 sm:$0xff]  }
 0x257   :  { %4003 = vmatpush1.bf16.msra.mxu0 %v7464_v8  ;;  %4413 = vmatpush1.bf16.msra.mxu1 %v7467_v9  ;;  %v7554_v8 = vld [vmem:[#allocation2 + $0x1120] ss:$16 sps:$4 sm:$0xff]   ;;  %v7557_v9 = vld [vmem:[#allocation2 + $0x1128] ss:$16 sps:$4 sm:$0xff]  }
 0x258   :  { %4004 = vmatprep.subr.bf16.mxu0 %v7472_v10  ;;  %4414 = vmatprep.subr.bf16.mxu1 %v7475_v11  ;;  %v7562_v10 = vld [vmem:[#allocation2 + $0x1144] ss:$16 sps:$4 sm:$0xff]   ;;  %v7565_v11 = vld [vmem:[#allocation2 + $0x114c] ss:$16 sps:$4 sm:$0xff]  }
 0x25b   :  { %4005 = vmatpush1.bf16.msra.mxu0 %v7470_v12  ;;  %4415 = vmatpush1.bf16.msra.mxu1 %v7473_v13  ;;  %v7560_v12 = vld [vmem:[#allocation2 + $0x1140] ss:$16 sps:$4 sm:$0xff]   ;;  %v7563_v13 = vld [vmem:[#allocation2 + $0x1148] ss:$16 sps:$4 sm:$0xff]  }
 0x25c   :  { %4006 = vmatprep.subr.bf16.mxu0 %v7478_v14  ;;  %4416 = vmatprep.subr.bf16.mxu1 %v7481_v15  ;;  %v7568_v14 = vld [vmem:[#allocation2 + $0x1164] ss:$16 sps:$4 sm:$0xff]   ;;  %v7571_v15 = vld [vmem:[#allocation2 + $0x116c] ss:$16 sps:$4 sm:$0xff]  }
 0x25f   :  { %4007 = vmatpush1.bf16.msra.mxu0 %v7476_v16  ;;  %4417 = vmatpush1.bf16.msra.mxu1 %v7479_v17  ;;  %v7566_v16 = vld [vmem:[#allocation2 + $0x1160] ss:$16 sps:$4 sm:$0xff]   ;;  %v7569_v17 = vld [vmem:[#allocation2 + $0x1168] ss:$16 sps:$4 sm:$0xff]  }
 0x260   :  { %4008 = vmatprep.subr.bf16.mxu0 %v7484_v18  ;;  %4418 = vmatprep.subr.bf16.mxu1 %v7487_v19  ;;  %v7574_v18 = vld [vmem:[#allocation2 + $0x1184] ss:$16 sps:$4 sm:$0xff]   ;;  %v7577_v19 = vld [vmem:[#allocation2 + $0x118c] ss:$16 sps:$4 sm:$0xff]  }
 0x263   :  { %4009 = vmatpush1.bf16.msra.mxu0 %v7482_v20  ;;  %4419 = vmatpush1.bf16.msra.mxu1 %v7485_v21  ;;  %v7572_v20 = vld [vmem:[#allocation2 + $0x1180] ss:$16 sps:$4 sm:$0xff]   ;;  %v7575_v21 = vld [vmem:[#allocation2 + $0x1188] ss:$16 sps:$4 sm:$0xff]  }
 0x264   :  { %4010 = vmatprep.subr.bf16.mxu0 %v7490_v22  ;;  %4420 = vmatprep.subr.bf16.mxu1 %v7493_v23  ;;  %v7580_v22 = vld [vmem:[#allocation2 + $0x11a4] ss:$16 sps:$4 sm:$0xff]   ;;  %v7583_v23 = vld [vmem:[#allocation2 + $0x11ac] ss:$16 sps:$4 sm:$0xff]  }
 0x267   :  { %4011 = vmatpush1.bf16.msra.mxu0 %v7488_v24  ;;  %4421 = vmatpush1.bf16.msra.mxu1 %v7491_v25  ;;  %v7578_v24 = vld [vmem:[#allocation2 + $0x11a0] ss:$16 sps:$4 sm:$0xff]   ;;  %v7581_v25 = vld [vmem:[#allocation2 + $0x11a8] ss:$16 sps:$4 sm:$0xff]  }
 0x268   :  { %4012 = vmatprep.subr.bf16.mxu0 %v7496_v26  ;;  %4422 = vmatprep.subr.bf16.mxu1 %v7499_v27  ;;  %v7586_v26 = vld [vmem:[#allocation2 + $0x11c4] ss:$16 sps:$4 sm:$0xff]   ;;  %v7589_v27 = vld [vmem:[#allocation2 + $0x11cc] ss:$16 sps:$4 sm:$0xff]  }
 0x26b   :  { %4013 = vmatpush1.bf16.msra.mxu0 %v7494_v28  ;;  %4423 = vmatpush1.bf16.msra.mxu1 %v7497_v29  ;;  %v7584_v28 = vld [vmem:[#allocation2 + $0x11c0] ss:$16 sps:$4 sm:$0xff]   ;;  %v7587_v29 = vld [vmem:[#allocation2 + $0x11c8] ss:$16 sps:$4 sm:$0xff]  }
 0x26c   :  { %4023 = vmatprep.subr.bf16.mxu0 %v7502_v31  ;;  %4433 = vmatprep.subr.bf16.mxu1 %v7505_v32  ;;  %v7595_v31 = vld [vmem:[#allocation2 + $0x11ec] ss:$16 sps:$4 sm:$0xff]   ;;  %v7590_v32 = vld [vmem:[#allocation2 + $0x11e0] ss:$16 sps:$4 sm:$0xff]  }
 0x26e   :  { %4015 = vmatmul.mubr.bf16.vlgmr.msra.gmra.mrb[0].mxu0 %v136_v33  ;;  %4425 = vmatmul.mubr.bf16.vlgmr.msra.gmra.mrb[0].mxu1 %v136_v33  ;;  %v7593_v33 = vld [vmem:[#allocation2 + $0x11e8] ss:$16 sps:$4 sm:$0xff]  }
 0x26f   :  { %4024 = vmatpush1.bf16.msra.mxu0 %v7500_v35  ;;  %4434 = vmatpush1.bf16.msra.mxu1 %v7503_v36  ;;  %v7598_v35 = vld [vmem:[#allocation2 + $0x1204] ss:$16 sps:$4 sm:$0xff]   ;;  %v7601_v36 = vld [vmem:[#allocation2 + $0x120c] ss:$16 sps:$4 sm:$0xff]  }
 0x270   :  { %4025 = vmatprep.subr.bf16.mxu0 %v7508_v37  ;;  %4435 = vmatprep.subr.bf16.mxu1 %v7511_v38  ;;  %v138_v37 = vpack.c.bf16 %v119_v34, %v119_v34  ;;  %v7596_v38 = vld [vmem:[#allocation2 + $0x1200] ss:$16 sps:$4 sm:$0xff]   ;;  %v7683_v34 = vld [vmem:[#allocation6 + $0x168] ss:$16 sps:$4 sm:$0xff]  }
 0x271   :  { %4055 = vmatprep.mubr.bf16.mxu0 %v139_v39  ;;  %4465 = vmatprep.mubr.bf16.mxu1 %v139_v39  ;;  %v7599_v39 = vld [vmem:[#allocation2 + $0x1208] ss:$16 sps:$4 sm:$0xff]  }
 0x273   :  { %4026 = vmatpush1.bf16.msra.mxu0 %v7506_v40  ;;  %4436 = vmatpush1.bf16.msra.mxu1 %v7509_v41  ;;  %v7604_v40 = vld [vmem:[#allocation2 + $0x1224] ss:$16 sps:$4 sm:$0xff]   ;;  %v7607_v41 = vld [vmem:[#allocation2 + $0x122c] ss:$16 sps:$4 sm:$0xff]  }
 0x274   :  { %4027 = vmatprep.subr.bf16.mxu0 %v7514_v42  ;;  %4437 = vmatprep.subr.bf16.mxu1 %v7517_v43  ;;  %v7602_v42 = vld [vmem:[#allocation2 + $0x1220] ss:$16 sps:$4 sm:$0xff]   ;;  %v7605_v43 = vld [vmem:[#allocation2 + $0x1228] ss:$16 sps:$4 sm:$0xff]  }
 0x277   :  { %4028 = vmatpush1.bf16.msra.mxu0 %v7512_v44  ;;  %4438 = vmatpush1.bf16.msra.mxu1 %v7515_v45  ;;  %v7610_v44 = vld [vmem:[#allocation2 + $0x1244] ss:$16 sps:$4 sm:$0xff]   ;;  %v7613_v45 = vld [vmem:[#allocation2 + $0x124c] ss:$16 sps:$4 sm:$0xff]  }
 0x278   :  { %4029 = vmatprep.subr.bf16.mxu0 %v7520_v46  ;;  %4439 = vmatprep.subr.bf16.mxu1 %v7523_v47  ;;  %v7988_v46 = vmov 0   ;;  %v7608_v47 = vld [vmem:[#allocation2 + $0x1240] ss:$16 sps:$4 sm:$0xff]  }
 0x27b   :  { %4030 = vmatpush1.bf16.msra.mxu0 %v7518_v48  ;;  %4440 = vmatpush1.bf16.msra.mxu1 %v7521_v49  ;;  %v7611_v48 = vld [vmem:[#allocation2 + $0x1248] ss:$16 sps:$4 sm:$0xff]   ;;  %v121_v49 = vld [vmem:[%s8192_s0 + $0x90] sm:$0xff] }
 0x27c   :  { %4031 = vmatprep.subr.bf16.mxu0 %v7526_v50  ;;  %4441 = vmatprep.subr.bf16.mxu1 %v7529_v51  ;;  %v7616_v50 = vld [vmem:[#allocation6 + $0x4] ss:$16 sps:$4 sm:$0xff]   ;;  %v7619_v51 = vld [vmem:[#allocation6 + $0xc] ss:$16 sps:$4 sm:$0xff]  }
 0x27f   :  { %4032 = vmatpush1.bf16.msra.mxu0 %v7524_v52  ;;  %4442 = vmatpush1.bf16.msra.mxu1 %v7527_v53  ;;  %v140_v52 = vpack.c.bf16 %v121_v49, %v121_v49  ;;  %v7614_v53 = vld [vmem:[#allocation6] ss:$16 sps:$4 sm:$0xff]  }
 0x280   :  { %4033 = vmatprep.subr.bf16.mxu0 %v7532_v54  ;;  %4443 = vmatprep.subr.bf16.mxu1 %v7535_v55  ;;  %v7617_v54 = vld [vmem:[#allocation6 + $0x8] ss:$16 sps:$4 sm:$0xff]   ;;  %v7622_v55 = vld [vmem:[#allocation6 + $0x24] ss:$16 sps:$4 sm:$0xff]   ;;  %v7704_v49 = vld [vmem:[#allocation6 + $0x1e0] ss:$16 sps:$4 sm:$0xff]  }
 0x283   :  { %4034 = vmatpush1.bf16.msra.mxu0 %v7530_v56  ;;  %4444 = vmatpush1.bf16.msra.mxu1 %v7533_v57  ;;  %v7625_v56 = vld [vmem:[#allocation6 + $0x2c] ss:$16 sps:$4 sm:$0xff]   ;;  %v7620_v57 = vld [vmem:[#allocation6 + $0x20] ss:$16 sps:$4 sm:$0xff]  }
 0x284   :  { %4035 = vmatprep.subr.bf16.mxu0 %v7538_v58  ;;  %4445 = vmatprep.subr.bf16.mxu1 %v7541_v59  ;;  %v7623_v58 = vld [vmem:[#allocation6 + $0x28] ss:$16 sps:$4 sm:$0xff]   ;;  %v7628_v59 = vld [vmem:[#allocation6 + $0x44] ss:$16 sps:$4 sm:$0xff]  }
 0x287   :  { %4036 = vmatpush1.bf16.msra.mxu0 %v7536_v60  ;;  %4446 = vmatpush1.bf16.msra.mxu1 %v7539_v61  ;;  %v7631_v60 = vld [vmem:[#allocation6 + $0x4c] ss:$16 sps:$4 sm:$0xff]   ;;  %v7626_v61 = vld [vmem:[#allocation6 + $0x40] ss:$16 sps:$4 sm:$0xff]  }
 0x288   :  { %4037 = vmatprep.subr.bf16.mxu0 %v7544_v62  ;;  %4447 = vmatprep.subr.bf16.mxu1 %v7547_v63  ;;  %v7629_v62 = vld [vmem:[#allocation6 + $0x48] ss:$16 sps:$4 sm:$0xff]   ;;  %v7634_v63 = vld [vmem:[#allocation6 + $0x64] ss:$16 sps:$4 sm:$0xff]  }
 0x28b   :  { %4038 = vmatpush1.bf16.msra.mxu0 %v7542_v0  ;;  %4448 = vmatpush1.bf16.msra.mxu1 %v7545_v1  ;;  %v7637_v0 = vld [vmem:[#allocation6 + $0x6c] ss:$16 sps:$4 sm:$0xff]   ;;  %v7632_v1 = vld [vmem:[#allocation6 + $0x60] ss:$16 sps:$4 sm:$0xff]  }
 0x28c   :  { %4039 = vmatprep.subr.bf16.mxu0 %v7550_v2  ;;  %4449 = vmatprep.subr.bf16.mxu1 %v7553_v3  ;;  %v7635_v2 = vld [vmem:[#allocation6 + $0x68] ss:$16 sps:$4 sm:$0xff]   ;;  %v7640_v3 = vld [vmem:[#allocation6 + $0x84] ss:$16 sps:$4 sm:$0xff]  }
 0x28f   :  { %4040 = vmatpush1.bf16.msra.mxu0 %v7548_v4  ;;  %4450 = vmatpush1.bf16.msra.mxu1 %v7551_v5  ;;  %v7643_v4 = vld [vmem:[#allocation6 + $0x8c] ss:$16 sps:$4 sm:$0xff]   ;;  %v7638_v5 = vld [vmem:[#allocation6 + $0x80] ss:$16 sps:$4 sm:$0xff]  }
 0x290   :  { %4041 = vmatprep.subr.bf16.mxu0 %v7556_v6  ;;  %4451 = vmatprep.subr.bf16.mxu1 %v7559_v7  ;;  %v7641_v6 = vld [vmem:[#allocation6 + $0x88] ss:$16 sps:$4 sm:$0xff]   ;;  %v7646_v7 = vld [vmem:[#allocation6 + $0xa4] ss:$16 sps:$4 sm:$0xff]  }
 0x293   :  { %4042 = vmatpush1.bf16.msra.mxu0 %v7554_v8  ;;  %4452 = vmatpush1.bf16.msra.mxu1 %v7557_v9  ;;  %v7649_v8 = vld [vmem:[#allocation6 + $0xac] ss:$16 sps:$4 sm:$0xff]   ;;  %v7644_v9 = vld [vmem:[#allocation6 + $0xa0] ss:$16 sps:$4 sm:$0xff]  }
 0x294   :  { %4043 = vmatprep.subr.bf16.mxu0 %v7562_v10  ;;  %4453 = vmatprep.subr.bf16.mxu1 %v7565_v11  ;;  %v7647_v10 = vld [vmem:[#allocation6 + $0xa8] ss:$16 sps:$4 sm:$0xff]   ;;  %v7652_v11 = vld [vmem:[#allocation6 + $0xc4] ss:$16 sps:$4 sm:$0xff]  }
 0x297   :  { %4044 = vmatpush1.bf16.msra.mxu0 %v7560_v12  ;;  %4454 = vmatpush1.bf16.msra.mxu1 %v7563_v13  ;;  %v7655_v12 = vld [vmem:[#allocation6 + $0xcc] ss:$16 sps:$4 sm:$0xff]   ;;  %v7650_v13 = vld [vmem:[#allocation6 + $0xc0] ss:$16 sps:$4 sm:$0xff]  }
 0x298   :  { %4045 = vmatprep.subr.bf16.mxu0 %v7568_v14  ;;  %4455 = vmatprep.subr.bf16.mxu1 %v7571_v15  ;;  %v7653_v14 = vld [vmem:[#allocation6 + $0xc8] ss:$16 sps:$4 sm:$0xff]   ;;  %v7658_v15 = vld [vmem:[#allocation6 + $0xe4] ss:$16 sps:$4 sm:$0xff]  }
 0x29b   :  { %4046 = vmatpush1.bf16.msra.mxu0 %v7566_v16  ;;  %4456 = vmatpush1.bf16.msra.mxu1 %v7569_v17  ;;  %v7661_v16 = vld [vmem:[#allocation6 + $0xec] ss:$16 sps:$4 sm:$0xff]   ;;  %v7656_v17 = vld [vmem:[#allocation6 + $0xe0] ss:$16 sps:$4 sm:$0xff]  }
 0x29c   :  { %4047 = vmatprep.subr.bf16.mxu0 %v7574_v18  ;;  %4457 = vmatprep.subr.bf16.mxu1 %v7577_v19  ;;  %v7659_v18 = vld [vmem:[#allocation6 + $0xe8] ss:$16 sps:$4 sm:$0xff]   ;;  %v7664_v19 = vld [vmem:[#allocation6 + $0x104] ss:$16 sps:$4 sm:$0xff]  }
 0x29f   :  { %4048 = vmatpush1.bf16.msra.mxu0 %v7572_v20  ;;  %4458 = vmatpush1.bf16.msra.mxu1 %v7575_v21  ;;  %v7667_v20 = vld [vmem:[#allocation6 + $0x10c] ss:$16 sps:$4 sm:$0xff]   ;;  %v7662_v21 = vld [vmem:[#allocation6 + $0x100] ss:$16 sps:$4 sm:$0xff]  }
 0x2a0   :  { %4049 = vmatprep.subr.bf16.mxu0 %v7580_v22  ;;  %4459 = vmatprep.subr.bf16.mxu1 %v7583_v23  ;;  %v7665_v22 = vld [vmem:[#allocation6 + $0x108] ss:$16 sps:$4 sm:$0xff]   ;;  %v7670_v23 = vld [vmem:[#allocation6 + $0x124] ss:$16 sps:$4 sm:$0xff]  }
 0x2a3   :  { %4050 = vmatpush1.bf16.msra.mxu0 %v7578_v24  ;;  %4460 = vmatpush1.bf16.msra.mxu1 %v7581_v25  ;;  %v7673_v24 = vld [vmem:[#allocation6 + $0x12c] ss:$16 sps:$4 sm:$0xff]   ;;  %v7668_v25 = vld [vmem:[#allocation6 + $0x120] ss:$16 sps:$4 sm:$0xff]  }
 0x2a4   :  { %4051 = vmatprep.subr.bf16.mxu0 %v7586_v26  ;;  %4461 = vmatprep.subr.bf16.mxu1 %v7589_v27  ;;  %v7671_v26 = vld [vmem:[#allocation6 + $0x128] ss:$16 sps:$4 sm:$0xff]   ;;  %v7676_v27 = vld [vmem:[#allocation6 + $0x144] ss:$16 sps:$4 sm:$0xff]  }
 0x2a7   :  { %4052 = vmatpush1.bf16.msra.mxu0 %v7584_v28  ;;  %4462 = vmatpush1.bf16.msra.mxu1 %v7587_v29  ;;  %v7679_v28 = vld [vmem:[#allocation6 + $0x14c] ss:$16 sps:$4 sm:$0xff]   ;;  %v7674_v29 = vld [vmem:[#allocation6 + $0x140] ss:$16 sps:$4 sm:$0xff]  }
 0x2a8   :  { %4053 = vmatprep.subr.bf16.mxu0 %v7592_v30  ;;  %4463 = vmatprep.subr.bf16.mxu1 %v7595_v31  ;;  %v7677_v30 = vld [vmem:[#allocation6 + $0x148] ss:$16 sps:$4 sm:$0xff]   ;;  %v7682_v31 = vld [vmem:[#allocation6 + $0x164] ss:$16 sps:$4 sm:$0xff]  }
 0x2ab   :  { %4054 = vmatpush1.bf16.msra.mxu0 %v7590_v32  ;;  %4464 = vmatpush1.bf16.msra.mxu1 %v7593_v33  ;;  %v7685_v32 = vld [vmem:[#allocation6 + $0x16c] ss:$16 sps:$4 sm:$0xff]   ;;  %v7680_v33 = vld [vmem:[#allocation6 + $0x160] ss:$16 sps:$4 sm:$0xff]  }
 0x2ac   :  { %4064 = vmatprep.subr.bf16.mxu0 %v7598_v35  ;;  %4474 = vmatprep.subr.bf16.mxu1 %v7601_v36  ;;  %v7688_v35 = vld [vmem:[#allocation6 + $0x184] ss:$16 sps:$4 sm:$0xff]   ;;  %v7691_v36 = vld [vmem:[#allocation6 + $0x18c] ss:$16 sps:$4 sm:$0xff]  }
 0x2ae   :  { %4056 = vmatmul.mubr.bf16.vlgmr.msra.gmra.mrb[0].mxu0 %v138_v37  ;;  %4466 = vmatmul.mubr.bf16.vlgmr.msra.gmra.mrb[0].mxu1 %v138_v37  ;;  %v7686_v37 = vld [vmem:[#allocation6 + $0x180] ss:$16 sps:$4 sm:$0xff]  }
 0x2af   :  { %4065 = vmatpush1.bf16.msra.mxu0 %v7596_v38  ;;  %4475 = vmatpush1.bf16.msra.mxu1 %v7599_v39  ;;  %v7689_v38 = vld [vmem:[#allocation6 + $0x188] ss:$16 sps:$4 sm:$0xff]   ;;  %v7694_v39 = vld [vmem:[#allocation6 + $0x1a4] ss:$16 sps:$4 sm:$0xff]  }
 0x2b0   :  { %4066 = vmatprep.subr.bf16.mxu0 %v7604_v40  ;;  %4476 = vmatprep.subr.bf16.mxu1 %v7607_v41  ;;  %v7697_v40 = vld [vmem:[#allocation6 + $0x1ac] ss:$16 sps:$4 sm:$0xff]   ;;  %v7692_v41 = vld [vmem:[#allocation6 + $0x1a0] ss:$16 sps:$4 sm:$0xff]  }
 0x2b1   :  { %4096 = vmatprep.mubr.bf16.mxu0 %v7988_v46  ;;  %4506 = vmatprep.mubr.bf16.mxu1 %v7988_v46  ;;  %v7701_v46 = vld [vmem:[#allocation6 + $0x1c8] ss:$16 sps:$4 sm:$0xff]  }
 0x2b3   :  { %4067 = vmatpush1.bf16.msra.mxu0 %v7602_v42  ;;  %4477 = vmatpush1.bf16.msra.mxu1 %v7605_v43  ;;  %v7695_v42 = vld [vmem:[#allocation6 + $0x1a8] ss:$16 sps:$4 sm:$0xff]   ;;  %v7700_v43 = vld [vmem:[#allocation6 + $0x1c4] ss:$16 sps:$4 sm:$0xff]  }
 0x2b4   :  { %4068 = vmatprep.subr.bf16.mxu0 %v7610_v44  ;;  %4478 = vmatprep.subr.bf16.mxu1 %v7613_v45  ;;  %v7703_v44 = vld [vmem:[#allocation6 + $0x1cc] ss:$16 sps:$4 sm:$0xff]   ;;  %v7698_v45 = vld [vmem:[#allocation6 + $0x1c0] ss:$16 sps:$4 sm:$0xff]  }
 0x2b7   :  { %4069 = vmatpush1.bf16.msra.mxu0 %v7608_v47  ;;  %4479 = vmatpush1.bf16.msra.mxu1 %v7611_v48  ;;  %v7706_v47 = vld [vmem:[#allocation6 + $0x1e4] ss:$16 sps:$4 sm:$0xff]   ;;  %v7709_v48 = vld [vmem:[#allocation6 + $0x1ec] ss:$16 sps:$4 sm:$0xff]  }
 0x2b8   :  { %5313 = vmatprep.subr.bf16.mxu0 %v7616_v50  ;;  %5395 = vmatprep.subr.bf16.mxu1 %v7619_v51  ;;  %v7707_v50 = vld [vmem:[#allocation6 + $0x1e8] ss:$16 sps:$4 sm:$0xff]   ;;  %v7712_v51 = vld [vmem:[#allocation6 + $0x204] ss:$16 sps:$4 sm:$0xff]  }
 0x2ba   :  { %6426 = vmatmul.mubr.msk.bf16.vlgmr.msra.gmra.mrb[0].mxu0 %vm3691_vm0, %v140_v52  ;;  %6427 = vmatmul.mubr.msk.bf16.vlgmr.msra.gmra.mrb[0].mxu1 %vm3691_vm0, %v140_v52  ;;  %v7715_v52 = vld [vmem:[#allocation6 + $0x20c] ss:$16 sps:$4 sm:$0xff]  }
 0x2bb   :  { %5314 = vmatpush1.bf16.msra.mxu0 %v7614_v53  ;;  %5396 = vmatpush1.bf16.msra.mxu1 %v7617_v54  ;;  %v731_v53 = vlaneseq }
 0x2bc   :  { %5315 = vmatprep.subr.bf16.mxu0 %v7622_v55  ;;  %5397 = vmatprep.subr.bf16.mxu1 %v7625_v56  ;;  %v8161_v56 = vld [vmem:[#allocation4] sm:$0xf] }
 0x2bd   :  { %v8158_v54 = vshrl.u32 %v731_v53, 7  ;;  %v7772_v53 = vld [vmem:[#allocation6 + $0x344] ss:$16 sps:$4 sm:$0xff]  }
 0x2bf   :  { %5316 = vmatpush1.bf16.msra.mxu0 %v7620_v57  ;;  %5398 = vmatpush1.bf16.msra.mxu1 %v7623_v58  ;;  %v733_v55 = vsub.s32 0, %v8158_v54  ;;  %v737_v57 = vsub.s32 1, %v8158_v54  ;;  %v745_v58 = vsub.s32 3, %v8158_v54 }
 0x2c0   :  { %5317 = vmatprep.subr.bf16.mxu0 %v7628_v59  ;;  %5399 = vmatprep.subr.bf16.mxu1 %v7631_v60 }
 0x2c1   :  { %v734_v59 = vrot.slane %v8161_v56, %v733_v55  ;;  %v738_v60 = vrot.slane %v8161_v56, %v737_v57 }
 0x2c3   :  { %5318 = vmatpush1.bf16.msra.mxu0 %v7626_v61  ;;  %5400 = vmatpush1.bf16.msra.mxu1 %v7629_v62  ;;  %v746_v61 = vrot.slane %v8161_v56, %v745_v58 }
 0x2c4   :  { %5319 = vmatprep.subr.bf16.mxu0 %v7634_v63  ;;  %5401 = vmatprep.subr.bf16.mxu1 %v7637_v0 }
 0x2c7   :  { %5320 = vmatpush1.bf16.msra.mxu0 %v7632_v1  ;;  %5402 = vmatpush1.bf16.msra.mxu1 %v7635_v2 }
 0x2c8   :  { %5321 = vmatprep.subr.bf16.mxu0 %v7640_v3  ;;  %5403 = vmatprep.subr.bf16.mxu1 %v7643_v4 }
 0x2cb   :  { %5322 = vmatpush1.bf16.msra.mxu0 %v7638_v5  ;;  %5404 = vmatpush1.bf16.msra.mxu1 %v7641_v6 }
 0x2cc   :  { %5323 = vmatprep.subr.bf16.mxu0 %v7646_v7  ;;  %5405 = vmatprep.subr.bf16.mxu1 %v7649_v8 }
 0x2cf   :  { %5324 = vmatpush1.bf16.msra.mxu0 %v7644_v9  ;;  %5406 = vmatpush1.bf16.msra.mxu1 %v7647_v10 }
 0x2d0   :  { %5325 = vmatprep.subr.bf16.mxu0 %v7652_v11  ;;  %5407 = vmatprep.subr.bf16.mxu1 %v7655_v12 }
 0x2d3   :  { %5326 = vmatpush1.bf16.msra.mxu0 %v7650_v13  ;;  %5408 = vmatpush1.bf16.msra.mxu1 %v7653_v14  ;;  %v7710_v13 = vld [vmem:[#allocation6 + $0x200] ss:$16 sps:$4 sm:$0xff]   ;;  %v7713_v14 = vld [vmem:[#allocation6 + $0x208] ss:$16 sps:$4 sm:$0xff]  }
 0x2d4   :  { %5327 = vmatprep.subr.bf16.mxu0 %v7658_v15  ;;  %5409 = vmatprep.subr.bf16.mxu1 %v7661_v16  ;;  %v7718_v16 = vld [vmem:[#allocation6 + $0x224] ss:$16 sps:$4 sm:$0xff]  }
 0x2d7   :  { %5328 = vmatpush1.bf16.msra.mxu0 %v7656_v17  ;;  %5410 = vmatpush1.bf16.msra.mxu1 %v7659_v18  ;;  %v7721_v17 = vld [vmem:[#allocation6 + $0x22c] ss:$16 sps:$4 sm:$0xff]  }
 0x2d8   :  { %5329 = vmatprep.subr.bf16.mxu0 %v7664_v19  ;;  %5411 = vmatprep.subr.bf16.mxu1 %v7667_v20  ;;  %v7716_v19 = vld [vmem:[#allocation6 + $0x220] ss:$16 sps:$4 sm:$0xff]   ;;  %v7719_v20 = vld [vmem:[#allocation6 + $0x228] ss:$16 sps:$4 sm:$0xff]  }
 0x2db   :  { %5330 = vmatpush1.bf16.msra.mxu0 %v7662_v21  ;;  %5412 = vmatpush1.bf16.msra.mxu1 %v7665_v22  ;;  %v7724_v21 = vld [vmem:[#allocation6 + $0x244] ss:$16 sps:$4 sm:$0xff]   ;;  %v7727_v22 = vld [vmem:[#allocation6 + $0x24c] ss:$16 sps:$4 sm:$0xff]  }
 0x2dc   :  { %5331 = vmatprep.subr.bf16.mxu0 %v7670_v23  ;;  %5413 = vmatprep.subr.bf16.mxu1 %v7673_v24  ;;  %v7722_v23 = vld [vmem:[#allocation6 + $0x240] ss:$16 sps:$4 sm:$0xff]   ;;  %v7725_v24 = vld [vmem:[#allocation6 + $0x248] ss:$16 sps:$4 sm:$0xff]  }
 0x2df   :  { %5332 = vmatpush1.bf16.msra.mxu0 %v7668_v25  ;;  %5414 = vmatpush1.bf16.msra.mxu1 %v7671_v26  ;;  %v7730_v25 = vld [vmem:[#allocation6 + $0x264] ss:$16 sps:$4 sm:$0xff]   ;;  %v7733_v26 = vld [vmem:[#allocation6 + $0x26c] ss:$16 sps:$4 sm:$0xff]  }
 0x2e0   :  { %5333 = vmatprep.subr.bf16.mxu0 %v7676_v27  ;;  %5415 = vmatprep.subr.bf16.mxu1 %v7679_v28  ;;  %v7728_v27 = vld [vmem:[#allocation6 + $0x260] ss:$16 sps:$4 sm:$0xff]   ;;  %v7731_v28 = vld [vmem:[#allocation6 + $0x268] ss:$16 sps:$4 sm:$0xff]  }
 0x2e3   :  { %5334 = vmatpush1.bf16.msra.mxu0 %v7674_v29  ;;  %5416 = vmatpush1.bf16.msra.mxu1 %v7677_v30  ;;  %v7736_v29 = vld [vmem:[#allocation6 + $0x284] ss:$16 sps:$4 sm:$0xff]   ;;  %v7739_v30 = vld [vmem:[#allocation6 + $0x28c] ss:$16 sps:$4 sm:$0xff]  }
 0x2e4   :  { %5335 = vmatprep.subr.bf16.mxu0 %v7682_v31  ;;  %5417 = vmatprep.subr.bf16.mxu1 %v7685_v32  ;;  %v7734_v31 = vld [vmem:[#allocation6 + $0x280] ss:$16 sps:$4 sm:$0xff]   ;;  %v7737_v32 = vld [vmem:[#allocation6 + $0x288] ss:$16 sps:$4 sm:$0xff]  }
 0x2e7   :  { %5336 = vmatpush1.bf16.msra.mxu0 %v7680_v33  ;;  %5418 = vmatpush1.bf16.msra.mxu1 %v7683_v34  ;;  %v7742_v33 = vld [vmem:[#allocation6 + $0x2a4] ss:$16 sps:$4 sm:$0xff]   ;;  %v7745_v34 = vld [vmem:[#allocation6 + $0x2ac] ss:$16 sps:$4 sm:$0xff]  }
 0x2e8   :  { %5337 = vmatprep.subr.bf16.mxu0 %v7688_v35  ;;  %5419 = vmatprep.subr.bf16.mxu1 %v7691_v36  ;;  %v7740_v35 = vld [vmem:[#allocation6 + $0x2a0] ss:$16 sps:$4 sm:$0xff]   ;;  %v7743_v36 = vld [vmem:[#allocation6 + $0x2a8] ss:$16 sps:$4 sm:$0xff]  }
 0x2eb   :  { %5338 = vmatpush1.bf16.msra.mxu0 %v7686_v37  ;;  %5420 = vmatpush1.bf16.msra.mxu1 %v7689_v38  ;;  %v7748_v37 = vld [vmem:[#allocation6 + $0x2c4] ss:$16 sps:$4 sm:$0xff]   ;;  %v7751_v38 = vld [vmem:[#allocation6 + $0x2cc] ss:$16 sps:$4 sm:$0xff]  }
 0x2ec   :  { %5339 = vmatprep.subr.bf16.mxu0 %v7694_v39  ;;  %5421 = vmatprep.subr.bf16.mxu1 %v7697_v40  ;;  %v7746_v39 = vld [vmem:[#allocation6 + $0x2c0] ss:$16 sps:$4 sm:$0xff]   ;;  %v7749_v40 = vld [vmem:[#allocation6 + $0x2c8] ss:$16 sps:$4 sm:$0xff]  }
 0x2ef   :  { %5340 = vmatpush1.bf16.msra.mxu0 %v7692_v41  ;;  %5422 = vmatpush1.bf16.msra.mxu1 %v7695_v42  ;;  %v7754_v41 = vld [vmem:[#allocation6 + $0x2e4] ss:$16 sps:$4 sm:$0xff]   ;;  %v7757_v42 = vld [vmem:[#allocation6 + $0x2ec] ss:$16 sps:$4 sm:$0xff]  }
 0x2f0   :  { %5341 = vmatprep.subr.bf16.mxu0 %v7700_v43  ;;  %5423 = vmatprep.subr.bf16.mxu1 %v7703_v44  ;;  %v7752_v43 = vld [vmem:[#allocation6 + $0x2e0] ss:$16 sps:$4 sm:$0xff]   ;;  %v7755_v44 = vld [vmem:[#allocation6 + $0x2e8] ss:$16 sps:$4 sm:$0xff]  }
 0x2f3   :  { %5342 = vmatpush1.bf16.msra.mxu0 %v7698_v45  ;;  %5424 = vmatpush1.bf16.msra.mxu1 %v7701_v46  ;;  %v7760_v45 = vld [vmem:[#allocation6 + $0x304] ss:$16 sps:$4 sm:$0xff]   ;;  %v7763_v46 = vld [vmem:[#allocation6 + $0x30c] ss:$16 sps:$4 sm:$0xff]  }
 0x2f4   :  { %5343 = vmatprep.subr.bf16.mxu0 %v7706_v47  ;;  %5425 = vmatprep.subr.bf16.mxu1 %v7709_v48  ;;  %v7758_v47 = vld [vmem:[#allocation6 + $0x300] ss:$16 sps:$4 sm:$0xff]   ;;  %v7761_v48 = vld [vmem:[#allocation6 + $0x308] ss:$16 sps:$4 sm:$0xff]  }
 0x2f7   :  { %5344 = vmatpush1.bf16.msra.mxu0 %v7704_v49  ;;  %5426 = vmatpush1.bf16.msra.mxu1 %v7707_v50  ;;  %v7766_v49 = vld [vmem:[#allocation6 + $0x324] ss:$16 sps:$4 sm:$0xff]   ;;  %v7769_v50 = vld [vmem:[#allocation6 + $0x32c] ss:$16 sps:$4 sm:$0xff]  }
 0x2f8   :  { %5354 = vmatprep.subr.bf16.mxu0 %v7712_v51  ;;  %5436 = vmatprep.subr.bf16.mxu1 %v7715_v52  ;;  %v7764_v51 = vld [vmem:[#allocation6 + $0x320] ss:$16 sps:$4 sm:$0xff]   ;;  %v7767_v52 = vld [vmem:[#allocation6 + $0x328] ss:$16 sps:$4 sm:$0xff]  }
 0x38d   :  { %v4098_v62 = vpop.f32.mrb[0].mxu0  ;;  %v8174_v63 = vpop.f32.mrb[0].mxu1 }
 0x38e   :  { %v6633_v0 = vadd.f32 %v4098_v62, %v734_v59  ;;  %v4100_v1 = vpop.f32.mrb[1].mxu0  ;;  %v4510_v2 = vpop.f32.mrb[1].mxu1  ;;  %v7775_v59 = vld [vmem:[#allocation6 + $0x34c] ss:$16 sps:$4 sm:$0xff]   ;;  %v7778_v62 = vld [vmem:[#allocation6 + $0x364] ss:$16 sps:$4 sm:$0xff]  }
 0x38f   :  { %v6634_v3 = vadd.f32 %v4100_v1, %v738_v60  ;;  %v6636_v4 = vadd.f32 %v4510_v2, %v746_v61  ;;  %v4102_v5 = vpop.f32.mrb[2].mxu0  ;;  %v4512_v6 = vpop.f32.mrb[2].mxu1  ;;  %v7770_v60 = vld [vmem:[#allocation6 + $0x340] ss:$16 sps:$4 sm:$0xff]   ;;  %v7773_v61 = vld [vmem:[#allocation6 + $0x348] ss:$16 sps:$4 sm:$0xff]  }
 0x390   :  { %v4515_v7 = vmax.f32 %v6633_v0, 0.0  ;;  %v4103_v8 = vpop.f32.mrb[3].mxu0  ;;  %v4513_v9 = vpop.f32.mrb[3].mxu1  ;;  %v7781_v0 = vld [vmem:[#allocation6 + $0x36c] ss:$16 sps:$4 sm:$0xff]  }
 0x391   :  { %v4516_v10 = vmax.f32 %v6634_v3, 0.0  ;;  %v4518_v11 = vmax.f32 %v6636_v4, 0.0  ;;  %v7776_v1 = vld [vmem:[#allocation6 + $0x360] ss:$16 sps:$4 sm:$0xff]   ;;  %v7779_v2 = vld [vmem:[#allocation6 + $0x368] ss:$16 sps:$4 sm:$0xff]  }
 0x392   :  { %v4519_v15 = vpack.c.bf16 %v4515_v7, %v4515_v7  ;;  %v7784_v3 = vld [vmem:[#allocation6 + $0x384] ss:$16 sps:$4 sm:$0xff]   ;;  %v7787_v4 = vld [vmem:[#allocation6 + $0x38c] ss:$16 sps:$4 sm:$0xff]   ;;  %v7782_v5 = vld [vmem:[#allocation6 + $0x380] ss:$16 sps:$4 sm:$0xff]  }
 0x393   :  { %v4520_v12 = vpack.c.bf16 %v4516_v10, %v4516_v10  ;;  %v4522_v18 = vpack.c.bf16 %v4518_v11, %v4518_v11  ;;  %v7785_v6 = vld [vmem:[#allocation6 + $0x388] ss:$16 sps:$4 sm:$0xff]   ;;  %v741_v7 = vsub.s32 2, %v8158_v54  ;;  %v7790_v8 = vld [vmem:[#allocation6 + $0x3a4] ss:$16 sps:$4 sm:$0xff]  }
 0x394   :  { %v7793_v9 = vld [vmem:[#allocation6 + $0x3ac] ss:$16 sps:$4 sm:$0xff]   ;;  %v7788_v10 = vld [vmem:[#allocation6 + $0x3a0] ss:$16 sps:$4 sm:$0xff]   ;;  %v7791_v11 = vld [vmem:[#allocation6 + $0x3a8] ss:$16 sps:$4 sm:$0xff]  }
 0x395   :  { %5345 = vmatprep.mubr.bf16.mxu0 %v4520_v12  ;;  %5427 = vmatprep.mubr.bf16.mxu1 %v4520_v12  ;;  %v742_v12 = vrot.slane %v8161_v56, %v741_v7  ;;  %v7806_v56 = vld [vmem:[#allocation9 + $0x40] sm:$0xff]  }
 0x396   :  { %5346 = vmatmul.mubr.bf16.vlgmr.msra.gmra.mrb[4].mxu0 %v4519_v15  ;;  %5428 = vmatmul.mubr.bf16.vlgmr.msra.gmra.mrb[4].mxu1 %v4519_v15  ;;  %v7794_v15 = vld [vmem:[#allocation6 + $0x3c0] ss:$16 sps:$4 sm:$0xff]  }
 0x397   :  { %5355 = vmatpush1.bf16.msra.mxu0 %v7710_v13  ;;  %5437 = vmatpush1.bf16.msra.mxu1 %v7713_v14  ;;  %v7796_v13 = vld [vmem:[#allocation6 + $0x3c4] ss:$16 sps:$4 sm:$0xff]   ;;  %v7799_v14 = vld [vmem:[#allocation6 + $0x3cc] ss:$16 sps:$4 sm:$0xff]  }
 0x398   :  { %5386 = vmatprep.mubr.bf16.mxu0 %v4522_v18  ;;  %5468 = vmatprep.mubr.bf16.mxu1 %v4522_v18  ;;  %v7802_v18 = vld [vmem:[#allocation6 + $0x3e4] ss:$16 sps:$4 sm:$0xff]  }
 0x399   :  { %5356 = vmatprep.subr.bf16.mxu0 %v7718_v16  ;;  %5438 = vmatprep.subr.bf16.mxu1 %v7721_v17  ;;  %v7797_v16 = vld [vmem:[#allocation6 + $0x3c8] ss:$16 sps:$4 sm:$0xff]   ;;  %v6635_v17 = vadd.f32 %v8174_v63, %v742_v12  ;;  %v7810_v63 = vld [vmem:[#allocation9 + $0x48] sm:$0xff]  }
 0x39b   :  { %5357 = vmatpush1.bf16.msra.mxu0 %v7716_v19  ;;  %5439 = vmatpush1.bf16.msra.mxu1 %v7719_v20  ;;  %v7805_v19 = vld [vmem:[#allocation6 + $0x3ec] ss:$16 sps:$4 sm:$0xff]   ;;  %v7800_v20 = vld [vmem:[#allocation6 + $0x3e0] ss:$16 sps:$4 sm:$0xff]  }
 0x39c   :  { %5358 = vmatprep.subr.bf16.mxu0 %v7724_v21  ;;  %5440 = vmatprep.subr.bf16.mxu1 %v7727_v22  ;;  %v7803_v21 = vld [vmem:[#allocation6 + $0x3e8] ss:$16 sps:$4 sm:$0xff]   ;;  %v4517_v22 = vmax.f32 %v6635_v17, 0.0 }
 0x39f   :  { %5359 = vmatpush1.bf16.msra.mxu0 %v7722_v23  ;;  %5441 = vmatpush1.bf16.msra.mxu1 %v7725_v24  ;;  %v7807_v23 = vld [vmem:[#allocation9 + $0xc0] sm:$0xff]  }
 0x3a0   :  { %5360 = vmatprep.subr.bf16.mxu0 %v7730_v25  ;;  %5442 = vmatprep.subr.bf16.mxu1 %v7733_v26  ;;  %v7808_v24 = vld [vmem:[#allocation9] sm:$0xff]   ;;  %v4521_v26 = vpack.c.bf16 %v4517_v22, %v4517_v22 }
 0x3a1   :  { %v7809_v25 = vld [vmem:[#allocation9 + $0x80] sm:$0xff]  }
 0x3a3   :  { %5361 = vmatpush1.bf16.msra.mxu0 %v7728_v27  ;;  %5443 = vmatpush1.bf16.msra.mxu1 %v7731_v28  ;;  %v7811_v27 = vld [vmem:[#allocation9 + $0xc8] sm:$0xff]  }
 0x3a4   :  { %5362 = vmatprep.subr.bf16.mxu0 %v7736_v29  ;;  %5444 = vmatprep.subr.bf16.mxu1 %v7739_v30  ;;  %v7812_v28 = vld [vmem:[#allocation9 + $0x8] sm:$0xff]   ;;  %v7814_v30 = vld [vmem:[#allocation9 + $0x50] sm:$0xff]  }
 0x3a5   :  { %v7813_v29 = vld [vmem:[#allocation9 + $0x88] sm:$0xff]  }
 0x3a7   :  { %5363 = vmatpush1.bf16.msra.mxu0 %v7734_v31  ;;  %5445 = vmatpush1.bf16.msra.mxu1 %v7737_v32  ;;  %v7815_v31 = vld [vmem:[#allocation9 + $0xd0] sm:$0xff]  }
 0x3a8   :  { %5364 = vmatprep.subr.bf16.mxu0 %v7742_v33  ;;  %5446 = vmatprep.subr.bf16.mxu1 %v7745_v34  ;;  %v7816_v32 = vld [vmem:[#allocation9 + $0x10] sm:$0xff]   ;;  %v7818_v34 = vld [vmem:[#allocation9 + $0x58] sm:$0xff]  }
 0x3a9   :  { %v7817_v33 = vld [vmem:[#allocation9 + $0x90] sm:$0xff]  }
 0x3ab   :  { %5365 = vmatpush1.bf16.msra.mxu0 %v7740_v35  ;;  %5447 = vmatpush1.bf16.msra.mxu1 %v7743_v36  ;;  %v7819_v35 = vld [vmem:[#allocation9 + $0xd8] sm:$0xff]  }
 0x3ac   :  { %5366 = vmatprep.subr.bf16.mxu0 %v7748_v37  ;;  %5448 = vmatprep.subr.bf16.mxu1 %v7751_v38  ;;  %v7820_v36 = vld [vmem:[#allocation9 + $0x18] sm:$0xff]   ;;  %v7822_v38 = vld [vmem:[#allocation9 + $0x60] sm:$0xff]  }
 0x3ad   :  { %v7821_v37 = vld [vmem:[#allocation9 + $0x98] sm:$0xff]  }
 0x3af   :  { %5367 = vmatpush1.bf16.msra.mxu0 %v7746_v39  ;;  %5449 = vmatpush1.bf16.msra.mxu1 %v7749_v40  ;;  %v7823_v39 = vld [vmem:[#allocation9 + $0xe0] sm:$0xff]  }
 0x3b0   :  { %5368 = vmatprep.subr.bf16.mxu0 %v7754_v41  ;;  %5450 = vmatprep.subr.bf16.mxu1 %v7757_v42  ;;  %v7824_v40 = vld [vmem:[#allocation9 + $0x20] sm:$0xff]   ;;  %v7826_v42 = vld [vmem:[#allocation9 + $0x68] sm:$0xff]  }
 0x3b1   :  { %v7825_v41 = vld [vmem:[#allocation9 + $0xa0] sm:$0xff]  }
 0x3b3   :  { %5369 = vmatpush1.bf16.msra.mxu0 %v7752_v43  ;;  %5451 = vmatpush1.bf16.msra.mxu1 %v7755_v44  ;;  %v7827_v43 = vld [vmem:[#allocation9 + $0xe8] sm:$0xff]  }
 0x3b4   :  { %5370 = vmatprep.subr.bf16.mxu0 %v7760_v45  ;;  %5452 = vmatprep.subr.bf16.mxu1 %v7763_v46  ;;  %v7828_v44 = vld [vmem:[#allocation9 + $0x28] sm:$0xff]   ;;  %v7830_v46 = vld [vmem:[#allocation9 + $0x70] sm:$0xff]  }
 0x3b5   :  { %v7829_v45 = vld [vmem:[#allocation9 + $0xa8] sm:$0xff]  }
 0x3b7   :  { %5371 = vmatpush1.bf16.msra.mxu0 %v7758_v47  ;;  %5453 = vmatpush1.bf16.msra.mxu1 %v7761_v48  ;;  %v7831_v47 = vld [vmem:[#allocation9 + $0xf0] sm:$0xff]  }
 0x3b8   :  { %5372 = vmatprep.subr.bf16.mxu0 %v7766_v49  ;;  %5454 = vmatprep.subr.bf16.mxu1 %v7769_v50  ;;  %v7832_v48 = vld [vmem:[#allocation9 + $0x30] sm:$0xff]   ;;  %v7834_v50 = vld [vmem:[#allocation9 + $0x78] sm:$0xff]  }
 0x3b9   :  { %v7833_v49 = vld [vmem:[#allocation9 + $0xb0] sm:$0xff]  }
 0x3bb   :  { %5373 = vmatpush1.bf16.msra.mxu0 %v7764_v51  ;;  %5455 = vmatpush1.bf16.msra.mxu1 %v7767_v52  ;;  %v7835_v51 = vld [vmem:[#allocation9 + $0xf8] sm:$0xff]  }
 0x3bc   :  { %5374 = vmatprep.subr.bf16.mxu0 %v7772_v53  ;;  %5456 = vmatprep.subr.bf16.mxu1 %v7775_v59  ;;  %v7836_v52 = vld [vmem:[#allocation9 + $0x38] sm:$0xff]  }
 0x3bd   :  { %v7837_v53 = vld [vmem:[#allocation9 + $0xb8] sm:$0xff]  }
 0x3be   :  { %v4651_v59 = vld [vmem:[#allocation7] sm:$0xf] }
 0x3bf   :  { %5375 = vmatpush1.bf16.msra.mxu0 %v7770_v60  ;;  %5457 = vmatpush1.bf16.msra.mxu1 %v7773_v61  ;;  %v4656_v60 = vrot.slane %v4651_v59, %v733_v55  ;;  %v4664_v61 = vrot.slane %v4651_v59, %v741_v7 }
 0x3c0   :  { %5376 = vmatprep.subr.bf16.mxu0 %v7778_v62  ;;  %5458 = vmatprep.subr.bf16.mxu1 %v7781_v0  ;;  %v4660_v62 = vrot.slane %v4651_v59, %v737_v57  ;;  %v4668_v0 = vrot.slane %v4651_v59, %v745_v58 }
 0x3c3   :  { %5377 = vmatpush1.bf16.msra.mxu0 %v7776_v1  ;;  %5459 = vmatpush1.bf16.msra.mxu1 %v7779_v2 }
 0x3c4   :  { %5378 = vmatprep.subr.bf16.mxu0 %v7784_v3  ;;  %5460 = vmatprep.subr.bf16.mxu1 %v7787_v4 }
 0x3c7   :  { %5379 = vmatpush1.bf16.msra.mxu0 %v7782_v5  ;;  %5461 = vmatpush1.bf16.msra.mxu1 %v7785_v6 }
 0x3c8   :  { %5380 = vmatprep.subr.bf16.mxu0 %v7790_v8  ;;  %5462 = vmatprep.subr.bf16.mxu1 %v7793_v9 }
 0x3cb   :  { %5381 = vmatpush1.bf16.msra.mxu0 %v7788_v10  ;;  %5463 = vmatpush1.bf16.msra.mxu1 %v7791_v11 }
 0x3cc   :  { %5382 = vmatprep.subr.bf16.mxu0 %v7796_v13  ;;  %5464 = vmatprep.subr.bf16.mxu1 %v7799_v14 }
 0x3cf   :  { %5383 = vmatpush1.bf16.msra.mxu0 %v7794_v15  ;;  %5465 = vmatpush1.bf16.msra.mxu1 %v7797_v16 }
 0x3d0   :  { %5384 = vmatprep.subr.bf16.mxu0 %v7802_v18  ;;  %5466 = vmatprep.subr.bf16.mxu1 %v7805_v19  ;;  %v6556_v19 = vld [vmem:[#allocation10] ss:$0 sm:$0xff] }
 0x3d3   :  { %5385 = vmatpush1.bf16.msra.mxu0 %v7800_v20  ;;  %5467 = vmatpush1.bf16.msra.mxu1 %v7803_v21 }
 0x3d4   :  { %6589 = vmatprep.subr.bf16.mxu0 %v7806_v56  ;;  %6611 = vmatprep.subr.bf16.mxu1 %v7807_v23 }
 0x3d6   :  { %5387 = vmatmul.mubr.bf16.vlgmr.msra.gmra.mrb[4].mxu0 %v4521_v26  ;;  %5469 = vmatmul.mubr.bf16.vlgmr.msra.gmra.mrb[4].mxu1 %v4521_v26 }
 0x3d7   :  { %6590 = vmatpush3.bf16.msra.mxu0 %v7808_v24  ;;  %6612 = vmatpush3.bf16.msra.mxu1 %v7809_v25 }
 0x3d8   :  { %6591 = vmatprep.subr.bf16.mxu0 %v7810_v63  ;;  %6613 = vmatprep.subr.bf16.mxu1 %v7811_v27 }
 0x3db   :  { %6592 = vmatpush3.bf16.msra.mxu0 %v7812_v28  ;;  %6614 = vmatpush3.bf16.msra.mxu1 %v7813_v29 }
 0x3dc   :  { %6593 = vmatprep.subr.bf16.mxu0 %v7814_v30  ;;  %6615 = vmatprep.subr.bf16.mxu1 %v7815_v31 }
 0x3df   :  { %6594 = vmatpush3.bf16.msra.mxu0 %v7816_v32  ;;  %6616 = vmatpush3.bf16.msra.mxu1 %v7817_v33 }
 0x3e0   :  { %6595 = vmatprep.subr.bf16.mxu0 %v7818_v34  ;;  %6617 = vmatprep.subr.bf16.mxu1 %v7819_v35 }
 0x3e3   :  { %6596 = vmatpush3.bf16.msra.mxu0 %v7820_v36  ;;  %6618 = vmatpush3.bf16.msra.mxu1 %v7821_v37 }
 0x3e4   :  { %6597 = vmatprep.subr.bf16.mxu0 %v7822_v38  ;;  %6619 = vmatprep.subr.bf16.mxu1 %v7823_v39 }
 0x3e7   :  { %6598 = vmatpush3.bf16.msra.mxu0 %v7824_v40  ;;  %6620 = vmatpush3.bf16.msra.mxu1 %v7825_v41 }
 0x3e8   :  { %6599 = vmatprep.subr.bf16.mxu0 %v7826_v42  ;;  %6621 = vmatprep.subr.bf16.mxu1 %v7827_v43 }
 0x3eb   :  { %6600 = vmatpush3.bf16.msra.mxu0 %v7828_v44  ;;  %6622 = vmatpush3.bf16.msra.mxu1 %v7829_v45 }
 0x3ec   :  { %6601 = vmatprep.subr.bf16.mxu0 %v7830_v46  ;;  %6623 = vmatprep.subr.bf16.mxu1 %v7831_v47 }
 0x3ef   :  { %6602 = vmatpush3.bf16.msra.mxu0 %v7832_v48  ;;  %6624 = vmatpush3.bf16.msra.mxu1 %v7833_v49 }
 0x3f0   :  { %6603 = vmatprep.subr.bf16.mxu0 %v7834_v50  ;;  %6625 = vmatprep.subr.bf16.mxu1 %v7835_v51 }
 0x3f3   :  { %6604 = vmatpush3.bf16.msra.mxu0 %v7836_v52  ;;  %6626 = vmatpush3.bf16.msra.mxu1 %v7837_v53 }
 0x4a9   :  { %v5388_v1 = vpop.f32.mrb[4].mxu0  ;;  %v5470_v2 = vpop.f32.mrb[4].mxu1 }
 0x4aa   :  { %v6637_v3 = vadd.f32 %v5388_v1, %v4656_v60  ;;  %v6639_v4 = vadd.f32 %v5470_v2, %v4664_v61  ;;  %v5390_v5 = vpop.f32.mrb[5].mxu0  ;;  %v5472_v6 = vpop.f32.mrb[5].mxu1 }
 0x4ab   :  { %v6638_v8 = vadd.f32 %v5390_v5, %v4660_v62  ;;  %v6640_v9 = vadd.f32 %v5472_v6, %v4668_v0  ;;  %v5392_v10 = vpop.f32.mrb[6].mxu0  ;;  %v5474_v11 = vpop.f32.mrb[6].mxu1 }
 0x4ac   :  { %v5477_v55 = vmax.f32 %v6637_v3, 0.0  ;;  %v5479_v12 = vmax.f32 %v6639_v4, 0.0  ;;  %v5393_v13 = vpop.f32.mrb[7].mxu0  ;;  %v5475_v7 = vpop.f32.mrb[7].mxu1 }
 0x4ad   :  { %v5478_v14 = vmax.f32 %v6638_v8, 0.0  ;;  %v5480_v15 = vmax.f32 %v6640_v9, 0.0 }
 0x4ae   :  { %v5481_v54 = vpack.c.bf16 %v5477_v55, %v5477_v55  ;;  %v5483_v58 = vpack.c.bf16 %v5479_v12, %v5479_v12 }
 0x4af   :  { %v5482_v57 = vpack.c.bf16 %v5478_v14, %v5478_v14  ;;  %v5484_v16 = vpack.c.bf16 %v5480_v15, %v5480_v15 }
 0x4b1   :  { %5780 = vmatprep.mubr.bf16.mxu0 %v5482_v57  ;;  %5820 = vmatprep.mubr.bf16.mxu1 %v5484_v16 }
 0x4b2   :  { %5781 = vmatmul.mubr.bf16.vlgmr.msra.gmra.mrb[8].mxu0 %v5481_v54  ;;  %5821 = vmatmul.mubr.bf16.vlgmr.msra.gmra.mrb[8].mxu1 %v5483_v58 }
 0x585   :  { %v6605_v17 = vpop.f32.mrb[8].mxu0  ;;  %v6627_v18 = vpop.f32.mrb[8].mxu1 }
 0x586   :  { %v6606_v20 = vpop.f32.mrb[9].mxu0  ;;  %v6628_v21 = vpop.f32.mrb[9].mxu1 }
 0x587   :  { %v6607_v22 = vadd.f32 %v6606_v20, %v6605_v17  ;;  %v6629_v56 = vadd.f32 %v6628_v21, %v6627_v18  ;;  %v6608_v23 = vpop.f32.mrb[10].mxu0  ;;  %v6630_v24 = vpop.f32.mrb[10].mxu1 }
 0x588   :  { %v6609_v25 = vpop.f32.mrb[11].mxu0  ;;  %v6631_v26 = vpop.f32.mrb[11].mxu1 }
 0x589   :  { %v5783_v63 = vadd.f32 %v6607_v22, %v6556_v19 }
 0x58b   :  { %v5823_v27 = vadd.f32 %v6629_v56, %v5783_v63 }
 0x58d   :  { %v5828_v28 = vpack.c.bf16 %v5823_v27, %v5823_v27 }
 0x58f   :  { %5829 = vst [vmem:[%s8199_s7] sm:$0xf] %v5828_v28 }
 0x590   :  { %5834 = vsyncpa [#allocation3], 1 }
 0x591   :  { %5835 = vsyncpa [#allocation5], 1 }
 0x592   :  { %5836 = vsyncpa [#allocation8], 1 }
 0x593   :  { %5837 = vsyncpa [#allocation11], 1 }

</bundles_post_ra>
